<compile_context>
chip_gen: v6e
topology: v6e:2x2x1
jax: 0.10.0
libtpu: 0.0.40
codegen_flags: <defaults>
</compile_context>

<pallas_src>
import functools

import jax
import jax.numpy as jnp
from jax import lax
from jax.experimental import pallas as pl
from jax.experimental.pallas import tpu as pltpu


LN_EPS = 1e-5  # PyTorch nn.LayerNorm default (matches the reference module).


def _layer_norm(x, gamma, beta, eps=LN_EPS):
    mu = jnp.mean(x, axis=-1, keepdims=True)
    var = jnp.mean((x - mu) ** 2, axis=-1, keepdims=True)
    return (x - mu) * lax.rsqrt(var + eps) * gamma + beta


def _gelu(x, exact):
    if exact:
        # Exact erf GELU: bit-parity with torch.nn.GELU (long VPU polynomial).
        return jax.nn.gelu(x, approximate=False)
    # tanh approximation: goes to the otherwise-idle EUP slot; ~1e-3 abs diff.
    # TODO(synk): switch default to exact erf if strict nn.GELU parity is required.
    return jax.nn.gelu(x, approximate=True)


# -----------------------------------------------------------------------------
# Single fused kernel: patch embed (layer 0) + full transformer stack + final LN
# + classification head.  Grid = (batch_blocks [parallel], layers [arbitrary]).
# Activations stay resident in a f32 VMEM scratch across the whole layer sweep.
# -----------------------------------------------------------------------------
def _vit_kernel(xcols_ref, wpat_ref, bpat_ref, pos_ref, cls_ref,
                ln1w, ln1b, qkvw, qkvb, projw, projb,
                ln2w, ln2b, fc1w, fc1b, fc2w, fc2b,
                lnfw, lnfb, headw, headb,
                o_ref, x_acc,
                *, num_heads, bf16_act, exact_gelu):
    layer = pl.program_id(1)
    num_layers = pl.num_programs(1)
    bblk, seq, dim = x_acc.shape
    heads = num_heads
    dh = dim // heads
    scale = dh ** -0.5
    act_dtype = jnp.bfloat16 if bf16_act else jnp.float32

    # ---- layer == 0: fused patch embedding (+pos) and cls token into x_acc ----
    @pl.when(layer == 0)
    def _embed():
        w_p = wpat_ref[...]                          # (K, D) bf16
        b_p = bpat_ref[...]                          # (1, D) f32
        pos = pos_ref[...]                           # (T, D) f32
        cls = cls_ref[...]                           # (1, D) f32

        def embed_one(b, carry):
            emb = jnp.dot(xcols_ref[b], w_p,
                          preferred_element_type=jnp.float32) + b_p + pos   # (T, D)
            # cls token (no pos, as in the reference) -> row 0, patches -> rows 1..T
            x_acc[b] = jnp.concatenate([cls, emb], axis=0)                  # (S, D)
            return carry

        lax.fori_loop(0, bblk, embed_one, 0)

    # ---- per-layer weights, hoisted out of the per-sample loop ----
    g1, be1 = ln1w[...], ln1b[...]
    w_qkv, b_qkv = qkvw[...], qkvb[...]              # (D, 3D), (1, 3D)
    w_proj, b_proj = projw[...], projb[...]          # (D, D),  (1, D)
    g2, be2 = ln2w[...], ln2b[...]
    w_fc1, b_fc1 = fc1w[...], fc1b[...]              # (D, 4D), (1, 4D)
    w_fc2, b_fc2 = fc2w[...], fc2b[...]              # (4D, D), (1, D)

    def layer_one(b, carry):
        x = x_acc[b]                                 # (S, D) f32, VMEM resident

        # ---- multi-head self-attention (pre-norm) ----
        a_in = _layer_norm(x, g1, be1).astype(jnp.bfloat16)
        qkv = (jnp.dot(a_in, w_qkv, preferred_element_type=jnp.float32)
               + b_qkv).astype(jnp.bfloat16)         # (S, 3D), single full matmul

        # Head-major (H, S, dh) views via lane slices + one stack per tensor.
        q = jnp.stack([qkv[:, h * dh:(h + 1) * dh]
                       for h in range(heads)], axis=0)
        k = jnp.stack([qkv[:, dim + h * dh:dim + (h + 1) * dh]
                       for h in range(heads)], axis=0)
        v = jnp.stack([qkv[:, 2 * dim + h * dh:2 * dim + (h + 1) * dh]
                       for h in range(heads)], axis=0)

        # Heads-batched QK^T and P@V (one dot_general each, heads = batch dim).
        logits = jnp.einsum('hqd,hkd->hqk', q, k,
                            preferred_element_type=jnp.float32) * scale     # (H,S,S)
        logits = logits - jnp.max(logits, axis=-1, keepdims=True)
        p = jnp.exp(logits.astype(act_dtype))        # bf16 exp on v6e/v7x, f32 on v5e
        denom = jnp.sum(p.astype(jnp.float32), axis=-1, keepdims=True)      # (H,S,1)
        ctx = jnp.einsum('hqk,hkd->hqd', p.astype(jnp.bfloat16), v,
                         preferred_element_type=jnp.float32)                # (H,S,dh)
        # Deferred softmax normalization on the small (H,S,dh) tensor; EUP recip.
        ctx = (ctx * pl.reciprocal(denom, approx=True)).astype(jnp.bfloat16)

        # Concat heads along lanes -> (S, D), ONE full-width output projection.
        ctx_cat = jnp.concatenate([ctx[h] for h in range(heads)], axis=-1)
        attn_out = jnp.dot(ctx_cat, w_proj,
                           preferred_element_type=jnp.float32) + b_proj
        x = x + attn_out

        # ---- MLP ----
        m_in = _layer_norm(x, g2, be2).astype(jnp.bfloat16)
        h_mid = jnp.dot(m_in, w_fc1, preferred_element_type=jnp.float32) + b_fc1
        h_mid = _gelu(h_mid.astype(act_dtype), exact_gelu).astype(jnp.bfloat16)
        mlp_out = jnp.dot(h_mid, w_fc2, preferred_element_type=jnp.float32) + b_fc2
        x = x + mlp_out

        x_acc[b] = x
        return carry

    lax.fori_loop(0, bblk, layer_one, 0)

    # ---- final LayerNorm + head on the cls tokens, once after the last layer ----
    @pl.when(layer == num_layers - 1)
    def _head():
        # Static gather of row 0 of each resident sample slab (no live values
        # carried out of the batch loop above).
        cls_rows = [x_acc[b, 0:1, :] for b in range(bblk)]
        cls_mat = cls_rows[0] if bblk == 1 else jnp.concatenate(cls_rows, axis=0)
        feat = _layer_norm(cls_mat, lnfw[...], lnfb[...])        # (Bblk, D) f32
        logits_out = (jnp.dot(feat.astype(jnp.bfloat16), headw[...],
                              preferred_element_type=jnp.float32) + headb[...])
        o_ref[...] = logits_out.astype(o_ref.dtype)


# -----------------------------------------------------------------------------
# Wrapper (forward pass)
# -----------------------------------------------------------------------------
def vit_classifier_forward(img, params, *, patch_size, num_heads,
                           batch_block=None, bf16_act=None, exact_gelu=False):
    B, cin, Himg, Wimg = img.shape
    p = patch_size
    hp, wp = Himg // p, Wimg // p
    T = hp * wp
    S = T + 1
    D = params["pos_embedding"].shape[-1]
    C = params["head_w"].shape[-1]
    K = cin * p * p
    L = len(params["blocks"])
    H = num_heads

    # ---- chip-dependent knobs --------------------------------------------------
    if bf16_act is None:
        # bf16 exp/GELU only where the VPU/EUP have bf16 paths (v6e, v7x).
        try:
            kind = jax.devices()[0].device_kind.lower()
            bf16_act = not any(v in kind for v in ("v2", "v3", "v4", "v5"))
        except Exception:
            bf16_act = False
    try:
        vmem_cap = int(pltpu.get_tpu_info().vmem_capacity_bytes)
    except Exception:
        vmem_cap = 128 * 1024 * 1024
    # ~54 MiB on v7x (64 MiB physical), 100 MiB on v5e/v6e (128 MiB physical),
    # leaving headroom for compiler temporaries and double-buffered weights.
    vmem_limit = min(int(vmem_cap * 0.85), 100 * 1024 * 1024)

    # Batch block: guarantee >=2 steps on the 'parallel' grid axis whenever
    # possible so v7x's two TensorCores both get work.  For large real batches
    # tune upward (16-32 on v5e/v6e with their 128 MiB VMEM, 8-12 on v7x) to
    # amortize the per-layer weight DMA.
    if batch_block is None:
        batch_block = B
        for cand in (8, 4, 2, 1):
            if B % cand == 0 and B // cand >= 2:
                batch_block = cand
                break
    assert B % batch_block == 0, "batch must be divisible by batch_block"
    Bblk = batch_block
    n_bblk = B // Bblk

    # ---- host-side (XLA) prep: im2col patches + weight packing -----------------
    # Token order h-major then w ('b c h w -> (h w) b c' in the reference).
    x_cols = img.reshape(B, cin, hp, p, wp, p)
    x_cols = x_cols.transpose(0, 2, 4, 1, 3, 5).reshape(B, T, K).astype(jnp.bfloat16)

    w_patch = params["conv_w"].reshape(D, K).T.astype(jnp.bfloat16)   # (K, D)
    b_patch = params["conv_b"].reshape(1, D).astype(jnp.float32)
    pos = params["pos_embedding"].reshape(T, D).astype(jnp.float32)
    cls_tok = params["cls_token"].reshape(1, D).astype(jnp.float32)

    def stacked(name, dtype):
        return jnp.stack([blk[name] for blk in params["blocks"]]).astype(dtype)

    ln1_w = stacked("ln1_w", jnp.float32)          # (L, 1, D)
    ln1_b = stacked("ln1_b", jnp.float32)
    qkv_w = stacked("qkv_w", jnp.bfloat16)         # (L, D, 3D)
    qkv_b = stacked("qkv_b", jnp.float32)          # (L, 1, 3D)
    proj_w = stacked("proj_w", jnp.bfloat16)       # (L, D, D) - kept full-width
    proj_b = stacked("proj_b", jnp.float32)        # (L, 1, D)
    ln2_w = stacked("ln2_w", jnp.float32)
    ln2_b = stacked("ln2_b", jnp.float32)
    fc1_w = stacked("fc1_w", jnp.bfloat16)         # (L, D, 4D)
    fc1_b = stacked("fc1_b", jnp.float32)          # (L, 1, 4D)
    fc2_w = stacked("fc2_w", jnp.bfloat16)         # (L, 4D, D)
    fc2_b = stacked("fc2_b", jnp.float32)          # (L, 1, D)

    lnf_w = params["ln_w"].reshape(1, D).astype(jnp.float32)
    lnf_b = params["ln_b"].reshape(1, D).astype(jnp.float32)
    head_w = params["head_w"].astype(jnp.bfloat16)                    # (D, C) bf16
    head_b = params["head_b"].reshape(1, C).astype(jnp.float32)

    def layer_spec(shape):    # per-layer stacked tensor; layer axis squeezed
        zeros = (0,) * len(shape)
        return pl.BlockSpec((None,) + tuple(shape), lambda g, l: (l,) + zeros)

    def const_spec(shape):    # grid-invariant tensor (DMA'd once, stays resident)
        zeros = (0,) * len(shape)
        return pl.BlockSpec(tuple(shape), lambda g, l: zeros)

    grid_spec = pltpu.PrefetchScalarGridSpec(
        num_scalar_prefetch=0,
        grid=(n_bblk, L),                               # (batch blocks, layers)
        in_specs=[
            pl.BlockSpec((Bblk, T, K), lambda g, l: (g, 0, 0)),   # im2col patches
            const_spec((K, D)), const_spec((1, D)),               # patch conv w, b
            const_spec((T, D)), const_spec((1, D)),               # pos, cls
            layer_spec((1, D)), layer_spec((1, D)),               # ln1
            layer_spec((D, 3 * D)), layer_spec((1, 3 * D)),       # qkv
            layer_spec((D, D)), layer_spec((1, D)),               # proj
            layer_spec((1, D)), layer_spec((1, D)),               # ln2
            layer_spec((D, 4 * D)), layer_spec((1, 4 * D)),       # fc1
            layer_spec((4 * D, D)), layer_spec((1, D)),           # fc2
            const_spec((1, D)), const_spec((1, D)),               # final LN
            const_spec((D, C)), const_spec((1, C)),               # head
        ],
        # 3-D output so the block's last two dims equal the full array dims
        # (keeps Mosaic's (8,128) block constraint satisfied for any Bblk).
        out_specs=pl.BlockSpec((None, Bblk, C), lambda g, l: (g, 0, 0)),
        scratch_shapes=[pltpu.VMEM((Bblk, S, D), jnp.float32)],
    )

    kernel = functools.partial(_vit_kernel, num_heads=H,
                               bf16_act=bool(bf16_act),
                               exact_gelu=bool(exact_gelu))

    logits = pl.pallas_call(
        kernel,
        grid_spec=grid_spec,
        out_shape=jax.ShapeDtypeStruct((n_bblk, Bblk, C), jnp.float32),
        compiler_params=pltpu.CompilerParams(
            dimension_semantics=("parallel", "arbitrary"),
            vmem_limit_bytes=vmem_limit),
    )(x_cols, w_patch, b_patch, pos, cls_tok,
      ln1_w, ln1_b, qkv_w, qkv_b, proj_w, proj_b,
      ln2_w, ln2_b, fc1_w, fc1_b, fc2_w, fc2_b,
      lnf_w, lnf_b, head_w, head_b)
    return logits.reshape(B, C)


# -----------------------------------------------------------------------------
# Deterministic parameter init (shapes per MAE_Encoder / ViT_Classifier __init__)
# -----------------------------------------------------------------------------
def init_params(key, *, image_size, patch_size, embed_dim, num_layers,
                num_heads, num_classes):
    del num_heads  # head count only affects the forward reshape, not param shapes
    cin = 3
    T = (image_size // patch_size) ** 2
    keys = jax.random.split(key, 4 + num_layers)

    def normal(k, shape, std=0.02):
        return (std * jax.random.normal(k, shape)).astype(jnp.float32)

    D = embed_dim
    params = {
        "cls_token": normal(keys[0], (1, 1, D)),
        "pos_embedding": normal(keys[1], (T, 1, D)),
        "conv_w": normal(keys[2], (D, cin, patch_size, patch_size), std=0.05),
        "conv_b": jnp.full((D,), 0.01, jnp.float32),
        "ln_w": jnp.ones((1, D), jnp.float32),
        "ln_b": jnp.zeros((1, D), jnp.float32),
        "head_w": normal(keys[3], (D, num_classes), std=0.05),
        "head_b": jnp.zeros((1, num_classes), jnp.float32),
        "blocks": [],
    }
    for li in range(num_layers):
        lk = jax.random.split(keys[4 + li], 4)
        params["blocks"].append({
            "ln1_w": jnp.ones((1, D), jnp.float32),
            "ln1_b": jnp.zeros((1, D), jnp.float32),
            "qkv_w": normal(lk[0], (D, 3 * D), std=0.05),
            "qkv_b": jnp.zeros((1, 3 * D), jnp.float32),
            "proj_w": normal(lk[1], (D, D), std=0.05),
            "proj_b": jnp.zeros((1, D), jnp.float32),
            "ln2_w": jnp.ones((1, D), jnp.float32),
            "ln2_b": jnp.zeros((1, D), jnp.float32),
            "fc1_w": normal(lk[2], (D, 4 * D), std=0.05),
            "fc1_b": jnp.zeros((1, 4 * D), jnp.float32),
            "fc2_w": normal(lk[3], (4 * D, D), std=0.05),
            "fc2_b": jnp.zeros((1, D), jnp.float32),
        })
    return params


if __name__ == "__main__":
    # Small but forward-consistent config: 16x16 image, 4x4 patches -> 16 tokens
    # (+cls), D=128 (lane-aligned), 4 heads, 2 layers, batch 4 so the 'parallel'
    # batch-block axis has 2 grid steps.
    image_size, patch_size, embed_dim = 16, 4, 128
    num_layers, num_heads, num_classes = 2, 4, 10
    batch = 4

    key = jax.random.PRNGKey(0)
    kp, kx = jax.random.split(key)
    params = init_params(kp, image_size=image_size, patch_size=patch_size,
                         embed_dim=embed_dim, num_layers=num_layers,
                         num_heads=num_heads, num_classes=num_classes)
    img = jax.random.normal(kx, (batch, 3, image_size, image_size), jnp.float32)

    logits = vit_classifier_forward(img, params, patch_size=patch_size,
                                    num_heads=num_heads)
    jax.block_until_ready(logits)
    assert logits.shape == (batch, num_classes)
    assert bool(jnp.all(jnp.isfinite(logits)))
    print("KERNEL_OK")
</pallas_src>

<mosaic_0001>
module attributes {stable_mosaic.version = 11 : i64} {
  func.func @_vit_kernel(%arg0: i32, %arg1: i32, %arg2: memref<2x16x48xbf16, #tpu.memory_space<vmem>>, %arg3: memref<48x128xbf16, #tpu.memory_space<vmem>>, %arg4: memref<1x128xf32, #tpu.memory_space<vmem>>, %arg5: memref<16x128xf32, #tpu.memory_space<vmem>>, %arg6: memref<1x128xf32, #tpu.memory_space<vmem>>, %arg7: memref<1x1x128xf32, #tpu.memory_space<vmem>>, %arg8: memref<1x1x128xf32, #tpu.memory_space<vmem>>, %arg9: memref<1x128x384xbf16, #tpu.memory_space<vmem>>, %arg10: memref<1x1x384xf32, #tpu.memory_space<vmem>>, %arg11: memref<1x128x128xbf16, #tpu.memory_space<vmem>>, %arg12: memref<1x1x128xf32, #tpu.memory_space<vmem>>, %arg13: memref<1x1x128xf32, #tpu.memory_space<vmem>>, %arg14: memref<1x1x128xf32, #tpu.memory_space<vmem>>, %arg15: memref<1x128x512xbf16, #tpu.memory_space<vmem>>, %arg16: memref<1x1x512xf32, #tpu.memory_space<vmem>>, %arg17: memref<1x512x128xbf16, #tpu.memory_space<vmem>>, %arg18: memref<1x1x128xf32, #tpu.memory_space<vmem>>, %arg19: memref<1x128xf32, #tpu.memory_space<vmem>>, %arg20: memref<1x128xf32, #tpu.memory_space<vmem>>, %arg21: memref<128x10xbf16, #tpu.memory_space<vmem>>, %arg22: memref<1x10xf32, #tpu.memory_space<vmem>>, %arg23: memref<1x2x10xf32, #tpu.memory_space<vmem>>, %arg24: memref<2x17x128xf32, #tpu.memory_space<vmem>>) attributes {dimension_semantics = [#tpu.dimension_semantics<parallel>, #tpu.dimension_semantics<arbitrary>], iteration_bounds = array<i64: 2, 2>, scalar_prefetch = 0 : i64, scratch_operands = 1 : i64, tpu.core_type = #tpu.core_type<tc>, window_params = [{transform_indices = @transform_0, window_bounds = array<i64: 2, 16, 48>}, {pipeline_mode = #tpu.pipeline_mode<synchronous>, transform_indices = @transform_1, window_bounds = array<i64: 48, 128>}, {pipeline_mode = #tpu.pipeline_mode<synchronous>, transform_indices = @transform_2, window_bounds = array<i64: 1, 128>}, {pipeline_mode = #tpu.pipeline_mode<synchronous>, transform_indices = @transform_3, window_bounds = array<i64: 16, 128>}, {pipeline_mode = #tpu.pipeline_mode<synchronous>, transform_indices = @transform_4, window_bounds = array<i64: 1, 128>}, {transform_indices = @transform_5, window_bounds = array<i64: 1, 1, 128>}, {transform_indices = @transform_6, window_bounds = array<i64: 1, 1, 128>}, {transform_indices = @transform_7, window_bounds = array<i64: 1, 128, 384>}, {transform_indices = @transform_8, window_bounds = array<i64: 1, 1, 384>}, {transform_indices = @transform_9, window_bounds = array<i64: 1, 128, 128>}, {transform_indices = @transform_10, window_bounds = array<i64: 1, 1, 128>}, {transform_indices = @transform_11, window_bounds = array<i64: 1, 1, 128>}, {transform_indices = @transform_12, window_bounds = array<i64: 1, 1, 128>}, {transform_indices = @transform_13, window_bounds = array<i64: 1, 128, 512>}, {transform_indices = @transform_14, window_bounds = array<i64: 1, 1, 512>}, {transform_indices = @transform_15, window_bounds = array<i64: 1, 512, 128>}, {transform_indices = @transform_16, window_bounds = array<i64: 1, 1, 128>}, {pipeline_mode = #tpu.pipeline_mode<synchronous>, transform_indices = @transform_17, window_bounds = array<i64: 1, 128>}, {pipeline_mode = #tpu.pipeline_mode<synchronous>, transform_indices = @transform_18, window_bounds = array<i64: 1, 128>}, {pipeline_mode = #tpu.pipeline_mode<synchronous>, transform_indices = @transform_19, window_bounds = array<i64: 128, 10>}, {pipeline_mode = #tpu.pipeline_mode<synchronous>, transform_indices = @transform_20, window_bounds = array<i64: 1, 10>}, {transform_indices = @transform_21, window_bounds = array<i64: 1, 2, 10>}]} {
    %c0_i32 = arith.constant 0 : i32
    %0 = arith.cmpi eq, %arg1, %c0_i32 : i32
    %1 = arith.extui %0 : i1 to i32
    %c0_i32_0 = arith.constant 0 : i32
    %2 = arith.cmpi ne, %1, %c0_i32_0 : i32
    scf.if %2 {
      %c0_40 = arith.constant 0 : index
      %c0_41 = arith.constant 0 : index
      %31 = vector.load %arg3[%c0_40, %c0_41] : memref<48x128xbf16, #tpu.memory_space<vmem>>, vector<48x128xbf16>
      %c0_42 = arith.constant 0 : index
      %c0_43 = arith.constant 0 : index
      %32 = vector.load %arg4[%c0_42, %c0_43] : memref<1x128xf32, #tpu.memory_space<vmem>>, vector<1x128xf32>
      %c0_44 = arith.constant 0 : index
      %c0_45 = arith.constant 0 : index
      %33 = vector.load %arg5[%c0_44, %c0_45] : memref<16x128xf32, #tpu.memory_space<vmem>>, vector<16x128xf32>
      %c0_46 = arith.constant 0 : index
      %c0_47 = arith.constant 0 : index
      %34 = vector.load %arg6[%c0_46, %c0_47] : memref<1x128xf32, #tpu.memory_space<vmem>>, vector<1x128xf32>
      %c0_i32_48 = arith.constant 0 : i32
      %c2_i32_49 = arith.constant 2 : i32
      %35 = arith.addi %c0_i32_48, %c2_i32_49 : i32
      %c1_i32_50 = arith.constant 1 : i32
      scf.for %arg25 = %c0_i32_48 to %35 step %c1_i32_50  : i32 {
        %36 = arith.index_cast %arg25 : i32 to index
        %c0_52 = arith.constant 0 : index
        %c0_53 = arith.constant 0 : index
        %37 = vector.load %arg2[%36, %c0_52, %c0_53] : memref<2x16x48xbf16, #tpu.memory_space<vmem>>, vector<1x16x48xbf16>
        %38 = vector.shape_cast %37 : vector<1x16x48xbf16> to vector<16x48xbf16>
        %cst = arith.constant dense<0.000000e+00> : vector<16x128xf32>
        %39 = tpu.matmul %38, %31, %cst {dimension_numbers = #tpu.dot_dimension_numbers<[1], [0], [0], [1], [0, 0, 1, 1], [], []>} : vector<16x48xbf16>, vector<48x128xbf16>, vector<16x128xf32> -> vector<16x128xf32>
        %40 = vector.broadcast %32 : vector<1x128xf32> to vector<16x128xf32>
        %41 = arith.addf %39, %40 : vector<16x128xf32>
        %42 = arith.addf %41, %33 : vector<16x128xf32>
        %43 = tpu.concatenate %34, %42 in 0 : vector<1x128xf32>, vector<16x128xf32> -> vector<17x128xf32>
        %44 = arith.index_cast %arg25 : i32 to index
        %c0_54 = arith.constant 0 : index
        %c0_55 = arith.constant 0 : index
        %45 = vector.load %arg24[%44, %c0_54, %c0_55] : memref<2x17x128xf32, #tpu.memory_space<vmem>>, vector<1x17x128xf32>
        %46 = vector.shape_cast %45 : vector<1x17x128xf32> to vector<17x128xf32>
        %47 = vector.shape_cast %43 : vector<17x128xf32> to vector<1x17x128xf32>
        tpu.vector_store %arg24[%44, %c0_54, %c0_55], %47 {strides = array<i32>} : memref<2x17x128xf32, #tpu.memory_space<vmem>>, vector<1x17x128xf32>,
      }
      %c2_i32_51 = arith.constant 2 : i32
    } else {
    }
    %c0 = arith.constant 0 : index
    %c0_1 = arith.constant 0 : index
    %c0_2 = arith.constant 0 : index
    %3 = vector.load %arg7[%c0, %c0_1, %c0_2] : memref<1x1x128xf32, #tpu.memory_space<vmem>>, vector<1x1x128xf32>
    %4 = vector.shape_cast %3 : vector<1x1x128xf32> to vector<1x128xf32>
    %c0_3 = arith.constant 0 : index
    %c0_4 = arith.constant 0 : index
    %c0_5 = arith.constant 0 : index
    %5 = vector.load %arg8[%c0_3, %c0_4, %c0_5] : memref<1x1x128xf32, #tpu.memory_space<vmem>>, vector<1x1x128xf32>
    %6 = vector.shape_cast %5 : vector<1x1x128xf32> to vector<1x128xf32>
    %c0_6 = arith.constant 0 : index
    %c0_7 = arith.constant 0 : index
    %c0_8 = arith.constant 0 : index
    %7 = vector.load %arg9[%c0_6, %c0_7, %c0_8] : memref<1x128x384xbf16, #tpu.memory_space<vmem>>, vector<1x128x384xbf16>
    %8 = vector.shape_cast %7 : vector<1x128x384xbf16> to vector<128x384xbf16>
    %c0_9 = arith.constant 0 : index
    %c0_10 = arith.constant 0 : index
    %c0_11 = arith.constant 0 : index
    %9 = vector.load %arg10[%c0_9, %c0_10, %c0_11] : memref<1x1x384xf32, #tpu.memory_space<vmem>>, vector<1x1x384xf32>
    %10 = vector.shape_cast %9 : vector<1x1x384xf32> to vector<1x384xf32>
    %c0_12 = arith.constant 0 : index
    %c0_13 = arith.constant 0 : index
    %c0_14 = arith.constant 0 : index
    %11 = vector.load %arg11[%c0_12, %c0_13, %c0_14] : memref<1x128x128xbf16, #tpu.memory_space<vmem>>, vector<1x128x128xbf16>
    %12 = vector.shape_cast %11 : vector<1x128x128xbf16> to vector<128x128xbf16>
    %c0_15 = arith.constant 0 : index
    %c0_16 = arith.constant 0 : index
    %c0_17 = arith.constant 0 : index
    %13 = vector.load %arg12[%c0_15, %c0_16, %c0_17] : memref<1x1x128xf32, #tpu.memory_space<vmem>>, vector<1x1x128xf32>
    %14 = vector.shape_cast %13 : vector<1x1x128xf32> to vector<1x128xf32>
    %c0_18 = arith.constant 0 : index
    %c0_19 = arith.constant 0 : index
    %c0_20 = arith.constant 0 : index
    %15 = vector.load %arg13[%c0_18, %c0_19, %c0_20] : memref<1x1x128xf32, #tpu.memory_space<vmem>>, vector<1x1x128xf32>
    %16 = vector.shape_cast %15 : vector<1x1x128xf32> to vector<1x128xf32>
    %c0_21 = arith.constant 0 : index
    %c0_22 = arith.constant 0 : index
    %c0_23 = arith.constant 0 : index
    %17 = vector.load %arg14[%c0_21, %c0_22, %c0_23] : memref<1x1x128xf32, #tpu.memory_space<vmem>>, vector<1x1x128xf32>
    %18 = vector.shape_cast %17 : vector<1x1x128xf32> to vector<1x128xf32>
    %c0_24 = arith.constant 0 : index
    %c0_25 = arith.constant 0 : index
    %c0_26 = arith.constant 0 : index
    %19 = vector.load %arg15[%c0_24, %c0_25, %c0_26] : memref<1x128x512xbf16, #tpu.memory_space<vmem>>, vector<1x128x512xbf16>
    %20 = vector.shape_cast %19 : vector<1x128x512xbf16> to vector<128x512xbf16>
    %c0_27 = arith.constant 0 : index
    %c0_28 = arith.constant 0 : index
    %c0_29 = arith.constant 0 : index
    %21 = vector.load %arg16[%c0_27, %c0_28, %c0_29] : memref<1x1x512xf32, #tpu.memory_space<vmem>>, vector<1x1x512xf32>
    %22 = vector.shape_cast %21 : vector<1x1x512xf32> to vector<1x512xf32>
    %c0_30 = arith.constant 0 : index
    %c0_31 = arith.constant 0 : index
    %c0_32 = arith.constant 0 : index
    %23 = vector.load %arg17[%c0_30, %c0_31, %c0_32] : memref<1x512x128xbf16, #tpu.memory_space<vmem>>, vector<1x512x128xbf16>
    %24 = vector.shape_cast %23 : vector<1x512x128xbf16> to vector<512x128xbf16>
    %c0_33 = arith.constant 0 : index
    %c0_34 = arith.constant 0 : index
    %c0_35 = arith.constant 0 : index
    %25 = vector.load %arg18[%c0_33, %c0_34, %c0_35] : memref<1x1x128xf32, #tpu.memory_space<vmem>>, vector<1x1x128xf32>
    %26 = vector.shape_cast %25 : vector<1x1x128xf32> to vector<1x128xf32>
    %c0_i32_36 = arith.constant 0 : i32
    %c2_i32 = arith.constant 2 : i32
    %27 = arith.addi %c0_i32_36, %c2_i32 : i32
    %c1_i32 = arith.constant 1 : i32
    scf.for %arg25 = %c0_i32_36 to %27 step %c1_i32  : i32 {
      %31 = arith.index_cast %arg25 : i32 to index
      %c0_40 = arith.constant 0 : index
      %c0_41 = arith.constant 0 : index
      %32 = vector.load %arg24[%31, %c0_40, %c0_41] : memref<2x17x128xf32, #tpu.memory_space<vmem>>, vector<1x17x128xf32>
      %33 = vector.shape_cast %32 : vector<1x17x128xf32> to vector<17x128xf32>
      %cst = arith.constant dense<0.000000e+00> : vector<17xf32>
      %34 = vector.multi_reduction <add>, %33, %cst [1] : vector<17x128xf32> to vector<17xf32>
      %35 = vector.shape_cast %34 : vector<17xf32> to vector<17x1xf32>
      %cst_42 = arith.constant 1.280000e+02 : f32
      %36 = vector.broadcast %cst_42 : f32 to vector<17x1xf32>
      %37 = arith.divf %35, %36 : vector<17x1xf32>
      %38 = vector.broadcast %37 : vector<17x1xf32> to vector<17x128xf32>
      %39 = arith.subf %33, %38 : vector<17x128xf32>
      %40 = arith.mulf %39, %39 : vector<17x128xf32>
      %cst_43 = arith.constant dense<0.000000e+00> : vector<17xf32>
      %41 = vector.multi_reduction <add>, %40, %cst_43 [1] : vector<17x128xf32> to vector<17xf32>
      %42 = vector.shape_cast %41 : vector<17xf32> to vector<17x1xf32>
      %cst_44 = arith.constant 1.280000e+02 : f32
      %43 = vector.broadcast %cst_44 : f32 to vector<17x1xf32>
      %44 = arith.divf %42, %43 : vector<17x1xf32>
      %45 = vector.broadcast %37 : vector<17x1xf32> to vector<17x128xf32>
      %46 = arith.subf %33, %45 : vector<17x128xf32>
      %cst_45 = arith.constant 9.99999974E-6 : f32
      %47 = vector.broadcast %cst_45 : f32 to vector<17x1xf32>
      %48 = arith.addf %44, %47 : vector<17x1xf32>
      %49 = math.rsqrt %48 : vector<17x1xf32>
      %50 = vector.broadcast %49 : vector<17x1xf32> to vector<17x128xf32>
      %51 = arith.mulf %46, %50 : vector<17x128xf32>
      %52 = vector.broadcast %4 : vector<1x128xf32> to vector<17x128xf32>
      %53 = arith.mulf %51, %52 : vector<17x128xf32>
      %54 = vector.broadcast %6 : vector<1x128xf32> to vector<17x128xf32>
      %55 = arith.addf %53, %54 : vector<17x128xf32>
      %56 = arith.truncf %55 : vector<17x128xf32> to vector<17x128xbf16>
      %cst_46 = arith.constant dense<0.000000e+00> : vector<17x384xf32>
      %57 = tpu.matmul %56, %8, %cst_46 {dimension_numbers = #tpu.dot_dimension_numbers<[1], [0], [0], [1], [0, 0, 1, 1], [], []>} : vector<17x128xbf16>, vector<128x384xbf16>, vector<17x384xf32> -> vector<17x384xf32>
      %58 = vector.broadcast %10 : vector<1x384xf32> to vector<17x384xf32>
      %59 = arith.addf %57, %58 : vector<17x384xf32>
      %60 = arith.truncf %59 : vector<17x384xf32> to vector<17x384xbf16>
      %61 = vector.extract_strided_slice %60 {offsets = [0, 0], sizes = [17, 32], strides = [1, 1]} : vector<17x384xbf16> to vector<17x32xbf16>
      %62 = vector.extract_strided_slice %60 {offsets = [0, 32], sizes = [17, 32], strides = [1, 1]} : vector<17x384xbf16> to vector<17x32xbf16>
      %63 = vector.extract_strided_slice %60 {offsets = [0, 64], sizes = [17, 32], strides = [1, 1]} : vector<17x384xbf16> to vector<17x32xbf16>
      %64 = vector.extract_strided_slice %60 {offsets = [0, 96], sizes = [17, 32], strides = [1, 1]} : vector<17x384xbf16> to vector<17x32xbf16>
      %65 = vector.shape_cast %61 : vector<17x32xbf16> to vector<1x17x32xbf16>
      %66 = vector.shape_cast %62 : vector<17x32xbf16> to vector<1x17x32xbf16>
      %67 = vector.shape_cast %63 : vector<17x32xbf16> to vector<1x17x32xbf16>
      %68 = vector.shape_cast %64 : vector<17x32xbf16> to vector<1x17x32xbf16>
      %69 = tpu.concatenate %65, %66, %67, %68 in 0 : vector<1x17x32xbf16>, vector<1x17x32xbf16>, vector<1x17x32xbf16>, vector<1x17x32xbf16> -> vector<4x17x32xbf16>
      %70 = vector.extract_strided_slice %60 {offsets = [0, 128], sizes = [17, 32], strides = [1, 1]} : vector<17x384xbf16> to vector<17x32xbf16>
      %71 = vector.extract_strided_slice %60 {offsets = [0, 160], sizes = [17, 32], strides = [1, 1]} : vector<17x384xbf16> to vector<17x32xbf16>
      %72 = vector.extract_strided_slice %60 {offsets = [0, 192], sizes = [17, 32], strides = [1, 1]} : vector<17x384xbf16> to vector<17x32xbf16>
      %73 = vector.extract_strided_slice %60 {offsets = [0, 224], sizes = [17, 32], strides = [1, 1]} : vector<17x384xbf16> to vector<17x32xbf16>
      %74 = vector.shape_cast %70 : vector<17x32xbf16> to vector<1x17x32xbf16>
      %75 = vector.shape_cast %71 : vector<17x32xbf16> to vector<1x17x32xbf16>
      %76 = vector.shape_cast %72 : vector<17x32xbf16> to vector<1x17x32xbf16>
      %77 = vector.shape_cast %73 : vector<17x32xbf16> to vector<1x17x32xbf16>
      %78 = tpu.concatenate %74, %75, %76, %77 in 0 : vector<1x17x32xbf16>, vector<1x17x32xbf16>, vector<1x17x32xbf16>, vector<1x17x32xbf16> -> vector<4x17x32xbf16>
      %79 = vector.extract_strided_slice %60 {offsets = [0, 256], sizes = [17, 32], strides = [1, 1]} : vector<17x384xbf16> to vector<17x32xbf16>
      %80 = vector.extract_strided_slice %60 {offsets = [0, 288], sizes = [17, 32], strides = [1, 1]} : vector<17x384xbf16> to vector<17x32xbf16>
      %81 = vector.extract_strided_slice %60 {offsets = [0, 320], sizes = [17, 32], strides = [1, 1]} : vector<17x384xbf16> to vector<17x32xbf16>
      %82 = vector.extract_strided_slice %60 {offsets = [0, 352], sizes = [17, 32], strides = [1, 1]} : vector<17x384xbf16> to vector<17x32xbf16>
      %83 = vector.shape_cast %79 : vector<17x32xbf16> to vector<1x17x32xbf16>
      %84 = vector.shape_cast %80 : vector<17x32xbf16> to vector<1x17x32xbf16>
      %85 = vector.shape_cast %81 : vector<17x32xbf16> to vector<1x17x32xbf16>
      %86 = vector.shape_cast %82 : vector<17x32xbf16> to vector<1x17x32xbf16>
      %87 = tpu.concatenate %83, %84, %85, %86 in 0 : vector<1x17x32xbf16>, vector<1x17x32xbf16>, vector<1x17x32xbf16>, vector<1x17x32xbf16> -> vector<4x17x32xbf16>
      "tpu.trace_start"() <{level = 10 : i32, message = "hqd,hkd->hqk"}> : () -> ()
      %cst_47 = arith.constant dense<0.000000e+00> : vector<4x17x17xf32>
      %88 = tpu.matmul %69, %78, %cst_47 {dimension_numbers = #tpu.dot_dimension_numbers<[2], [2], [1], [1], [0, 0, 0, 1, 1, 1], [0], [0]>} : vector<4x17x32xbf16>, vector<4x17x32xbf16>, vector<4x17x17xf32> -> vector<4x17x17xf32>
      "tpu.trace_stop"() : () -> ()
      %cst_48 = arith.constant 0.176776692 : f32
      %89 = vector.broadcast %cst_48 : f32 to vector<4x17x17xf32>
      %90 = arith.mulf %88, %89 : vector<4x17x17xf32>
      %cst_49 = arith.constant dense<0xFF800000> : vector<4x17xf32>
      %91 = vector.multi_reduction <maximumf>, %90, %cst_49 [2] : vector<4x17x17xf32> to vector<4x17xf32>
      %92 = vector.shape_cast %91 : vector<4x17xf32> to vector<4x17x1xf32>
      %93 = vector.broadcast %92 : vector<4x17x1xf32> to vector<4x17x17xf32>
      %94 = arith.subf %90, %93 : vector<4x17x17xf32>
      %95 = arith.truncf %94 : vector<4x17x17xf32> to vector<4x17x17xbf16>
      %96 = math.exp %95 : vector<4x17x17xbf16>
      %97 = arith.extf %96 : vector<4x17x17xbf16> to vector<4x17x17xf32>
      %cst_50 = arith.constant dense<0.000000e+00> : vector<4x17xf32>
      %98 = vector.multi_reduction <add>, %97, %cst_50 [2] : vector<4x17x17xf32> to vector<4x17xf32>
      %99 = vector.shape_cast %98 : vector<4x17xf32> to vector<4x17x1xf32>
      "tpu.trace_start"() <{level = 10 : i32, message = "hqk,hkd->hqd"}> : () -> ()
      %cst_51 = arith.constant dense<0.000000e+00> : vector<4x17x32xf32>
      %100 = tpu.matmul %96, %87, %cst_51 {dimension_numbers = #tpu.dot_dimension_numbers<[2], [1], [1], [2], [0, 0, 0, 1, 1, 2], [0], [0]>} : vector<4x17x17xbf16>, vector<4x17x32xbf16>, vector<4x17x32xf32> -> vector<4x17x32xf32>
      "tpu.trace_stop"() : () -> ()
      %101 = tpu.reciprocal %99 {approx = true} : vector<4x17x1xf32> -> vector<4x17x1xf32>
      %102 = vector.broadcast %101 : vector<4x17x1xf32> to vector<4x17x32xf32>
      %103 = arith.mulf %100, %102 : vector<4x17x32xf32>
      %104 = arith.truncf %103 : vector<4x17x32xf32> to vector<4x17x32xbf16>
      %105 = vector.extract_strided_slice %104 {offsets = [0, 0, 0], sizes = [1, 17, 32], strides = [1, 1, 1]} : vector<4x17x32xbf16> to vector<1x17x32xbf16>
      %106 = vector.shape_cast %105 : vector<1x17x32xbf16> to vector<17x32xbf16>
      %107 = vector.extract_strided_slice %104 {offsets = [1, 0, 0], sizes = [1, 17, 32], strides = [1, 1, 1]} : vector<4x17x32xbf16> to vector<1x17x32xbf16>
      %108 = vector.shape_cast %107 : vector<1x17x32xbf16> to vector<17x32xbf16>
      %109 = vector.extract_strided_slice %104 {offsets = [2, 0, 0], sizes = [1, 17, 32], strides = [1, 1, 1]} : vector<4x17x32xbf16> to vector<1x17x32xbf16>
      %110 = vector.shape_cast %109 : vector<1x17x32xbf16> to vector<17x32xbf16>
      %111 = vector.extract_strided_slice %104 {offsets = [3, 0, 0], sizes = [1, 17, 32], strides = [1, 1, 1]} : vector<4x17x32xbf16> to vector<1x17x32xbf16>
      %112 = vector.shape_cast %111 : vector<1x17x32xbf16> to vector<17x32xbf16>
      %113 = tpu.concatenate %106, %108, %110, %112 in 1 : vector<17x32xbf16>, vector<17x32xbf16>, vector<17x32xbf16>, vector<17x32xbf16> -> vector<17x128xbf16>
      %cst_52 = arith.constant dense<0.000000e+00> : vector<17x128xf32>
      %114 = tpu.matmul %113, %12, %cst_52 {dimension_numbers = #tpu.dot_dimension_numbers<[1], [0], [0], [1], [0, 0, 1, 1], [], []>} : vector<17x128xbf16>, vector<128x128xbf16>, vector<17x128xf32> -> vector<17x128xf32>
      %115 = vector.broadcast %14 : vector<1x128xf32> to vector<17x128xf32>
      %116 = arith.addf %114, %115 : vector<17x128xf32>
      %117 = arith.addf %33, %116 : vector<17x128xf32>
      %cst_53 = arith.constant dense<0.000000e+00> : vector<17xf32>
      %118 = vector.multi_reduction <add>, %117, %cst_53 [1] : vector<17x128xf32> to vector<17xf32>
      %119 = vector.shape_cast %118 : vector<17xf32> to vector<17x1xf32>
      %cst_54 = arith.constant 1.280000e+02 : f32
      %120 = vector.broadcast %cst_54 : f32 to vector<17x1xf32>
      %121 = arith.divf %119, %120 : vector<17x1xf32>
      %122 = vector.broadcast %121 : vector<17x1xf32> to vector<17x128xf32>
      %123 = arith.subf %117, %122 : vector<17x128xf32>
      %124 = arith.mulf %123, %123 : vector<17x128xf32>
      %cst_55 = arith.constant dense<0.000000e+00> : vector<17xf32>
      %125 = vector.multi_reduction <add>, %124, %cst_55 [1] : vector<17x128xf32> to vector<17xf32>
      %126 = vector.shape_cast %125 : vector<17xf32> to vector<17x1xf32>
      %cst_56 = arith.constant 1.280000e+02 : f32
      %127 = vector.broadcast %cst_56 : f32 to vector<17x1xf32>
      %128 = arith.divf %126, %127 : vector<17x1xf32>
      %129 = vector.broadcast %121 : vector<17x1xf32> to vector<17x128xf32>
      %130 = arith.subf %117, %129 : vector<17x128xf32>
      %cst_57 = arith.constant 9.99999974E-6 : f32
      %131 = vector.broadcast %cst_57 : f32 to vector<17x1xf32>
      %132 = arith.addf %128, %131 : vector<17x1xf32>
      %133 = math.rsqrt %132 : vector<17x1xf32>
      %134 = vector.broadcast %133 : vector<17x1xf32> to vector<17x128xf32>
      %135 = arith.mulf %130, %134 : vector<17x128xf32>
      %136 = vector.broadcast %16 : vector<1x128xf32> to vector<17x128xf32>
      %137 = arith.mulf %135, %136 : vector<17x128xf32>
      %138 = vector.broadcast %18 : vector<1x128xf32> to vector<17x128xf32>
      %139 = arith.addf %137, %138 : vector<17x128xf32>
      %140 = arith.truncf %139 : vector<17x128xf32> to vector<17x128xbf16>
      %cst_58 = arith.constant dense<0.000000e+00> : vector<17x512xf32>
      %141 = tpu.matmul %140, %20, %cst_58 {dimension_numbers = #tpu.dot_dimension_numbers<[1], [0], [0], [1], [0, 0, 1, 1], [], []>} : vector<17x128xbf16>, vector<128x512xbf16>, vector<17x512xf32> -> vector<17x512xf32>
      %142 = vector.broadcast %22 : vector<1x512xf32> to vector<17x512xf32>
      %143 = arith.addf %141, %142 : vector<17x512xf32>
      %144 = arith.truncf %143 : vector<17x512xf32> to vector<17x512xbf16>
      %145 = arith.mulf %144, %144 : vector<17x512xbf16>
      %146 = arith.mulf %144, %145 : vector<17x512xbf16>
      %cst_59 = arith.constant 4.467770e-02 : bf16
      %147 = vector.broadcast %cst_59 : bf16 to vector<17x512xbf16>
      %148 = arith.mulf %147, %146 : vector<17x512xbf16>
      %149 = arith.addf %144, %148 : vector<17x512xbf16>
      %cst_60 = arith.constant 7.968750e-01 : bf16
      %150 = vector.broadcast %cst_60 : bf16 to vector<17x512xbf16>
      %151 = arith.mulf %150, %149 : vector<17x512xbf16>
      %152 = math.tanh %151 : vector<17x512xbf16>
      %cst_61 = arith.constant 1.000000e+00 : bf16
      %153 = vector.broadcast %cst_61 : bf16 to vector<17x512xbf16>
      %154 = arith.addf %153, %152 : vector<17x512xbf16>
      %cst_62 = arith.constant 5.000000e-01 : bf16
      %155 = vector.broadcast %cst_62 : bf16 to vector<17x512xbf16>
      %156 = arith.mulf %155, %154 : vector<17x512xbf16>
      %157 = arith.mulf %144, %156 : vector<17x512xbf16>
      %cst_63 = arith.constant dense<0.000000e+00> : vector<17x128xf32>
      %158 = tpu.matmul %157, %24, %cst_63 {dimension_numbers = #tpu.dot_dimension_numbers<[1], [0], [0], [1], [0, 0, 1, 1], [], []>} : vector<17x512xbf16>, vector<512x128xbf16>, vector<17x128xf32> -> vector<17x128xf32>
      %159 = vector.broadcast %26 : vector<1x128xf32> to vector<17x128xf32>
      %160 = arith.addf %158, %159 : vector<17x128xf32>
      %161 = arith.addf %117, %160 : vector<17x128xf32>
      %162 = arith.index_cast %arg25 : i32 to index
      %c0_64 = arith.constant 0 : index
      %c0_65 = arith.constant 0 : index
      %163 = vector.load %arg24[%162, %c0_64, %c0_65] : memref<2x17x128xf32, #tpu.memory_space<vmem>>, vector<1x17x128xf32>
      %164 = vector.shape_cast %163 : vector<1x17x128xf32> to vector<17x128xf32>
      %165 = vector.shape_cast %161 : vector<17x128xf32> to vector<1x17x128xf32>
      tpu.vector_store %arg24[%162, %c0_64, %c0_65], %165 {strides = array<i32>} : memref<2x17x128xf32, #tpu.memory_space<vmem>>, vector<1x17x128xf32>,
    }
    %c2_i32_37 = arith.constant 2 : i32
    %c1_i32_38 = arith.constant 1 : i32
    %28 = arith.cmpi eq, %arg1, %c1_i32_38 : i32
    %29 = arith.extui %28 : i1 to i32
    %c0_i32_39 = arith.constant 0 : i32
    %30 = arith.cmpi ne, %29, %c0_i32_39 : i32
    scf.if %30 {
      %c0_40 = arith.constant 0 : index
      %c0_41 = arith.constant 0 : index
      %c0_42 = arith.constant 0 : index
      %31 = vector.load %arg24[%c0_40, %c0_41, %c0_42] : memref<2x17x128xf32, #tpu.memory_space<vmem>>, vector<1x1x128xf32>
      %32 = vector.shape_cast %31 : vector<1x1x128xf32> to vector<1x128xf32>
      %c1 = arith.constant 1 : index
      %c0_43 = arith.constant 0 : index
      %c0_44 = arith.constant 0 : index
      %33 = vector.load %arg24[%c1, %c0_43, %c0_44] : memref<2x17x128xf32, #tpu.memory_space<vmem>>, vector<1x1x128xf32>
      %34 = vector.shape_cast %33 : vector<1x1x128xf32> to vector<1x128xf32>
      %35 = tpu.concatenate %32, %34 in 0 : vector<1x128xf32>, vector<1x128xf32> -> vector<2x128xf32>
      %c0_45 = arith.constant 0 : index
      %c0_46 = arith.constant 0 : index
      %36 = vector.load %arg19[%c0_45, %c0_46] : memref<1x128xf32, #tpu.memory_space<vmem>>, vector<1x128xf32>
      %c0_47 = arith.constant 0 : index
      %c0_48 = arith.constant 0 : index
      %37 = vector.load %arg20[%c0_47, %c0_48] : memref<1x128xf32, #tpu.memory_space<vmem>>, vector<1x128xf32>
      %cst = arith.constant dense<0.000000e+00> : vector<2xf32>
      %38 = vector.multi_reduction <add>, %35, %cst [1] : vector<2x128xf32> to vector<2xf32>
      %39 = vector.shape_cast %38 : vector<2xf32> to vector<2x1xf32>
      %cst_49 = arith.constant 1.280000e+02 : f32
      %40 = vector.broadcast %cst_49 : f32 to vector<2x1xf32>
      %41 = arith.divf %39, %40 : vector<2x1xf32>
      %42 = vector.broadcast %41 : vector<2x1xf32> to vector<2x128xf32>
      %43 = arith.subf %35, %42 : vector<2x128xf32>
      %44 = arith.mulf %43, %43 : vector<2x128xf32>
      %cst_50 = arith.constant dense<0.000000e+00> : vector<2xf32>
      %45 = vector.multi_reduction <add>, %44, %cst_50 [1] : vector<2x128xf32> to vector<2xf32>
      %46 = vector.shape_cast %45 : vector<2xf32> to vector<2x1xf32>
      %cst_51 = arith.constant 1.280000e+02 : f32
      %47 = vector.broadcast %cst_51 : f32 to vector<2x1xf32>
      %48 = arith.divf %46, %47 : vector<2x1xf32>
      %49 = vector.broadcast %41 : vector<2x1xf32> to vector<2x128xf32>
      %50 = arith.subf %35, %49 : vector<2x128xf32>
      %cst_52 = arith.constant 9.99999974E-6 : f32
      %51 = vector.broadcast %cst_52 : f32 to vector<2x1xf32>
      %52 = arith.addf %48, %51 : vector<2x1xf32>
      %53 = math.rsqrt %52 : vector<2x1xf32>
      %54 = vector.broadcast %53 : vector<2x1xf32> to vector<2x128xf32>
      %55 = arith.mulf %50, %54 : vector<2x128xf32>
      %56 = vector.broadcast %36 : vector<1x128xf32> to vector<2x128xf32>
      %57 = arith.mulf %55, %56 : vector<2x128xf32>
      %58 = vector.broadcast %37 : vector<1x128xf32> to vector<2x128xf32>
      %59 = arith.addf %57, %58 : vector<2x128xf32>
      %60 = arith.truncf %59 : vector<2x128xf32> to vector<2x128xbf16>
      %c0_53 = arith.constant 0 : index
      %c0_54 = arith.constant 0 : index
      %61 = vector.load %arg21[%c0_53, %c0_54] : memref<128x10xbf16, #tpu.memory_space<vmem>>, vector<128x10xbf16>
      %cst_55 = arith.constant dense<0.000000e+00> : vector<2x10xf32>
      %62 = tpu.matmul %60, %61, %cst_55 {dimension_numbers = #tpu.dot_dimension_numbers<[1], [0], [0], [1], [0, 0, 1, 1], [], []>} : vector<2x128xbf16>, vector<128x10xbf16>, vector<2x10xf32> -> vector<2x10xf32>
      %c0_56 = arith.constant 0 : index
      %c0_57 = arith.constant 0 : index
      %63 = vector.load %arg22[%c0_56, %c0_57] : memref<1x10xf32, #tpu.memory_space<vmem>>, vector<1x10xf32>
      %64 = vector.broadcast %63 : vector<1x10xf32> to vector<2x10xf32>
      %65 = arith.addf %62, %64 : vector<2x10xf32>
      %c0_58 = arith.constant 0 : index
      %c0_59 = arith.constant 0 : index
      %c0_60 = arith.constant 0 : index
      %66 = vector.load %arg23[%c0_58, %c0_59, %c0_60] : memref<1x2x10xf32, #tpu.memory_space<vmem>>, vector<1x2x10xf32>
      %67 = vector.shape_cast %66 : vector<1x2x10xf32> to vector<2x10xf32>
      %68 = vector.shape_cast %65 : vector<2x10xf32> to vector<1x2x10xf32>
      tpu.vector_store %arg23[%c0_58, %c0_59, %c0_60], %68 {strides = array<i32>} : memref<1x2x10xf32, #tpu.memory_space<vmem>>, vector<1x2x10xf32>,
    } else {
    }
    return
  }
  func.func @transform_0(%arg0: i32, %arg1: i32) -> (i32, i32, i32) {
    %c0_i32 = arith.constant 0 : i32
    %c0_i32_0 = arith.constant 0 : i32
    %c0_i32_1 = arith.constant 0 : i32
    return %arg0, %c0_i32, %c0_i32_0 : i32, i32, i32
  }
  func.func @transform_1(%arg0: i32, %arg1: i32) -> (i32, i32) {
    %c0_i32 = arith.constant 0 : i32
    %c0_i32_0 = arith.constant 0 : i32
    %c0_i32_1 = arith.constant 0 : i32
    return %c0_i32, %c0_i32_0 : i32, i32
  }
  func.func @transform_2(%arg0: i32, %arg1: i32) -> (i32, i32) {
    %c0_i32 = arith.constant 0 : i32
    %c0_i32_0 = arith.constant 0 : i32
    %c0_i32_1 = arith.constant 0 : i32
    return %c0_i32, %c0_i32_0 : i32, i32
  }
  func.func @transform_3(%arg0: i32, %arg1: i32) -> (i32, i32) {
    %c0_i32 = arith.constant 0 : i32
    %c0_i32_0 = arith.constant 0 : i32
    %c0_i32_1 = arith.constant 0 : i32
    return %c0_i32, %c0_i32_0 : i32, i32
  }
  func.func @transform_4(%arg0: i32, %arg1: i32) -> (i32, i32) {
    %c0_i32 = arith.constant 0 : i32
    %c0_i32_0 = arith.constant 0 : i32
    %c0_i32_1 = arith.constant 0 : i32
    return %c0_i32, %c0_i32_0 : i32, i32
  }
  func.func @transform_5(%arg0: i32, %arg1: i32) -> (i32, i32, i32) {
    %c0_i32 = arith.constant 0 : i32
    %c0_i32_0 = arith.constant 0 : i32
    %c0_i32_1 = arith.constant 0 : i32
    return %arg1, %c0_i32, %c0_i32_0 : i32, i32, i32
  }
  func.func @transform_6(%arg0: i32, %arg1: i32) -> (i32, i32, i32) {
    %c0_i32 = arith.constant 0 : i32
    %c0_i32_0 = arith.constant 0 : i32
    %c0_i32_1 = arith.constant 0 : i32
    return %arg1, %c0_i32, %c0_i32_0 : i32, i32, i32
  }
  func.func @transform_7(%arg0: i32, %arg1: i32) -> (i32, i32, i32) {
    %c0_i32 = arith.constant 0 : i32
    %c0_i32_0 = arith.constant 0 : i32
    %c0_i32_1 = arith.constant 0 : i32
    return %arg1, %c0_i32, %c0_i32_0 : i32, i32, i32
  }
  func.func @transform_8(%arg0: i32, %arg1: i32) -> (i32, i32, i32) {
    %c0_i32 = arith.constant 0 : i32
    %c0_i32_0 = arith.constant 0 : i32
    %c0_i32_1 = arith.constant 0 : i32
    return %arg1, %c0_i32, %c0_i32_0 : i32, i32, i32
  }
  func.func @transform_9(%arg0: i32, %arg1: i32) -> (i32, i32, i32) {
    %c0_i32 = arith.constant 0 : i32
    %c0_i32_0 = arith.constant 0 : i32
    %c0_i32_1 = arith.constant 0 : i32
    return %arg1, %c0_i32, %c0_i32_0 : i32, i32, i32
  }
  func.func @transform_10(%arg0: i32, %arg1: i32) -> (i32, i32, i32) {
    %c0_i32 = arith.constant 0 : i32
    %c0_i32_0 = arith.constant 0 : i32
    %c0_i32_1 = arith.constant 0 : i32
    return %arg1, %c0_i32, %c0_i32_0 : i32, i32, i32
  }
  func.func @transform_11(%arg0: i32, %arg1: i32) -> (i32, i32, i32) {
    %c0_i32 = arith.constant 0 : i32
    %c0_i32_0 = arith.constant 0 : i32
    %c0_i32_1 = arith.constant 0 : i32
    return %arg1, %c0_i32, %c0_i32_0 : i32, i32, i32
  }
  func.func @transform_12(%arg0: i32, %arg1: i32) -> (i32, i32, i32) {
    %c0_i32 = arith.constant 0 : i32
    %c0_i32_0 = arith.constant 0 : i32
    %c0_i32_1 = arith.constant 0 : i32
    return %arg1, %c0_i32, %c0_i32_0 : i32, i32, i32
  }
  func.func @transform_13(%arg0: i32, %arg1: i32) -> (i32, i32, i32) {
    %c0_i32 = arith.constant 0 : i32
    %c0_i32_0 = arith.constant 0 : i32
    %c0_i32_1 = arith.constant 0 : i32
    return %arg1, %c0_i32, %c0_i32_0 : i32, i32, i32
  }
  func.func @transform_14(%arg0: i32, %arg1: i32) -> (i32, i32, i32) {
    %c0_i32 = arith.constant 0 : i32
    %c0_i32_0 = arith.constant 0 : i32
    %c0_i32_1 = arith.constant 0 : i32
    return %arg1, %c0_i32, %c0_i32_0 : i32, i32, i32
  }
  func.func @transform_15(%arg0: i32, %arg1: i32) -> (i32, i32, i32) {
    %c0_i32 = arith.constant 0 : i32
    %c0_i32_0 = arith.constant 0 : i32
    %c0_i32_1 = arith.constant 0 : i32
    return %arg1, %c0_i32, %c0_i32_0 : i32, i32, i32
  }
  func.func @transform_16(%arg0: i32, %arg1: i32) -> (i32, i32, i32) {
    %c0_i32 = arith.constant 0 : i32
    %c0_i32_0 = arith.constant 0 : i32
    %c0_i32_1 = arith.constant 0 : i32
    return %arg1, %c0_i32, %c0_i32_0 : i32, i32, i32
  }
  func.func @transform_17(%arg0: i32, %arg1: i32) -> (i32, i32) {
    %c0_i32 = arith.constant 0 : i32
    %c0_i32_0 = arith.constant 0 : i32
    %c0_i32_1 = arith.constant 0 : i32
    return %c0_i32, %c0_i32_0 : i32, i32
  }
  func.func @transform_18(%arg0: i32, %arg1: i32) -> (i32, i32) {
    %c0_i32 = arith.constant 0 : i32
    %c0_i32_0 = arith.constant 0 : i32
    %c0_i32_1 = arith.constant 0 : i32
    return %c0_i32, %c0_i32_0 : i32, i32
  }
  func.func @transform_19(%arg0: i32, %arg1: i32) -> (i32, i32) {
    %c0_i32 = arith.constant 0 : i32
    %c0_i32_0 = arith.constant 0 : i32
    %c0_i32_1 = arith.constant 0 : i32
    return %c0_i32, %c0_i32_0 : i32, i32
  }
  func.func @transform_20(%arg0: i32, %arg1: i32) -> (i32, i32) {
    %c0_i32 = arith.constant 0 : i32
    %c0_i32_0 = arith.constant 0 : i32
    %c0_i32_1 = arith.constant 0 : i32
    return %c0_i32, %c0_i32_0 : i32, i32
  }
  func.func @transform_21(%arg0: i32, %arg1: i32) -> (i32, i32, i32) {
    %c0_i32 = arith.constant 0 : i32
    %c0_i32_0 = arith.constant 0 : i32
    %c0_i32_1 = arith.constant 0 : i32
    return %arg0, %c0_i32, %c0_i32_0 : i32, i32, i32
  }
}

</mosaic_0001>

<bundles_post_ra>
// kernel: tpu_custom_call.1
= control target key start
LH: loop header
LB: loop body
LE: loop exit
PB: predicated region body
PF: predicated region fallthrough
CT: control target
= control target key end

     0   :  { %s6355_s0 = inlined_call_operand.vmem [shape: bf16[4,16,48], index: 0, kind: input, shape index: {}]   ;;  %s6356_s1 = inlined_call_operand.vmem [shape: bf16[48,128], index: 1, kind: input, shape index: {}]   ;;  %s6357_s2 = inlined_call_operand.hbm [shape: f32[1,128], index: 2, kind: input, shape index: {}]   ;;  %s6358_s3 = inlined_call_operand.vmem [shape: f32[16,128], index: 3, kind: input, shape index: {}]   ;;  %s6359_s4 = inlined_call_operand.hbm [shape: f32[1,128], index: 4, kind: input, shape index: {}]   ;;  %s6360_s5 = inlined_call_operand.hbm [shape: f32[2,1,128], index: 5, kind: input, shape index: {}]   ;;  %s6361_s6 = inlined_call_operand.hbm [shape: f32[2,1,128], index: 6, kind: input, shape index: {}]   ;;  %s6362_s7 = inlined_call_operand.hbm [shape: bf16[2,128,384], index: 7, kind: input, shape index: {}]   ;;  %s6363_s8 = inlined_call_operand.hbm [shape: f32[2,1,384], index: 8, kind: input, shape index: {}]   ;;  %s6364_s9 = inlined_call_operand.hbm [shape: bf16[2,128,128], index: 9, kind: input, shape index: {}]   ;;  %s6365_s10 = inlined_call_operand.vmem [shape: f32[2,1,128], index: 10, kind: input, shape index: {}]   ;;  %s6366_s11 = inlined_call_operand.vmem [shape: f32[2,1,128], index: 11, kind: input, shape index: {}]   ;;  %s6367_s12 = inlined_call_operand.hbm [shape: f32[2,1,128], index: 12, kind: input, shape index: {}]   ;;  %s6368_s13 = inlined_call_operand.hbm [shape: bf16[2,128,512], index: 13, kind: input, shape index: {}]   ;;  %s6369_s14 = inlined_call_operand.vmem [shape: f32[2,1,512], index: 14, kind: input, shape index: {}]   ;;  %s6370_s15 = inlined_call_operand.hbm [shape: bf16[2,512,128], index: 15, kind: input, shape index: {}]   ;;  %s6371_s16 = inlined_call_operand.vmem [shape: f32[2,1,128], index: 16, kind: input, shape index: {}]   ;;  %s6372_s17 = inlined_call_operand.vmem [shape: f32[1,128], index: 17, kind: input, shape index: {}]   ;;  %s6373_s18 = inlined_call_operand.vmem [shape: f32[1,128], index: 18, kind: input, shape index: {}]   ;;  %s6374_s19 = inlined_call_operand.vmem [shape: bf16[128,10], index: 19, kind: input, shape index: {}]   ;;  %s6375_s20 = inlined_call_operand.vmem [shape: f32[1,10], index: 20, kind: input, shape index: {}]   ;;  %s6376_s21 = inlined_call_operand.hbm [shape: f32[2,2,10], index: 21, kind: output, shape index: {}]  }
   0x1   :  { %6478 = sst [smem:[#allocation168_spill]] %s6355_s0 }
   0x2   :  { %6479 = sst [smem:[#allocation169_spill]] %s6356_s1 }
   0x3   :  { %6480 = sst [smem:[#allocation170_spill]] %s6357_s2 }
   0x4   :  { %6481 = sst [smem:[#allocation171_spill]] %s6358_s3 }
   0x5   :  { %6482 = sst [smem:[#allocation172_spill]] %s6359_s4 }
   0x6   :  { %6483 = sst [smem:[#allocation173_spill]] %s6360_s5 }
   0x7   :  { %6484 = sst [smem:[#allocation174_spill]] %s6361_s6 }
   0x8   :  { %6485 = sst [smem:[#allocation175_spill]] %s6362_s7 }
   0x9   :  { %6486 = sst [smem:[#allocation176_spill]] %s6363_s8 }
   0xa   :  { %6487 = sst [smem:[#allocation177_spill]] %s6364_s9 }
   0xb   :  { %6488 = sst [smem:[#allocation178_spill]] %s6365_s10 }
   0xc   :  { %6489 = sst [smem:[#allocation179_spill]] %s6366_s11 }
   0xd   :  { %6490 = sst [smem:[#allocation180_spill]] %s6367_s12 }
   0xe   :  { %6491 = sst [smem:[#allocation181_spill]] %s6368_s13 }
   0xf   :  { %6492 = sst [smem:[#allocation182_spill]] %s6369_s14 }
  0x10   :  { %6493 = sst [smem:[#allocation183_spill]] %s6371_s16 }
  0x11   :  { %6494 = sst [smem:[#allocation184_spill]] %s6372_s17 }
  0x12   :  { %6495 = sst [smem:[#allocation185_spill]] %s6373_s18 }
  0x13   :  { %6496 = sst [smem:[#allocation186_spill]] %s6374_s19 }
  0x14   :  { %6497 = sst [smem:[#allocation187_spill]] %s6375_s20 }
  0x15   :  { %6498 = sst [smem:[#allocation188_spill]] %s6376_s21 }
  0x16   :  { %26 = vsyncpa [#allocation4], 0 }
  0x17   :  { %27 = vsyncpa [#allocation7], 0 }
  0x18   :  { %28 = vsyncpa [#allocation5], 0 }
  0x19   :  { %30 = vsyncpa [#allocation5 + $0x1], 0  ;;  %s4916_s2 = smov 0   ;;  %s4918_s25 = smov 0  }
  0x1a   :  { %s4920_s26 = smov 0   ;;  %s4922_s27 = smov 0  }
  0x1b   :  { %s4924_s3 = smov 0   ;;  %s4926_s28 = smov 0  }
  0x1c   :  { %s4928_s29 = smov 0   ;;  %s4930_s0 = smov 0  }
  0x1d   :  { %s4932_s4 = smov 0   ;;  %s4934_s30 = smov 0  }
  0x1e   :  { %s4936_s5 = smov 0  }
  0x1f LB: > { %6499 = sst [smem:[#allocation21_spill]] %s4731_s2  ;;  %s4970_s22 = sadd.s32 4294967295, %s4771_s5   ;;  %s4771_s5 = sphi %s4936_s5, %s36_s5   ;;  %s4767_s30 = sphi %s4934_s30, %s6843_s30   ;;  %s4763_s4 = sphi %s4932_s4, %s6845_s4   ;;  %s4759_s0 = sphi %s4930_s0, %s6841_s0   ;;  %s4755_s29 = sphi %s4928_s29, %s6844_s29   ;;  %s4751_s28 = sphi %s4926_s28, %s6840_s28   ;;  %s4747_s3 = sphi %s4924_s3, %s6839_s3   ;;  %s4743_s27 = sphi %s4922_s27, %s6838_s27   ;;  %s4739_s26 = sphi %s4920_s26, %s6837_s26   ;;  %s4735_s25 = sphi %s4918_s25, %s6836_s25   ;;  %s4731_s2 = sphi %s4916_s2, %s6835_s2  }
  0x20   : > { %6500 = sst [smem:[#allocation22_spill]] %s4735_s25  ;;  %s3642_s23 = sadd.s32 4294967294, %s4771_s5  }
  0x21   : > { %6501 = sst [smem:[#allocation23_spill]] %s4739_s26  ;;  %s45_s1 = sadd.s32 1, %s4763_s4 }
  0x22   : > { %6502 = sst [smem:[#allocation24_spill]] %s4747_s3  ;;  %s48_s24 = sadd.s32 1, %s4767_s30 }
  0x23   : > { %6503 = sst [smem:[#allocation25_spill]] %s4751_s28  ;;  %p46_p0 = scmp.ge.s32.totalorder %s45_s1, 2 }
  0x24   : > { %6504 = sst [smem:[#allocation26_spill]] %s4755_s29  ;;  %s165_s21 = sadd.s32 1, %s4751_s28 }
  0x25   : > { %6505 = sst [smem:[#allocation27_spill]] %s4759_s0  ;;  %p172_p1 = scmp.ne.s32.totalorder %s4751_s28, %s4747_s3 }
  0x26   : > { %6506 = sst [smem:[#allocation28_spill]] %s4767_s30  ;;  %p173_p2 = scmp.eq.s32.totalorder %s4771_s5, 0 }
  0x27   : > { %6507 = sst [smem:[#allocation29_spill]] %s4771_s5  ;;  %s6847_s1 = smov (%p46_p0, %s45_s1), 0 }
  0x28   : > { %6508 = sst [smem:[#allocation30_spill]] %s6847_s1  ;;  %s6849_s24 = smov (!%p46_p0, %s48_s24), %s4767_s30 }
  0x29   : > { %s162_s20 = ssub.s32 %s4763_s4, %s6847_s1  ;;  %p4984_p3 = por %p173_p2, %p172_p1 }
  0x2a   : > { %p50_p4 = scmp.ge.s32.totalorder %s6849_s24, 2  ;;  %p163_p5 = scmp.eq.s32.totalorder %s162_s20, 0 }
  0x2b   : > { %p178_p6 = scmp.ne.s32.totalorder %s4747_s3, %s4743_s27  ;;  %p6385_p7 = scmp.eq.s32.totalorder %s4970_s22, 0 }
  0x2c   : > { %s6851_s24 = smov (%p50_p4, %s6849_s24), 0  ;;  %s561_s16 = sadd.s32 1, %s4739_s26 }
  0x2d   : > { %6510 = sst [smem:[#allocation31_spill]] %s6851_s24  ;;  %p4997_p8 = por %p6385_p7, %p178_p6 }
  0x2e   : > { %s4993_s17 = scalar_select %p163_p5, %s4751_s28, %s165_s21  }
  0x2f   : > { %s6512_s1 = scalar_select %p4997_p8, 1, 0 }
  0x30   : > { %6511 = sst [smem:[#allocation32_spill]] %s4993_s17  ;;  %s558_s19 = ssub.s32 %s4767_s30, %s6851_s24 }
  0x31   : > { %6513 = sst [smem:[#allocation33_spill]] %s6512_s1  ;;  %p559_p9 = scmp.eq.s32.totalorder %s558_s19, 0 }
  0x32   : > { %p571_p10 = scmp.ne.s32.totalorder %s4739_s26, %s4735_s25  ;;  %p572_p11 = scmp.eq.s32.totalorder %s4970_s22, 3 }
  0x33   : > { %s5008_s20 = scalar_select %p559_p9, %s4739_s26, %s561_s16  }
  0x34   : > { %p5010_p12 = por %p572_p11, %p571_p10  ;;  %p577_p13 = scmp.ne.s32.totalorder %s4735_s25, %s4731_s2 }
  0x35   : > { %6514 = sst [smem:[#allocation34_spill]] %s5008_s20  ;;  %p578_p0 = scmp.eq.s32.totalorder %s3642_s23, 3 }
  0x36   : > { %s6515_s21 = scalar_select %p5010_p12, 1, 0 }
  0x37   : > { %p3643_p1 = scmp.ge.s32.totalorder %s4771_s5, 1  ;;  %p585_p2 = scmp.lt.s32.totalorder %s4771_s5, 5 }
  0x38   : > { %6516 = sst [smem:[#allocation35_spill]] %s6515_s21  ;;  %p5018_p4 = por %p578_p0, %p577_p13 }
  0x39   : > { %p5022_p5 = pnand %p3643_p1, %p585_p2  ;;  %s4781_s16 = smov [#allocation3]  }
  0x3a   : > { %s6517_s19 = scalar_select %p5018_p4, 1, 0 }
  0x3b   : > { %s601_s24 = sshll.u32 %s4781_s16, 4  ;;  %p4115_p6 = pneg %p5022_p5  ;;  %s602_s24 = int_to_ptr.vmem [resolvable:$true] %s601_s24 }
  0x3c   : > { %6518 = sst [smem:[#allocation36_spill]] %s6517_s19  ;;  %p4153_p9 = scmp.lt.s32.totalorder %s4771_s5, 4 }
  0x3d   : > { %s648_s30 = sand.u32 1, %s4771_s5   ;;  %s5031_s17 = sand.u32 1, %s4751_s28  }
  0x3e   : > { %p5035_p10 = pnand %p4115_p6, %p6385_p7  ;;  %p5041_p11 = pnand %p4153_p9, %p4984_p3 }
  0x3f   : > { %s4370_s16 = scalar_lea.vmem %s602_s24, 16  ;;  %s4377_s28 = scalar_lea.vmem %s602_s24, 32 }
  0x40   : > { %p4361_p13 = pneg %p5035_p10  ;;  %p4371_p0 = scmp.ne.s32.totalorder %s602_s24, %s4370_s16 }
  0x41   : > { %p4378_p6 = scmp.lt.s32.totalorder %s602_s24, %s602_s24  ;;  %p4379_p7 = scmp.lt.s32.totalorder %s4377_s28, %s4370_s16 }
  0x42   : > { %p4373_p1 = pnand %p4371_p0, %p4361_p13 }
  0x43   : > { %p4380_p4 = por %p4379_p7, %p4378_p6 }
  0x44   : > { %p4374_p2 = pneg %p4373_p1 }
  0x46   : > { %p4381_p12 = pnand %p4380_p4, %p4374_p2 }
  0x48   : > { %4384 = shalt.err (!%p4381_p12)
}
  0x49   : > { %s6522_s19 = sld [smem:[#allocation170_spill]]  ;;  %s5056_s2 = sshll.u32 %s4763_s4, 4 }
  0x4a   : > { %s651_s5 = scalar_lea.vmem [#allocation8], %s5031_s17  ;;  %s6523_s28 = sld [smem:[#allocation173_spill]] }
  0x4b   : > { %s658_s21 = sshll.u32 %s651_s5, 4  ;;  %s5063_s10 = scalar_lea.sflag [#allocation4], %s648_s30  ;;  %s659_s21 = int_to_ptr.vmem [resolvable:$true] %s658_s21 }
  0x4c   : > { %p5067_p3 = pneg %p5041_p11  ;;  %s4398_s26 = scalar_lea.vmem %s659_s21, 16 }
  0x4d   : > { %p4399_p7 = scmp.ne.s32.totalorder %s659_s21, %s4398_s26 }
  0x4f   : > { %4118 = dma.hbm_to_vmem [thread:$0]  (!%p5035_p10), %s6522_s19, 16, %s602_s24, [#allocation4]  }
  0x50   : > { %s656_s16 = scalar_lea.hbm %s6523_s28, %s5056_s2  ;;  %p4401_p12 = pnand %p4399_p7, %p5067_p3 }
  0x51   : > { %s4782_s24 = smov [#allocation8]  }
  0x52   : > { %p4402_p4 = pneg %p4401_p12  ;;  %s4403_s5 = sshll.u32 %s4782_s24, 4  ;;  %s4404_s5 = int_to_ptr.vmem [resolvable:$false] %s4403_s5 }
  0x53   : > { %s4405_s19 = scalar_lea.vmem %s4404_s5, 32  ;;  %p4406_p9 = scmp.lt.s32.totalorder %s659_s21, %s4404_s5 }
  0x54   : > { %p4407_p0 = scmp.lt.s32.totalorder %s4405_s19, %s4398_s26 }
  0x56   : > { %p4408_p1 = por %p4407_p0, %p4406_p9 }
  0x58   : > { %p4409_p2 = pnand %p4408_p1, %p4402_p4 }
  0x5a   : > { %4412 = shalt.err (!%p4409_p2)
}
  0x5b   : > { %4125 = dma.hbm_to_vmem [thread:$0]  (!%p5041_p11), %s656_s16, 16, %s659_s21, %s5063_s10  }
  0x5c   : > { %s6525_s6 = sld [smem:[#allocation174_spill]]  ;;  %s668_s18 = scalar_lea.vmem [#allocation9], %s5031_s17 }
  0x5d   : > { %s675_s28 = sshll.u32 %s668_s18, 4  ;;  %s4083_s24 = smul.u32 192, %s5031_s17  ;;  %s676_s28 = int_to_ptr.vmem [resolvable:$true] %s675_s28 }
  0x5e   : > { %s4084_s26 = smul.u32 3072, %s4763_s4  ;;  %s4426_s5 = scalar_lea.vmem %s676_s28, 16 }
  0x5f   : > { %p4427_p6 = scmp.ne.s32.totalorder %s676_s28, %s4426_s5  ;;  %s4783_s19 = smov [#allocation9]  }
  0x60   : > { %s4431_s0 = sshll.u32 %s4783_s19, 4  ;;  %s4432_s0 = int_to_ptr.vmem [resolvable:$false] %s4431_s0 }
  0x61   : > { %p4429_p7 = pnand %p4427_p6, %p5067_p3  ;;  %s4433_s25 = scalar_lea.vmem %s4432_s0, 32 }
  0x62   : > { %s673_s30 = scalar_lea.hbm %s6525_s6, %s5056_s2  ;;  %p4434_p4 = scmp.lt.s32.totalorder %s676_s28, %s4432_s0 }
  0x63   : > { %p4430_p12 = pneg %p4429_p7  ;;  %p4435_p9 = scmp.lt.s32.totalorder %s4433_s25, %s4426_s5 }
  0x65   : > { %p4436_p0 = por %p4435_p9, %p4434_p4 }
  0x67   : > { %p4437_p1 = pnand %p4436_p0, %p4430_p12 }
  0x69   : > { %4440 = shalt.err (!%p4437_p1)
}
  0x6a   : > { %4128 = dma.hbm_to_vmem [thread:$0]  (!%p5041_p11), %s673_s30, 16, %s676_s28, %s5063_s10  }
  0x6b   : > { %s6526_s7 = sld [smem:[#allocation175_spill]]  ;;  %s686_s14 = scalar_lea.vmem [#allocation10], %s4083_s24 }
  0x6c   : > { %s693_s18 = sshll.u32 %s686_s14, 4  ;;  %s4784_s25 = smov [#allocation10]   ;;  %s694_s18 = int_to_ptr.vmem [resolvable:$true] %s693_s18 }
  0x6d   : > { %s4454_s19 = scalar_lea.vmem %s694_s18, 3072  ;;  %s4459_s0 = sshll.u32 %s4784_s25, 4  ;;  %s4460_s0 = int_to_ptr.vmem [resolvable:$false] %s4459_s0 }
  0x6e   : > { %p4455_p2 = scmp.ne.s32.totalorder %s694_s18, %s4454_s19  ;;  %s4461_s5 = scalar_lea.vmem %s4460_s0, 6144 }
  0x6f   : > { %p4462_p12 = scmp.lt.s32.totalorder %s694_s18, %s4460_s0  ;;  %p4463_p4 = scmp.lt.s32.totalorder %s4461_s5, %s4454_s19 }
  0x70   : > { %p4457_p6 = pnand %p4455_p2, %p5067_p3 }
  0x71   : > { %s692_s11 = scalar_lea.hbm %s6526_s7, %s4084_s26  ;;  %p4464_p9 = por %p4463_p4, %p4462_p12 }
  0x72   : > { %p4458_p7 = pneg %p4457_p6 }
  0x74   : > { %p4465_p0 = pnand %p4464_p9, %p4458_p7 }
  0x76   : > { %4468 = shalt.err (!%p4465_p0)
}
  0x77   : > { %s4785_s30 = smov 192   ;;  %s4786_s28 = smov 12  }
  0x78   : > { %4131 = dma.hbm_to_vmem [thread:$0]  (!%p5041_p11), %s692_s11, 3072, %s694_s18, %s5063_s10, %s4785_s30, %s4785_s30, %s4786_s28  }
  0x79   : > { %s4085_s24 = smul.u32 3, %s5031_s17  ;;  %s3651_s26 = sshll.u32 %s5031_s17, 6 }
  0x7a   : > { %s4086_s21 = smul.u32 48, %s4763_s4  ;;  %s3815_s16 = sshll.u32 %s4763_s4, 10 }
  0x7b   : > { %s6527_s8 = sld [smem:[#allocation176_spill]]  ;;  %s707_s0 = scalar_lea.vmem [#allocation11], %s4085_s24 }
  0x7c   : > { %s715_s5 = sshll.u32 %s707_s0, 4  ;;  %s6528_s9 = sld [smem:[#allocation177_spill]]  ;;  %s716_s5 = int_to_ptr.vmem [resolvable:$true] %s715_s5 }
  0x7d   : > { %s4482_s3 = scalar_lea.vmem %s716_s5, 48  ;;  %s4787_s11 = smov [#allocation11]  }
  0x7e   : > { %p4483_p1 = scmp.ne.s32.totalorder %s716_s5, %s4482_s3  ;;  %s4487_s18 = sshll.u32 %s4787_s11, 4  ;;  %s4488_s18 = int_to_ptr.vmem [resolvable:$false] %s4487_s18 }
  0x7f   : > { %s4489_s30 = scalar_lea.vmem %s4488_s18, 96  ;;  %p4490_p7 = scmp.lt.s32.totalorder %s716_s5, %s4488_s18 }
  0x80   : > { %p4485_p2 = pnand %p4483_p1, %p5067_p3  ;;  %p4491_p12 = scmp.lt.s32.totalorder %s4489_s30, %s4482_s3 }
  0x81   : > { %s713_s25 = scalar_lea.hbm %s6527_s8, %s4086_s21 }
  0x82   : > { %s5106_s1 = scalar_lea.hbm %s6528_s9, %s3815_s16  ;;  %p4486_p6 = pneg %p4485_p2 }
  0x83   : > { %p4492_p4 = por %p4491_p12, %p4490_p7 }
  0x85   : > { %p4493_p9 = pnand %p4492_p4, %p4486_p6 }
  0x87   : > { %4496 = shalt.err (!%p4493_p9)
}
  0x88   : > { %4134 = dma.hbm_to_vmem [thread:$0]  (!%p5041_p11), %s713_s25, 48, %s716_s5, %s5063_s10  }
  0x89   : > { %s726_s6 = scalar_lea.vmem [#allocation12], %s3651_s26  ;;  %s4788_s24 = smov [#allocation12]  }
  0x8a   : > { %s733_s7 = sshll.u32 %s726_s6, 4  ;;  %s4515_s21 = sshll.u32 %s4788_s24, 4  ;;  %s734_s7 = int_to_ptr.vmem [resolvable:$true] %s733_s7  ;;  %s4516_s21 = int_to_ptr.vmem [resolvable:$false] %s4515_s21 }
  0x8b   : > { %s4510_s28 = scalar_lea.vmem %s734_s7, 1024  ;;  %s4517_s3 = scalar_lea.vmem %s4516_s21, 2048 }
  0x8c   : > { %p4511_p0 = scmp.ne.s32.totalorder %s734_s7, %s4510_s28  ;;  %p4518_p7 = scmp.lt.s32.totalorder %s734_s7, %s4516_s21 }
  0x8d   : > { %p4519_p6 = scmp.lt.s32.totalorder %s4517_s3, %s4510_s28 }
  0x8e   : > { %p4513_p1 = pnand %p4511_p0, %p5067_p3 }
  0x8f   : > { %p4520_p12 = por %p4519_p6, %p4518_p7 }
  0x90   : > { %p4514_p2 = pneg %p4513_p1 }
  0x92   : > { %p4521_p4 = pnand %p4520_p12, %p4514_p2 }
  0x94   : > { %4524 = shalt.err (!%p4521_p4)
}
  0x95   : > { %s4789_s16 = smov 64   ;;  %s4790_s26 = smov 4  }
  0x96   : > { %4137 = dma.hbm_to_vmem [thread:$0]  (!%p5041_p11), %s5106_s1, 1024, %s734_s7, %s5063_s10, %s4789_s16, %s4789_s16, %s4790_s26  }
  0x97   : > { %s6529_s12 = sld [smem:[#allocation180_spill]]  ;;  %s758_s0 = scalar_lea.vmem [#allocation13], %s5031_s17 }
  0x98   : > { %s765_s5 = sshll.u32 %s758_s0, 4  ;;  %s3655_s11 = sshll.u32 %s5031_s17, 8  ;;  %s766_s5 = int_to_ptr.vmem [resolvable:$true] %s765_s5 }
  0x99   : > { %s4538_s18 = scalar_lea.vmem %s766_s5, 16  ;;  %s4791_s30 = smov [#allocation13]  }
  0x9a   : > { %p4539_p9 = scmp.ne.s32.totalorder %s766_s5, %s4538_s18  ;;  %s4543_s6 = sshll.u32 %s4791_s30, 4  ;;  %s4544_s6 = int_to_ptr.vmem [resolvable:$false] %s4543_s6 }
  0x9b   : > { %s4545_s28 = scalar_lea.vmem %s4544_s6, 32  ;;  %p4546_p2 = scmp.lt.s32.totalorder %s766_s5, %s4544_s6 }
  0x9c   : > { %p4541_p0 = pnand %p4539_p9, %p5067_p3  ;;  %p4547_p7 = scmp.lt.s32.totalorder %s4545_s28, %s4538_s18 }
  0x9d   : > { %s763_s25 = scalar_lea.hbm %s6529_s12, %s5056_s2 }
  0x9e   : > { %p4542_p1 = pneg %p4541_p0  ;;  %p4548_p6 = por %p4547_p7, %p4546_p2 }
  0xa0   : > { %p4549_p12 = pnand %p4548_p6, %p4542_p1 }
  0xa2   : > { %4552 = shalt.err (!%p4549_p12)
}
  0xa3   : > { %4140 = dma.hbm_to_vmem [thread:$0]  (!%p5041_p11), %s763_s25, 16, %s766_s5, %s5063_s10  }
  0xa4   : > { %s3816_s2 = sshll.u32 %s4763_s4, 12  ;;  %s776_s1 = scalar_lea.vmem [#allocation14], %s3655_s11 }
  0xa5   : > { %s783_s7 = sshll.u32 %s776_s1, 4  ;;  %s6530_s13 = sld [smem:[#allocation181_spill]]  ;;  %s784_s7 = int_to_ptr.vmem [resolvable:$true] %s783_s7 }
  0xa6   : > { %s4566_s14 = scalar_lea.vmem %s784_s7, 4096  ;;  %s4792_s19 = smov [#allocation14]  }
  0xa7   : > { %p4567_p4 = scmp.ne.s32.totalorder %s784_s7, %s4566_s14  ;;  %s4571_s0 = sshll.u32 %s4792_s19, 4  ;;  %s4572_s0 = int_to_ptr.vmem [resolvable:$false] %s4571_s0 }
  0xa8   : > { %s4573_s18 = scalar_lea.vmem %s4572_s0, 8192  ;;  %p4574_p1 = scmp.lt.s32.totalorder %s784_s7, %s4572_s0 }
  0xa9   : > { %p4569_p9 = pnand %p4567_p4, %p5067_p3  ;;  %p4575_p2 = scmp.lt.s32.totalorder %s4573_s18, %s4566_s14 }
  0xab   : > { %s782_s3 = scalar_lea.hbm %s6530_s13, %s3816_s2  ;;  %p4570_p0 = pneg %p4569_p9 }
  0xac   : > { %p4576_p7 = por %p4575_p2, %p4574_p1 }
  0xae   : > { %p4577_p6 = pnand %p4576_p7, %p4570_p0 }
  0xb0   : > { %4580 = shalt.err (!%p4577_p6)
}
  0xb1   : > { %s4793_s25 = smov 256   ;;  %s4794_s5 = smov 16  }
  0xb2   : > { %4143 = dma.hbm_to_vmem [thread:$0]  (!%p5041_p11), %s782_s3, 4096, %s784_s7, %s5063_s10, %s4793_s25, %s4793_s25, %s4794_s5  }
  0xb3   : > { %s4795_s30 = smov [#allocation6]   ;;  %s5147_s24 = scalar_lea.hbm %s6370_s15, %s3816_s2 }
  0xb4   : > { %s615_s6 = sshll.u32 %s4795_s30, 4  ;;  %s804_s21 = scalar_lea.vmem [#allocation15], %s3655_s11  ;;  %s616_s6 = int_to_ptr.vmem [resolvable:$true] %s615_s6 }
  0xb5   : > { %s811_s14 = sshll.u32 %s804_s21, 4  ;;  %s4592_s19 = scalar_lea.vmem %s616_s6, 16  ;;  %s812_s14 = int_to_ptr.vmem [resolvable:$true] %s811_s14 }
  0xb6   : > { %p4593_p12 = scmp.ne.s32.totalorder %s616_s6, %s4592_s19  ;;  %s4599_s0 = scalar_lea.vmem %s616_s6, 32 }
  0xb7   : > { %p4600_p0 = scmp.lt.s32.totalorder %s616_s6, %s616_s6  ;;  %p4601_p1 = scmp.lt.s32.totalorder %s4599_s0, %s4592_s19 }
  0xb8   : > { %p4595_p4 = pnand %p4593_p12, %p4361_p13 }
  0xb9   : > { %p4602_p2 = por %p4601_p1, %p4600_p0 }
  0xba   : > { %p4596_p9 = pneg %p4595_p4 }
  0xbc   : > { %p4603_p7 = pnand %p4602_p2, %p4596_p9 }
  0xbe   : > { %4606 = shalt.err (!%p4603_p7)
}
  0xbf   : > { %s6531_s3 = sld [smem:[#allocation172_spill]]  ;;  %s4620_s17 = scalar_lea.vmem %s812_s14, 4096 }
  0xc0   : > { %p4621_p6 = scmp.ne.s32.totalorder %s812_s14, %s4620_s17  ;;  %s4796_s11 = smov [#allocation15]  }
  0xc1   : > { %s4625_s18 = sshll.u32 %s4796_s11, 4  ;;  %s4626_s18 = int_to_ptr.vmem [resolvable:$false] %s4625_s18 }
  0xc2   : > { %p4623_p8 = pnand %p4621_p6, %p5067_p3  ;;  %s4627_s25 = scalar_lea.vmem %s4626_s18, 8192 }
  0xc3   : > { %p4628_p12 = scmp.lt.s32.totalorder %s812_s14, %s4626_s18  ;;  %p4629_p4 = scmp.lt.s32.totalorder %s4627_s25, %s4620_s17 }
  0xc4   : > { %p4624_p13 = pneg %p4623_p8 }
  0xc5   : > { %4121 = dma.hbm_to_vmem [thread:$0]  (!%p5035_p10), %s6531_s3, 16, %s616_s6, [#allocation7]  }
  0xc6   : > { %p4630_p9 = por %p4629_p4, %p4628_p12 }
  0xc8   : > { %p4631_p0 = pnand %p4630_p9, %p4624_p13 }
  0xca   : > { %4634 = shalt.err (!%p4631_p0)
}
  0xcb   : > { %4146 = dma.hbm_to_vmem [thread:$0]  (!%p5041_p11), %s5147_s24, 4096, %s812_s14, %s5063_s10, %s4789_s16, %s4789_s16, %s4790_s26  }
  0xcc   : > { %829 = sbr.rel (%p5022_p5) target bundleno = 3451 (0xd7b), region = 104 }
  0xd1   : > { %p6532_p8 = scmp.eq.s32.totalorder %s4970_s22, 0 }
  0xd3   : > { %4714 = dma.done.wait (%p6532_p8), [#allocation4], 16   ;;  %p6533_p10 = pmov %p6532_p8 }
  0xd4   : > { %p6534_p3 = pmov %p6532_p8 }
  0xd5   : > { %4716 = vsyncadd (%p6533_p10), [#allocation4], 4294967280 }
  0xd6   : > { %4718 = dma.done.wait (%p6534_p3), [#allocation7], 16   ;;  %p6535_p1 = pmov %p6534_p3 }
  0xd7   : > { %s6536_s29 = sld [smem:[#allocation24_spill]]  ;;  %s839_s23 = sand.u32 1, %s4970_s22  }
  0xd8   : > { %4720 = vsyncadd (%p6535_p1), [#allocation7], 4294967280  ;;  %s6537_s20 = sld [smem:[#allocation33_spill]]  ;;  %s840_s27 = scalar_lea.sflag [#allocation4], %s839_s23 }
  0xdd   : > { %s5180_s10 = sand.u32 1, %s6536_s29  }
  0xde   : > { %p6538_p5 = scmp.ne.s32.totalorder %s6537_s20, 0 }
  0xe0   : > { %4722 = dma.done.wait (%p6538_p5), %s840_s27, 12384  }
  0xe1   : > { %4724 = vsyncadd (%p6538_p5), %s840_s27, 4294954912  ;;  %s6539_s26 = sld [smem:[#allocation22_spill]]  ;;  %s4087_s22 = smul.u32 192, %s5180_s10 }
  0xe2   : > { %s6540_s5 = sld [smem:[#allocation27_spill]]  ;;  %s4088_s6 = smul.u32 3, %s5180_s10 }
  0xe3   : > { %s6541_s30 = sld [smem:[#allocation26_spill]]  ;;  %s3664_s28 = sshll.u32 %s5180_s10, 6 }
  0xe4   : > { %s3665_s1 = sshll.u32 %s5180_s10, 8  ;;  %s6542_s3 = sld [smem:[#allocation168_spill]] }
  0xe5   : > { %s6543_s25 = sld [smem:[#allocation178_spill]]  ;;  %s5225_s7 = scalar_lea.vmem [#allocation10], %s4087_s22 }
  0xe6   : > { %s6544_s27 = sld [smem:[#allocation179_spill]]  ;;  %s5229_s11 = scalar_lea.vmem [#allocation12], %s3664_s28 }
  0xe7   : > { %s6401_s24 = sand.u32 1, %s6539_s26   ;;  %s6545_s8 = sld [smem:[#allocation182_spill]] }
  0xe8   : > { %s5194_s21 = sshll.u32 %s6401_s24, 1  ;;  %s3668_s14 = sshll.u32 %s6540_s5, 1 }
  0xe9   : > { %p1014_p11 = scmp.lt.s32.totalorder %s3668_s14, 3  ;;  %p1020_p2 = scmp.lt.s32.totalorder %s6541_s30, 1 }
  0xea   : > { %s6546_s13 = sld [smem:[#allocation183_spill]]  ;;  %s885_s18 = scalar_lea.vmem [#allocation13], %s5180_s10 }
  0xeb   : > { %s6853_s14 = smov (!%p1014_p11, %s3668_s14), 3  ;;  %s5234_s20 = scalar_lea.vmem [#allocation15], %s3665_s1 }
  0xec   : > { %s5199_s19 = scalar_select %p1020_p2, %s6541_s30, 1 }
  0xed   : > { %s3818_s0 = sshll.u32 %s6853_s14, 3  ;;  %s1012_s23 = scalar_lea.vmem [#allocation16], %s5194_s21 }
  0xee   : > { %s5204_s17 = scalar_lea.vmem %s6542_s3, %s3818_s0  ;;  %s1022_s29 = scalar_lea.vmem %s6543_s25, %s5199_s19 }
  0xef   : > { %s1025_s26 = scalar_lea.vmem %s6544_s27, %s5199_s19  ;;  %s3671_s5 = sshll.u32 %s5199_s19, 2 }
  0xf0   : > { %s5218_s9 = scalar_lea.vmem %s6545_s8, %s3671_s5  ;;  %s1032_s2 = scalar_lea.vmem %s6546_s13, %s5199_s19 }
  0xf1   : > { %s850_s0 = scalar_lea.vmem [#allocation9], %s5180_s10  ;;  %s5227_s3 = scalar_lea.vmem [#allocation11], %s4088_s6 }
  0xf2   : > { %s5232_s25 = scalar_lea.vmem [#allocation14], %s3665_s1  ;;  %p3672_p7 = scmp.ne.s32.totalorder %s6541_s30, 0 }
  0xf3   : > { %s6547_s12 = sld [smem:[#allocation169_spill]] (!%p3672_p7)  ;;  %s5262_s28 = smov (!%p3672_p7), 0  }
  0xf4   : > { %1041 = sbr.rel (%p3672_p7) target bundleno = 471 (0x1d7), region = 148  ;;  %s6548_s13 = sld [smem:[#allocation171_spill]] (!%p3672_p7) }
  0xf9   : > { %v1042_v0 = vld [vmem:[%s6547_s12] sm:$0xf]  ;;  %v1043_v1 = vld [vmem:[%s6547_s12 + $0x4] sm:$0xf]  ;;  %v1044_v2 = vld [vmem:[%s6547_s12 + $0x8] sm:$0xf] }
  0xfa   : > { %v1045_v3 = vld [vmem:[%s6547_s12 + $0xc] sm:$0xf]  ;;  %v1046_v4 = vld [vmem:[%s6547_s12 + $0x10] sm:$0xf]  ;;  %v1047_v5 = vld [vmem:[%s6547_s12 + $0x14] sm:$0xf] }
  0xfb   : > { %v3675_v6 = vld [vmem:[#allocation3] ss:$0 sm:$0xff]  ;;  %v1049_v7 = vld [vmem:[%s6548_s13] sm:$0xff]  ;;  %v1050_v8 = vld [vmem:[%s6548_s13 + $0x8] sm:$0xff] }
  0xfc   : > { %v1051_v9 = vld [vmem:[#allocation6] sm:$0x1] }
  0xfd LB: >> { %v3679_v10 = vcombine.low %v1046_v4, %v1047_v5  ;;  %v4797_v11 = vmov 0.0   ;;  %v3678_v12 = vcombine.low %v1044_v2, %v1045_v3  ;;  %vm4798_vm0 = vmmov 0   ;;  %s3819_s24 = sshll.u32 %s4775_s28, 3  ;;  %s1149_s1 = smul.u32 24, %s4775_s28  ;;  %s4775_s28 = sphi %s5262_s28, %s1057_s28  }
  0xfe   : >> { %3941 = vmatprep.subr.bf16.mxu0 %v4797_v11  ;;  %3947 = vmatprep.mubr.msk.bf16.mxu0 %vm4798_vm0, %v4797_v11  ;;  %s1060_s27 = scalar_lea.vmem %s5204_s17, %s3819_s24  ;;  %v3677_v13 = vcombine.low %v1042_v0, %v1043_v1  ;;  %vm1092_vm1 = vcmask 392192   ;;  %vm1141_vm2 = vcmask 1040384   ;;  %s1057_s28 = sadd.s32 1, %s4775_s28  }
  0xff   : >> { %3942 = vmatpush3.bf16.msra.mxu0 %v3679_v10  ;;  %v4277_v14 = vld [vmem:[%s1060_s27] sm:$0xff]   ;;  %s1150_s5 = scalar_lea.vmem [#allocation2], %s1149_s1  ;;  %p1054_p6 = scmp.ge.s32.totalorder %s1057_s28, 2  }
 0x100   : >> { %3943 = vmatprep.subr.bf16.mxu0 %v4797_v11 }
 0x103   : >> { %3944 = vmatpush3.bf16.msra.mxu0 %v3678_v12 }
 0x104   : >> { %3945 = vmatprep.subr.bf16.mxu0 %v4797_v11 }
 0x107   : >> { %3946 = vmatpush3.bf16.msra.mxu0 %v3677_v13 }
 0x10a   : >> { %3948 = vmatmul.mubr.msk.bf16.vlgmr.msra.gmra.mxu0 %vm1092_vm1, %v4277_v14 }
 0x1ca   : >> { %v1130_v15 = vpop.f32.mrf.mxu0 }
 0x1cb   : >> { %v1131_v16 = vadd.f32 %v3675_v6, %v1130_v15 }
 0x1cc   : >> { %v3949_v17 = vpop.f32.mrf.mxu0 }
 0x1cd   : >> { %v1137_v18 = vadd.f32 %v1131_v16, %v1049_v7 }
 0x1ce   : >> { %v1133_v19 = vpop.f32.mrf.mxu0 }
 0x1cf   : >> { %v1142_v20 = vrot.slane %v1137_v18, 7  ;;  %v1134_v21 = vadd.f32 %v3675_v6, %v1133_v19 }
 0x1d0   : >> { %v3950_v22 = vpop.f32.mrf.mxu0 }
 0x1d1   : >> { %v1148_v23 = vsel %vm1141_vm2, %v1051_v9, %v1142_v20  ;;  %v1138_v24 = vadd.f32 %v1134_v21, %v1050_v8 }
 0x1d2   : >> { %1151 = vst [vmem:[%s1150_s5] sm:$0xff] %v1148_v23  ;;  %1056 = sbr.rel (!%p1054_p6) target bundleno = 253 (0xfd), region = 274 }
 0x1d3   : >> { %v1143_v25 = vrot.slane %v1138_v24, 7 }
 0x1d5   : >> { %v1144_v26 = vsel %vm1141_vm2, %v1142_v20, %v1143_v25  ;;  %1153 = vst [vmem:[%s1150_s5 + $0x10] sm:$0x1] %v1143_v25 }
 0x1d6   : >> { %1152 = vst [vmem:[%s1150_s5 + $0x8] sm:$0xff] %v1144_v26 }
 0x1d7 PF: > { %s6549_s30 = scalar_lea.vmem [#allocation8], %s5180_s10  ;;  %v5279_v28 = vld [vmem:[%s850_s0] ss:$0 sm:$0xff]  ;;  %v5282_v29 = vld [vmem:[%s5225_s7] sm:$0xff]  ;;  %v5288_v31 = vld [vmem:[%s5225_s7 + $0xc] sm:$0xff] }
 0x1d8   : > { %v5275_v27 = vld [vmem:[%s6549_s30] ss:$0 sm:$0xff]  ;;  %6551 = vst [vmem:[#allocation38_spill] sm:$0xff] %v5279_v28  ;;  %6552 = vst [vmem:[#allocation39_spill] sm:$0xff] %v5282_v29  ;;  %v5291_v32 = vld [vmem:[%s5225_s7 + $0x14] sm:$0xf] }
 0x1d9   : > { %6550 = vst [vmem:[#allocation37_spill] sm:$0xff] %v5275_v27  ;;  %v5285_v30 = vld [vmem:[%s5225_s7 + $0x8] sm:$0xf]  ;;  %6554 = vst [vmem:[#allocation41_spill] sm:$0xff] %v5288_v31  ;;  %v5294_v33 = vld [vmem:[%s5225_s7 + $0x18] sm:$0xff] }
 0x1da   : > { %6553 = vst [vmem:[#allocation40_spill] sm:$0xff] %v5285_v30  ;;  %6555 = vst [vmem:[#allocation42_spill] sm:$0xff] %v5291_v32  ;;  %v5297_v34 = vld [vmem:[%s5225_s7 + $0x20] sm:$0xf]  ;;  %v5300_v35 = vld [vmem:[%s5225_s7 + $0x24] sm:$0xff] }
 0x1db   : > { %6556 = vst [vmem:[#allocation43_spill] sm:$0xff] %v5294_v33  ;;  %6557 = vst [vmem:[#allocation44_spill] sm:$0xff] %v5297_v34  ;;  %v5303_v36 = vld [vmem:[%s5225_s7 + $0x2c] sm:$0xf]  ;;  %v5306_v37 = vld [vmem:[%s5225_s7 + $0x30] sm:$0xff] }
 0x1dc   : > { %6558 = vst [vmem:[#allocation45_spill] sm:$0xff] %v5300_v35  ;;  %6559 = vst [vmem:[#allocation46_spill] sm:$0xff] %v5303_v36  ;;  %v5309_v38 = vld [vmem:[%s5225_s7 + $0x38] sm:$0xf]  ;;  %v5312_v39 = vld [vmem:[%s5225_s7 + $0x3c] sm:$0xff] }
 0x1dd   : > { %6560 = vst [vmem:[#allocation47_spill] sm:$0xff] %v5306_v37  ;;  %6561 = vst [vmem:[#allocation48_spill] sm:$0xff] %v5309_v38  ;;  %v5315_v40 = vld [vmem:[%s5225_s7 + $0x44] sm:$0xf]  ;;  %v5318_v41 = vld [vmem:[%s5225_s7 + $0x48] sm:$0xff] }
 0x1de   : > { %6562 = vst [vmem:[#allocation49_spill] sm:$0xff] %v5312_v39  ;;  %v5321_v42 = vld [vmem:[%s5225_s7 + $0x50] sm:$0xf]  ;;  %v5324_v43 = vld [vmem:[%s5225_s7 + $0x54] sm:$0xff]  ;;  %v5327_v44 = vld [vmem:[%s5225_s7 + $0x5c] sm:$0xf] }
 0x1df   : > { %v5330_v45 = vld [vmem:[%s5225_s7 + $0x60] sm:$0xff]  ;;  %v5333_v46 = vld [vmem:[%s5225_s7 + $0x68] sm:$0xf]  ;;  %v5336_v47 = vld [vmem:[%s5225_s7 + $0x6c] sm:$0xff] }
 0x1e0   : > { %v5339_v48 = vld [vmem:[%s5225_s7 + $0x74] sm:$0xf]  ;;  %v5342_v49 = vld [vmem:[%s5225_s7 + $0x78] sm:$0xff]  ;;  %v5345_v50 = vld [vmem:[%s5225_s7 + $0x80] sm:$0xf] }
 0x1e1   : > { %v5348_v51 = vld [vmem:[%s5225_s7 + $0x84] sm:$0xff]  ;;  %v5351_v52 = vld [vmem:[%s5225_s7 + $0x8c] sm:$0xf]  ;;  %v5354_v53 = vld [vmem:[%s5225_s7 + $0x90] sm:$0xff] }
 0x1e2   : > { %v5357_v54 = vld [vmem:[%s5225_s7 + $0x98] sm:$0xf]  ;;  %v5360_v55 = vld [vmem:[%s5225_s7 + $0x9c] sm:$0xff]  ;;  %v5363_v56 = vld [vmem:[%s5225_s7 + $0xa4] sm:$0xf] }
 0x1e3   : > { %v5366_v57 = vld [vmem:[%s5225_s7 + $0xa8] sm:$0xff]  ;;  %v5369_v58 = vld [vmem:[%s5225_s7 + $0xb0] sm:$0xf]  ;;  %v5372_v59 = vld [vmem:[%s5225_s7 + $0xb4] sm:$0xff] }
 0x1e4   : > { %6563 = vst [vmem:[#allocation50_spill] sm:$0xff] %v5366_v57  ;;  %6564 = vst [vmem:[#allocation51_spill] sm:$0xff] %v5369_v58  ;;  %v5375_v60 = vld [vmem:[%s5225_s7 + $0xbc] sm:$0xf]  ;;  %v5378_v61 = vld [vmem:[%s5227_s3] sm:$0x7] }
 0x1e5   : > { %v5381_v62 = vld [vmem:[%s5229_s11] sm:$0xf]  ;;  %v5384_v63 = vld [vmem:[%s5229_s11 + $0x4] sm:$0xf]  ;;  %v5387_v0 = vld [vmem:[%s5229_s11 + $0x8] sm:$0xf] }
 0x1e6   : > { %6565 = vst [vmem:[#allocation52_spill] sm:$0xff] %v5381_v62  ;;  %6566 = vst [vmem:[#allocation53_spill] sm:$0xff] %v5387_v0  ;;  %v5390_v1 = vld [vmem:[%s5229_s11 + $0xc] sm:$0xf]  ;;  %v5393_v2 = vld [vmem:[%s5229_s11 + $0x10] sm:$0xf] }
 0x1e7   : > { %6567 = vst [vmem:[#allocation54_spill] sm:$0xff] %v5390_v1  ;;  %6568 = vst [vmem:[#allocation55_spill] sm:$0xff] %v5393_v2  ;;  %v5396_v3 = vld [vmem:[%s5229_s11 + $0x14] sm:$0xf]  ;;  %v5399_v4 = vld [vmem:[%s5229_s11 + $0x18] sm:$0xf] }
 0x1e8   : > { %6569 = vst [vmem:[#allocation56_spill] sm:$0xff] %v5396_v3  ;;  %6570 = vst [vmem:[#allocation57_spill] sm:$0xff] %v5399_v4  ;;  %v5402_v5 = vld [vmem:[%s5229_s11 + $0x1c] sm:$0xf]  ;;  %v5405_v6 = vld [vmem:[%s5229_s11 + $0x20] sm:$0xf] }
 0x1e9   : > { %6571 = vst [vmem:[#allocation58_spill] sm:$0xff] %v5402_v5  ;;  %6572 = vst [vmem:[#allocation59_spill] sm:$0xff] %v5405_v6  ;;  %v5408_v7 = vld [vmem:[%s5229_s11 + $0x24] sm:$0xf]  ;;  %v5411_v8 = vld [vmem:[%s5229_s11 + $0x28] sm:$0xf] }
 0x1ea   : > { %6573 = vst [vmem:[#allocation60_spill] sm:$0xff] %v5408_v7  ;;  %6574 = vst [vmem:[#allocation61_spill] sm:$0xff] %v5411_v8  ;;  %v5414_v9 = vld [vmem:[%s5229_s11 + $0x2c] sm:$0xf]  ;;  %v5417_v10 = vld [vmem:[%s5229_s11 + $0x30] sm:$0xf] }
 0x1eb   : > { %6575 = vst [vmem:[#allocation62_spill] sm:$0xff] %v5414_v9  ;;  %6576 = vst [vmem:[#allocation63_spill] sm:$0xff] %v5417_v10  ;;  %v5420_v11 = vld [vmem:[%s5229_s11 + $0x34] sm:$0xf]  ;;  %v5423_v12 = vld [vmem:[%s5229_s11 + $0x38] sm:$0xf] }
 0x1ec   : > { %6577 = vst [vmem:[#allocation64_spill] sm:$0xff] %v5420_v11  ;;  %6578 = vst [vmem:[#allocation65_spill] sm:$0xff] %v5423_v12  ;;  %v5426_v13 = vld [vmem:[%s5229_s11 + $0x3c] sm:$0xf]  ;;  %v5433_v14 = vld [vmem:[%s1022_s29] ss:$0 sm:$0xff] }
 0x1ed   : > { %6579 = vst [vmem:[#allocation66_spill] sm:$0xff] %v5426_v13  ;;  %6581 = vst [vmem:[#allocation67_spill] sm:$0xff] %v5433_v14  ;;  %v5440_v15 = vld [vmem:[%s1025_s26] ss:$0 sm:$0xff]  ;;  %v5450_v18 = vld [vmem:[%s5232_s25 + $0x8] sm:$0xff]  ;;  %s5744_s26 = smov 0  }
 0x1ee   : > { %6583 = vst [vmem:[#allocation68_spill] sm:$0xff] %v5440_v15  ;;  %v5444_v16 = vld [vmem:[%s885_s18] ss:$0 sm:$0xff]  ;;  %6586 = vst [vmem:[#allocation71_spill] sm:$0xff] %v5450_v18  ;;  %v5453_v19 = vld [vmem:[%s5232_s25 + $0x10] sm:$0xff] }
 0x1ef   : > { %6584 = vst [vmem:[#allocation69_spill] sm:$0xff] %v5444_v16  ;;  %v5447_v17 = vld [vmem:[%s5232_s25] sm:$0xff]  ;;  %6587 = vst [vmem:[#allocation72_spill] sm:$0xff] %v5453_v19  ;;  %v5456_v20 = vld [vmem:[%s5232_s25 + $0x18] sm:$0xff] }
 0x1f0   : > { %6585 = vst [vmem:[#allocation70_spill] sm:$0xff] %v5447_v17  ;;  %6588 = vst [vmem:[#allocation73_spill] sm:$0xff] %v5456_v20  ;;  %v5459_v21 = vld [vmem:[%s5232_s25 + $0x20] sm:$0xff]  ;;  %v5462_v22 = vld [vmem:[%s5232_s25 + $0x28] sm:$0xff] }
 0x1f1   : > { %6589 = vst [vmem:[#allocation74_spill] sm:$0xff] %v5459_v21  ;;  %6590 = vst [vmem:[#allocation75_spill] sm:$0xff] %v5462_v22  ;;  %v5465_v23 = vld [vmem:[%s5232_s25 + $0x30] sm:$0xff]  ;;  %v5468_v24 = vld [vmem:[%s5232_s25 + $0x38] sm:$0xff] }
 0x1f2   : > { %6591 = vst [vmem:[#allocation76_spill] sm:$0xff] %v5465_v23  ;;  %6592 = vst [vmem:[#allocation77_spill] sm:$0xff] %v5468_v24  ;;  %v5471_v25 = vld [vmem:[%s5232_s25 + $0x40] sm:$0xff]  ;;  %v5474_v26 = vld [vmem:[%s5232_s25 + $0x48] sm:$0xff] }
 0x1f3   : > { %6593 = vst [vmem:[#allocation78_spill] sm:$0xff] %v5471_v25  ;;  %6594 = vst [vmem:[#allocation79_spill] sm:$0xff] %v5474_v26  ;;  %v5477_v16 = vld [vmem:[%s5232_s25 + $0x50] sm:$0xff]  ;;  %v5480_v15 = vld [vmem:[%s5232_s25 + $0x58] sm:$0xff] }
 0x1f4   : > { %6595 = vst [vmem:[#allocation80_spill] sm:$0xff] %v5477_v16  ;;  %6596 = vst [vmem:[#allocation81_spill] sm:$0xff] %v5480_v15  ;;  %v5483_v18 = vld [vmem:[%s5232_s25 + $0x60] sm:$0xff]  ;;  %v5486_v20 = vld [vmem:[%s5232_s25 + $0x68] sm:$0xff] }
 0x1f5   : > { %6597 = vst [vmem:[#allocation82_spill] sm:$0xff] %v5483_v18  ;;  %6598 = vst [vmem:[#allocation83_spill] sm:$0xff] %v5486_v20  ;;  %v5489_v17 = vld [vmem:[%s5232_s25 + $0x70] sm:$0xff]  ;;  %v5492_v19 = vld [vmem:[%s5232_s25 + $0x78] sm:$0xff] }
 0x1f6   : > { %6599 = vst [vmem:[#allocation84_spill] sm:$0xff] %v5489_v17  ;;  %6600 = vst [vmem:[#allocation85_spill] sm:$0xff] %v5492_v19  ;;  %v5495_v22 = vld [vmem:[%s5232_s25 + $0x80] sm:$0xff]  ;;  %v5498_v24 = vld [vmem:[%s5232_s25 + $0x88] sm:$0xff] }
 0x1f7   : > { %6601 = vst [vmem:[#allocation86_spill] sm:$0xff] %v5495_v22  ;;  %6602 = vst [vmem:[#allocation87_spill] sm:$0xff] %v5498_v24  ;;  %v5501_v21 = vld [vmem:[%s5232_s25 + $0x90] sm:$0xff]  ;;  %v5504_v23 = vld [vmem:[%s5232_s25 + $0x98] sm:$0xff] }
 0x1f8   : > { %6603 = vst [vmem:[#allocation88_spill] sm:$0xff] %v5501_v21  ;;  %6604 = vst [vmem:[#allocation89_spill] sm:$0xff] %v5504_v23  ;;  %v5507_v26 = vld [vmem:[%s5232_s25 + $0xa0] sm:$0xff]  ;;  %v5510_v15 = vld [vmem:[%s5232_s25 + $0xa8] sm:$0xff] }
 0x1f9   : > { %6605 = vst [vmem:[#allocation90_spill] sm:$0xff] %v5507_v26  ;;  %6606 = vst [vmem:[#allocation91_spill] sm:$0xff] %v5510_v15  ;;  %v5513_v25 = vld [vmem:[%s5232_s25 + $0xb0] sm:$0xff]  ;;  %v5516_v16 = vld [vmem:[%s5232_s25 + $0xb8] sm:$0xff] }
 0x1fa   : > { %6607 = vst [vmem:[#allocation92_spill] sm:$0xff] %v5513_v25  ;;  %6608 = vst [vmem:[#allocation93_spill] sm:$0xff] %v5516_v16  ;;  %v5519_v20 = vld [vmem:[%s5232_s25 + $0xc0] sm:$0xff]  ;;  %v5522_v19 = vld [vmem:[%s5232_s25 + $0xc8] sm:$0xff] }
 0x1fb   : > { %6609 = vst [vmem:[#allocation94_spill] sm:$0xff] %v5519_v20  ;;  %6610 = vst [vmem:[#allocation95_spill] sm:$0xff] %v5522_v19  ;;  %v5525_v18 = vld [vmem:[%s5232_s25 + $0xd0] sm:$0xff]  ;;  %v5528_v17 = vld [vmem:[%s5232_s25 + $0xd8] sm:$0xff] }
 0x1fc   : > { %6611 = vst [vmem:[#allocation96_spill] sm:$0xff] %v5525_v18  ;;  %6612 = vst [vmem:[#allocation97_spill] sm:$0xff] %v5528_v17  ;;  %v5531_v24 = vld [vmem:[%s5232_s25 + $0xe0] sm:$0xff]  ;;  %v5534_v23 = vld [vmem:[%s5232_s25 + $0xe8] sm:$0xff] }
 0x1fd   : > { %6613 = vst [vmem:[#allocation98_spill] sm:$0xff] %v5531_v24  ;;  %6614 = vst [vmem:[#allocation99_spill] sm:$0xff] %v5534_v23  ;;  %v5537_v22 = vld [vmem:[%s5232_s25 + $0xf0] sm:$0xff]  ;;  %v5540_v21 = vld [vmem:[%s5232_s25 + $0xf8] sm:$0xff] }
 0x1fe   : > { %6615 = vst [vmem:[#allocation100_spill] sm:$0xff] %v5537_v22  ;;  %6616 = vst [vmem:[#allocation101_spill] sm:$0xff] %v5540_v21  ;;  %v5543_v15 = vld [vmem:[%s5218_s9] sm:$0xf]  ;;  %v5549_v26 = vld [vmem:[%s5234_s20 + $0x4] sm:$0xf] }
 0x1ff   : > { %6617 = vst [vmem:[#allocation102_spill] sm:$0xff] %v5543_v15  ;;  %v5546_v16 = vld [vmem:[%s5234_s20] sm:$0xf]  ;;  %6619 = vst [vmem:[#allocation104_spill] sm:$0xff] %v5549_v26  ;;  %v5552_v25 = vld [vmem:[%s5234_s20 + $0x8] sm:$0xf] }
 0x200   : > { %6618 = vst [vmem:[#allocation103_spill] sm:$0xff] %v5546_v16  ;;  %6620 = vst [vmem:[#allocation105_spill] sm:$0xff] %v5552_v25  ;;  %v5555_v19 = vld [vmem:[%s5234_s20 + $0xc] sm:$0xf]  ;;  %v5558_v17 = vld [vmem:[%s5234_s20 + $0x10] sm:$0xf] }
 0x201   : > { %6621 = vst [vmem:[#allocation106_spill] sm:$0xff] %v5555_v19  ;;  %6622 = vst [vmem:[#allocation107_spill] sm:$0xff] %v5558_v17  ;;  %v5561_v20 = vld [vmem:[%s5234_s20 + $0x14] sm:$0xf]  ;;  %v5564_v15 = vld [vmem:[%s5234_s20 + $0x18] sm:$0xf] }
 0x202   : > { %6623 = vst [vmem:[#allocation108_spill] sm:$0xff] %v5561_v20  ;;  %6624 = vst [vmem:[#allocation109_spill] sm:$0xff] %v5564_v15  ;;  %v5567_v16 = vld [vmem:[%s5234_s20 + $0x1c] sm:$0xf]  ;;  %v5570_v26 = vld [vmem:[%s5234_s20 + $0x20] sm:$0xf] }
 0x203   : > { %6625 = vst [vmem:[#allocation110_spill] sm:$0xff] %v5567_v16  ;;  %6626 = vst [vmem:[#allocation111_spill] sm:$0xff] %v5570_v26  ;;  %v5573_v25 = vld [vmem:[%s5234_s20 + $0x24] sm:$0xf]  ;;  %v5576_v19 = vld [vmem:[%s5234_s20 + $0x28] sm:$0xf] }
 0x204   : > { %6627 = vst [vmem:[#allocation112_spill] sm:$0xff] %v5573_v25  ;;  %6628 = vst [vmem:[#allocation113_spill] sm:$0xff] %v5576_v19  ;;  %v5579_v17 = vld [vmem:[%s5234_s20 + $0x2c] sm:$0xf]  ;;  %v5582_v20 = vld [vmem:[%s5234_s20 + $0x30] sm:$0xf] }
 0x205   : > { %6629 = vst [vmem:[#allocation114_spill] sm:$0xff] %v5579_v17  ;;  %6630 = vst [vmem:[#allocation115_spill] sm:$0xff] %v5582_v20  ;;  %v5585_v15 = vld [vmem:[%s5234_s20 + $0x34] sm:$0xf]  ;;  %v5588_v16 = vld [vmem:[%s5234_s20 + $0x38] sm:$0xf] }
 0x206   : > { %6631 = vst [vmem:[#allocation116_spill] sm:$0xff] %v5585_v15  ;;  %6632 = vst [vmem:[#allocation117_spill] sm:$0xff] %v5588_v16  ;;  %v5591_v26 = vld [vmem:[%s5234_s20 + $0x3c] sm:$0xf]  ;;  %v5594_v25 = vld [vmem:[%s5234_s20 + $0x40] sm:$0xf] }
 0x207   : > { %6633 = vst [vmem:[#allocation118_spill] sm:$0xff] %v5591_v26  ;;  %6634 = vst [vmem:[#allocation119_spill] sm:$0xff] %v5594_v25  ;;  %v5597_v19 = vld [vmem:[%s5234_s20 + $0x44] sm:$0xf]  ;;  %v5600_v17 = vld [vmem:[%s5234_s20 + $0x48] sm:$0xf] }
 0x208   : > { %6635 = vst [vmem:[#allocation120_spill] sm:$0xff] %v5597_v19  ;;  %6636 = vst [vmem:[#allocation121_spill] sm:$0xff] %v5600_v17  ;;  %v5603_v20 = vld [vmem:[%s5234_s20 + $0x4c] sm:$0xf]  ;;  %v5606_v15 = vld [vmem:[%s5234_s20 + $0x50] sm:$0xf] }
 0x209   : > { %6637 = vst [vmem:[#allocation122_spill] sm:$0xff] %v5603_v20  ;;  %6638 = vst [vmem:[#allocation123_spill] sm:$0xff] %v5606_v15  ;;  %v5609_v16 = vld [vmem:[%s5234_s20 + $0x54] sm:$0xf]  ;;  %v5612_v26 = vld [vmem:[%s5234_s20 + $0x58] sm:$0xf] }
 0x20a   : > { %6639 = vst [vmem:[#allocation124_spill] sm:$0xff] %v5609_v16  ;;  %6640 = vst [vmem:[#allocation125_spill] sm:$0xff] %v5612_v26  ;;  %v5615_v25 = vld [vmem:[%s5234_s20 + $0x5c] sm:$0xf]  ;;  %v5618_v19 = vld [vmem:[%s5234_s20 + $0x60] sm:$0xf] }
 0x20b   : > { %6641 = vst [vmem:[#allocation126_spill] sm:$0xff] %v5615_v25  ;;  %6642 = vst [vmem:[#allocation127_spill] sm:$0xff] %v5618_v19  ;;  %v5621_v17 = vld [vmem:[%s5234_s20 + $0x64] sm:$0xf]  ;;  %v5624_v20 = vld [vmem:[%s5234_s20 + $0x68] sm:$0xf] }
 0x20c   : > { %6643 = vst [vmem:[#allocation128_spill] sm:$0xff] %v5621_v17  ;;  %6644 = vst [vmem:[#allocation129_spill] sm:$0xff] %v5624_v20  ;;  %v5627_v15 = vld [vmem:[%s5234_s20 + $0x6c] sm:$0xf]  ;;  %v5630_v16 = vld [vmem:[%s5234_s20 + $0x70] sm:$0xf] }
 0x20d   : > { %6645 = vst [vmem:[#allocation130_spill] sm:$0xff] %v5627_v15  ;;  %6646 = vst [vmem:[#allocation131_spill] sm:$0xff] %v5630_v16  ;;  %v5633_v26 = vld [vmem:[%s5234_s20 + $0x74] sm:$0xf]  ;;  %v5636_v25 = vld [vmem:[%s5234_s20 + $0x78] sm:$0xf] }
 0x20e   : > { %6647 = vst [vmem:[#allocation132_spill] sm:$0xff] %v5633_v26  ;;  %6648 = vst [vmem:[#allocation133_spill] sm:$0xff] %v5636_v25  ;;  %v5639_v19 = vld [vmem:[%s5234_s20 + $0x7c] sm:$0xf]  ;;  %v5642_v17 = vld [vmem:[%s5234_s20 + $0x80] sm:$0xf] }
 0x20f   : > { %6649 = vst [vmem:[#allocation134_spill] sm:$0xff] %v5639_v19  ;;  %6650 = vst [vmem:[#allocation135_spill] sm:$0xff] %v5642_v17  ;;  %v5645_v20 = vld [vmem:[%s5234_s20 + $0x84] sm:$0xf]  ;;  %v5648_v15 = vld [vmem:[%s5234_s20 + $0x88] sm:$0xf] }
 0x210   : > { %6651 = vst [vmem:[#allocation136_spill] sm:$0xff] %v5645_v20  ;;  %6652 = vst [vmem:[#allocation137_spill] sm:$0xff] %v5648_v15  ;;  %v5651_v16 = vld [vmem:[%s5234_s20 + $0x8c] sm:$0xf]  ;;  %v5654_v26 = vld [vmem:[%s5234_s20 + $0x90] sm:$0xf] }
 0x211   : > { %6653 = vst [vmem:[#allocation138_spill] sm:$0xff] %v5651_v16  ;;  %6654 = vst [vmem:[#allocation139_spill] sm:$0xff] %v5654_v26  ;;  %v5657_v25 = vld [vmem:[%s5234_s20 + $0x94] sm:$0xf]  ;;  %v5660_v19 = vld [vmem:[%s5234_s20 + $0x98] sm:$0xf] }
 0x212   : > { %6655 = vst [vmem:[#allocation140_spill] sm:$0xff] %v5657_v25  ;;  %6656 = vst [vmem:[#allocation141_spill] sm:$0xff] %v5660_v19  ;;  %v5663_v17 = vld [vmem:[%s5234_s20 + $0x9c] sm:$0xf]  ;;  %v5666_v20 = vld [vmem:[%s5234_s20 + $0xa0] sm:$0xf] }
 0x213   : > { %6657 = vst [vmem:[#allocation142_spill] sm:$0xff] %v5663_v17  ;;  %6658 = vst [vmem:[#allocation143_spill] sm:$0xff] %v5666_v20  ;;  %v5669_v15 = vld [vmem:[%s5234_s20 + $0xa4] sm:$0xf]  ;;  %v5672_v16 = vld [vmem:[%s5234_s20 + $0xa8] sm:$0xf] }
 0x214   : > { %6659 = vst [vmem:[#allocation144_spill] sm:$0xff] %v5669_v15  ;;  %6660 = vst [vmem:[#allocation145_spill] sm:$0xff] %v5672_v16  ;;  %v5675_v26 = vld [vmem:[%s5234_s20 + $0xac] sm:$0xf]  ;;  %v5678_v25 = vld [vmem:[%s5234_s20 + $0xb0] sm:$0xf] }
 0x215   : > { %6661 = vst [vmem:[#allocation146_spill] sm:$0xff] %v5675_v26  ;;  %6662 = vst [vmem:[#allocation147_spill] sm:$0xff] %v5678_v25  ;;  %v5681_v19 = vld [vmem:[%s5234_s20 + $0xb4] sm:$0xf]  ;;  %v5684_v17 = vld [vmem:[%s5234_s20 + $0xb8] sm:$0xf] }
 0x216   : > { %6663 = vst [vmem:[#allocation148_spill] sm:$0xff] %v5681_v19  ;;  %6664 = vst [vmem:[#allocation149_spill] sm:$0xff] %v5684_v17  ;;  %v5687_v20 = vld [vmem:[%s5234_s20 + $0xbc] sm:$0xf]  ;;  %v5690_v15 = vld [vmem:[%s5234_s20 + $0xc0] sm:$0xf] }
 0x217   : > { %6665 = vst [vmem:[#allocation150_spill] sm:$0xff] %v5687_v20  ;;  %6666 = vst [vmem:[#allocation151_spill] sm:$0xff] %v5690_v15  ;;  %v5693_v16 = vld [vmem:[%s5234_s20 + $0xc4] sm:$0xf]  ;;  %v5696_v18 = vld [vmem:[%s5234_s20 + $0xc8] sm:$0xf] }
 0x218   : > { %6667 = vst [vmem:[#allocation152_spill] sm:$0xff] %v5693_v16  ;;  %6668 = vst [vmem:[#allocation153_spill] sm:$0xff] %v5696_v18  ;;  %v5699_v26 = vld [vmem:[%s5234_s20 + $0xcc] sm:$0xf]  ;;  %v5702_v25 = vld [vmem:[%s5234_s20 + $0xd0] sm:$0xf] }
 0x219   : > { %6669 = vst [vmem:[#allocation154_spill] sm:$0xff] %v5699_v26  ;;  %6670 = vst [vmem:[#allocation155_spill] sm:$0xff] %v5702_v25  ;;  %v5705_v23 = vld [vmem:[%s5234_s20 + $0xd4] sm:$0xf]  ;;  %v5708_v19 = vld [vmem:[%s5234_s20 + $0xd8] sm:$0xf] }
 0x21a   : > { %6671 = vst [vmem:[#allocation156_spill] sm:$0xff] %v5705_v23  ;;  %6672 = vst [vmem:[#allocation157_spill] sm:$0xff] %v5708_v19  ;;  %v5711_v17 = vld [vmem:[%s5234_s20 + $0xdc] sm:$0xf]  ;;  %v5714_v21 = vld [vmem:[%s5234_s20 + $0xe0] sm:$0xf] }
 0x21b   : > { %6673 = vst [vmem:[#allocation158_spill] sm:$0xff] %v5711_v17  ;;  %6674 = vst [vmem:[#allocation159_spill] sm:$0xff] %v5714_v21  ;;  %v5717_v20 = vld [vmem:[%s5234_s20 + $0xe4] sm:$0xf]  ;;  %v5720_v15 = vld [vmem:[%s5234_s20 + $0xe8] sm:$0xf] }
 0x21c   : > { %6675 = vst [vmem:[#allocation160_spill] sm:$0xff] %v5717_v20  ;;  %6676 = vst [vmem:[#allocation161_spill] sm:$0xff] %v5720_v15  ;;  %v5723_v24 = vld [vmem:[%s5234_s20 + $0xec] sm:$0xf]  ;;  %v5726_v16 = vld [vmem:[%s5234_s20 + $0xf0] sm:$0xf] }
 0x21d   : > { %6677 = vst [vmem:[#allocation162_spill] sm:$0xff] %v5723_v24  ;;  %6678 = vst [vmem:[#allocation163_spill] sm:$0xff] %v5726_v16  ;;  %v5729_v18 = vld [vmem:[%s5234_s20 + $0xf4] sm:$0xf]  ;;  %v5732_v26 = vld [vmem:[%s5234_s20 + $0xf8] sm:$0xf] }
 0x21e   : > { %6679 = vst [vmem:[#allocation164_spill] sm:$0xff] %v5729_v18  ;;  %6680 = vst [vmem:[#allocation165_spill] sm:$0xff] %v5732_v26  ;;  %v5735_v25 = vld [vmem:[%s5234_s20 + $0xfc] sm:$0xf]  ;;  %v5742_v23 = vld [vmem:[%s1032_s2] ss:$0 sm:$0xff] }
 0x21f   : > { %6681 = vst [vmem:[#allocation166_spill] sm:$0xff] %v5735_v25  ;;  %6683 = vst [vmem:[#allocation167_spill] sm:$0xff] %v5742_v23 }
 0x220 LB: >> { %v6684_v39 = vld [vmem:[#allocation49_spill] sm:$0xff]  ;;  %v6685_v37 = vld [vmem:[#allocation47_spill] sm:$0xff]  ;;  %v6688_v28 = vld [vmem:[#allocation38_spill] sm:$0xff]  ;;  %s1312_s11 = smul.u32 24, %s4779_s26  ;;  %vm1321_vm3 = vcmask 1040384   ;;  %vm1668_vm4 = vcmask 261120   ;;  %s4779_s26 = sphi %s5744_s26, %s1311_s26  }
 0x221   : >> { %v6686_v35 = vld [vmem:[#allocation45_spill] sm:$0xff]  ;;  %v6690_v29 = vld [vmem:[#allocation39_spill] sm:$0xff]  ;;  %v6692_v57 = vld [vmem:[#allocation50_spill] sm:$0xff]  ;;  %s4800_s19 = smov 96   ;;  %s4801_s2 = smov 32   ;;  %vm1928_vm5 = vcmask 131072  }
 0x222   : >> { %v6687_v31 = vld [vmem:[#allocation41_spill] sm:$0xff]  ;;  %v6691_v33 = vld [vmem:[#allocation43_spill] sm:$0xff]  ;;  %s5750_s18 = scalar_lea.vmem [#allocation2], %s1312_s11  ;;  %v3705_v20 = vcombine.high %v6692_v57, %v5372_v59  ;;  %v3704_v15 = vcombine.low %v6692_v57, %v5372_v59  ;;  %v6694_v38 = vld [vmem:[#allocation48_spill] sm:$0xff]  ;;  %s4802_s25 = smov 64   ;;  %vm1921_vm6 = vcmask 138240  }
 0x223   : >> { %v6689_v27 = vld [vmem:[#allocation37_spill] sm:$0xff]  ;;  %v1316_v17 = vld [vmem:[%s5750_s18 + $0x10] sm:$0x1]  ;;  %v6693_v58 = vld [vmem:[#allocation51_spill] sm:$0xff]  ;;  %vm2337_vm7 = vcmask 523264   ;;  %vm2342_vm8 = vcmask 785408  }
 0x224   : >> { %v1314_v19 = vld [vmem:[%s5750_s18] sm:$0xff]  ;;  %v1322_v23 = vsel %vm1321_vm3, %v1316_v17, 0.0  ;;  %v1315_v21 = vld [vmem:[%s5750_s18 + $0x8] sm:$0xff]  ;;  %v3706_v24 = vcombine.low %v6693_v58, %v5375_v60  ;;  %1518 = vmatprep.subr.bf16.mxu0 %v3705_v20  ;;  %v6703_v10 = vld [vmem:[#allocation63_spill] sm:$0xff]  ;;  %s1311_s26 = sadd.s32 1, %s4779_s26  }
 0x225   : >> { %1317 = vadd.xlane.f32.xlu0 %v1314_v19  ;;  %1323 = vadd.xlane.f32.xlu1 %v1322_v23  ;;  %v6695_v36 = vld [vmem:[#allocation46_spill] sm:$0xff]  ;;  %v6696_v34 = vld [vmem:[#allocation44_spill] sm:$0xff]  ;;  %v6701_v12 = vld [vmem:[#allocation65_spill] sm:$0xff]  ;;  %p1308_p13 = scmp.ge.s32.totalorder %s1311_s26, 2  }
 0x226   : >> { %3951 = vmatprep.subr.bf16.mxu1 %v3706_v24  ;;  %1519 = vmatpush1.bf16.msra.mxu0 %v3704_v15  ;;  %v6697_v32 = vld [vmem:[#allocation42_spill] sm:$0xff]  ;;  %v6698_v30 = vld [vmem:[#allocation40_spill] sm:$0xff]  ;;  %v6705_v8 = vld [vmem:[#allocation61_spill] sm:$0xff]  ;;  %s6819_s20 = sld [smem:[#allocation26_spill]] (%p1308_p13) }
 0x227   : >> { %3952 = vmatpush3.bf16.msra.mxu1 %v3706_v24  ;;  %v3697_v24 = vcombine.low %v5333_v46, %v5339_v48  ;;  %v6700_v13 = vld [vmem:[#allocation66_spill] sm:$0xff]  ;;  %v6702_v11 = vld [vmem:[#allocation64_spill] sm:$0xff]  ;;  %v6707_v6 = vld [vmem:[#allocation59_spill] sm:$0xff] }
 0x228   : >> { %v6704_v9 = vld [vmem:[#allocation62_spill] sm:$0xff]  ;;  %v6706_v7 = vld [vmem:[#allocation60_spill] sm:$0xff]  ;;  %v6709_v4 = vld [vmem:[#allocation57_spill] sm:$0xff] }
 0x229   : >> { %1319 = vadd.xlane.f32.xlu0 %v1315_v21  ;;  %v6708_v5 = vld [vmem:[#allocation58_spill] sm:$0xff]  ;;  %v6710_v3 = vld [vmem:[#allocation56_spill] sm:$0xff]  ;;  %v6711_v2 = vld [vmem:[#allocation55_spill] sm:$0xff] }
 0x22a   : >> { %v6712_v1 = vld [vmem:[#allocation54_spill] sm:$0xff]  ;;  %v6713_v0 = vld [vmem:[#allocation53_spill] sm:$0xff] }
 0x22c   : > { %p3799_p12 = scmp.ne.s32.totalorder (%p1308_p13), %s6819_s20, 1 }
 0x2ae   : >> { %v1318_v16 = vpop.xlane.xlu0 %1317  ;;  %v1324_v26 = vpop.xlane.xlu1 %1323 }
 0x2af   : >> { %v1326_v18 = vmul.f32 0.0078125, %v1318_v16  ;;  %v1328_v25 = vmul.f32 0.0078125, %v1324_v26  ;;  %v3694_v26 = vcombine.low %v5321_v42, %v5327_v44 }
 0x2b1   : >> { %v5762_v23 = vsub.f32 %v1314_v19, %v1326_v18  ;;  %v5764_v22 = vsub.f32 %v1316_v17, %v1328_v25  ;;  %v3702_v17 = vcombine.high %v5354_v53, %v5360_v55  ;;  %v3703_v18 = vcombine.low %v5357_v54, %v5363_v56 }
 0x2b2   : >> { %v1320_v14 = vpop.xlane.xlu0 %1319  ;;  %v3696_v19 = vcombine.high %v5330_v45, %v5336_v47  ;;  %v3693_v25 = vcombine.high %v5318_v41, %v5324_v43 }
 0x2b3   : >> { %v1327_v62 = vmul.f32 0.0078125, %v1320_v14  ;;  %v1332_v57 = vmul.f32 %v5762_v23, %v5762_v23  ;;  %v1334_v58 = vmul.f32 %v5764_v22, %v5764_v22  ;;  %v3701_v14 = vcombine.low %v5354_v53, %v5360_v55  ;;  %1520 = vmatprep.subr.bf16.mxu0 %v3702_v17  ;;  %3953 = vmatprep.subr.bf16.mxu1 %v3703_v18 }
 0x2b4   : >> { %3954 = vmatpush3.bf16.msra.mxu1 %v3703_v18  ;;  %v3691_v17 = vcombine.low %v6694_v38, %v5315_v40  ;;  %v3689_v18 = vcombine.low %v6685_v37, %v6684_v39 }
 0x2b5   : >> { %v5770_v20 = vsub.f32 %v1315_v21, %v1327_v62  ;;  %1335 = vadd.xlane.f32.xlu1 %v1332_v57  ;;  %v1339_v15 = vsel %vm1321_vm3, %v1334_v58, 0.0  ;;  %1521 = vmatpush1.bf16.msra.mxu0 %v3701_v14  ;;  %v3699_v57 = vcombine.high %v5342_v49, %v5348_v51  ;;  %v3698_v58 = vcombine.low %v5342_v49, %v5348_v51 }
 0x2b6   : >> { %v3700_v62 = vcombine.low %v5345_v50, %v5351_v52  ;;  %v3695_v21 = vcombine.low %v5330_v45, %v5336_v47  ;;  %v6440_v14 = vmov 0  }
 0x2b7   : >> { %v1333_v16 = vmul.f32 %v5770_v20, %v5770_v20  ;;  %1522 = vmatprep.subr.bf16.mxu0 %v3699_v57  ;;  %1550 = vmatprep.mubr.bf16.mxu0 %v6440_v14  ;;  %v3687_v57 = vcombine.high %v6691_v33, %v6686_v35 }
 0x2b8   : >> { %3955 = vmatprep.subr.bf16.mxu1 %v3700_v62 }
 0x2b9   : >> { %1340 = vadd.xlane.f32.xlu1 %v1339_v15  ;;  %1337 = vadd.xlane.f32.xlu0 %v1333_v16  ;;  %v3692_v15 = vcombine.low %v5318_v41, %v5324_v43  ;;  %v3690_v16 = vcombine.high %v6685_v37, %v6684_v39 }
 0x2ba   : >> { %1523 = vmatpush1.bf16.msra.mxu0 %v3698_v58  ;;  %3956 = vmatpush3.bf16.msra.mxu1 %v3700_v62  ;;  %v3688_v58 = vcombine.low %v6696_v34, %v6695_v36  ;;  %v3686_v62 = vcombine.low %v6691_v33, %v6686_v35 }
 0x2bb   : >> { %1524 = vmatprep.subr.bf16.mxu0 %v3696_v19  ;;  %3957 = vmatprep.subr.bf16.mxu1 %v3697_v24  ;;  %v3684_v19 = vcombine.high %v6690_v29, %v6687_v31 }
 0x2be   : >> { %1525 = vmatpush1.bf16.msra.mxu0 %v3695_v21  ;;  %3958 = vmatpush3.bf16.msra.mxu1 %v3697_v24  ;;  %v3685_v21 = vcombine.low %v6698_v30, %v6697_v32  ;;  %v3683_v24 = vcombine.low %v6690_v29, %v6687_v31 }
 0x2bf   : >> { %1526 = vmatprep.subr.bf16.mxu0 %v3693_v25  ;;  %3959 = vmatprep.subr.bf16.mxu1 %v3694_v26 }
 0x2c2   : >> { %1527 = vmatpush1.bf16.msra.mxu0 %v3692_v15  ;;  %3960 = vmatpush3.bf16.msra.mxu1 %v3694_v26 }
 0x2c3   : >> { %1528 = vmatprep.subr.bf16.mxu0 %v3690_v16  ;;  %3961 = vmatprep.subr.bf16.mxu1 %v3691_v17 }
 0x2c6   : >> { %1529 = vmatpush1.bf16.msra.mxu0 %v3689_v18  ;;  %3962 = vmatpush3.bf16.msra.mxu1 %v3691_v17 }
 0x2c7   : >> { %1530 = vmatprep.subr.bf16.mxu0 %v3687_v57  ;;  %3963 = vmatprep.subr.bf16.mxu1 %v3688_v58 }
 0x2ca   : >> { %1531 = vmatpush1.bf16.msra.mxu0 %v3686_v62  ;;  %3964 = vmatpush3.bf16.msra.mxu1 %v3688_v58 }
 0x2cb   : >> { %1532 = vmatprep.subr.bf16.mxu0 %v3684_v19  ;;  %3965 = vmatprep.subr.bf16.mxu1 %v3685_v21 }
 0x2ce   : >> { %1533 = vmatpush1.bf16.msra.mxu0 %v3683_v24  ;;  %3966 = vmatpush3.bf16.msra.mxu1 %v3685_v21 }
 0x33e   : >> { %v1336_v25 = vpop.xlane.xlu1 %1335 }
 0x33f   : >> { %v1342_v26 = vmul.f32 0.0078125, %v1336_v25 }
 0x341   : >> { %v1345_v15 = vadd.f32 1e-05, %v1342_v26 }
 0x342   : >> { %v1341_v16 = vpop.xlane.xlu1 %1340  ;;  %v1338_v17 = vpop.xlane.xlu0 %1337 }
 0x343   : >> { %4278 = vrsqrt.f32 %v1345_v15  ;;  %v1344_v18 = vmul.f32 0.0078125, %v1341_v16  ;;  %v1343_v57 = vmul.f32 0.0078125, %v1338_v17 }
 0x345   : >> { %v1347_v14 = vadd.f32 1e-05, %v1344_v18  ;;  %v1346_v33 = vadd.f32 1e-05, %v1343_v57 }
 0x347   : >> { %4280 = vrsqrt.f32 %v1347_v14 }
 0x348   : >> { %4282 = vrsqrt.f32 %v1346_v33 }
 0x350   : >> { %v4279_v62 = vpop.eup %4278 }
 0x351   : >> { %v1351_v29 = vmul.f32 %v4279_v62, %v5762_v23 }
 0x353   : >> { %v1360_v25 = vmul.f32 %v6689_v27, %v1351_v29 }
 0x354   : >> { %v4281_v58 = vpop.eup %4280 }
 0x355   : >> { %v4283_v19 = vpop.eup %4282  ;;  %v1353_v24 = vmul.f32 %v4281_v58, %v5764_v22  ;;  %v1369_v14 = vadd.f32 %v6688_v28, %v1360_v25  ;;  %v6699_v22 = vmov 0  }
 0x356   : >> { %v1352_v21 = vmul.f32 %v4283_v19, %v5770_v20  ;;  %v1375_v20 = vlaneseq }
 0x357   : >> { %v1362_v26 = vmul.f32 %v6689_v27, %v1353_v24 }
 0x358   : >> { %v1361_v15 = vmul.f32 %v6689_v27, %v1352_v21  ;;  %v5828_v29 = vshrl.u32 %v1375_v20, 7 }
 0x359   : >> { %v1371_v16 = vadd.f32 %v6688_v28, %v1362_v26 }
 0x35a   : >> { %v1370_v33 = vadd.f32 %v6688_v28, %v1361_v15  ;;  %v6446_v18 = vsub.s32 0, %v5828_v29  ;;  %v6447_v57 = vsub.s32 1, %v5828_v29 }
 0x35b   : >> { %v1373_v17 = vpack.c.bf16 %v1371_v16, %v1371_v16 }
 0x35c   : >> { %v1372_v23 = vpack.c.bf16 %v1370_v33, %v1369_v14  ;;  %v1378_v58 = vrot.slane %v5378_v61, %v6446_v18  ;;  %v1382_v21 = vrot.slane %v5378_v61, %v6447_v57 }
 0x35e   : >> { %1551 = vmatmul.mubr.bf16.vlgmr.msra.gmra.mxu0 %v1372_v23  ;;  %3967 = vmatprep.mubr.bf16.mxu1 %v1372_v23 }
 0x35f   : >> { %3968 = vmatmul.mubr.bf16.vlgmr.msra.gmra.mxu1 %v1373_v17  ;;  %1560 = vmatprep.mubr.bf16.mxu0 %v6699_v22 }
 0x366   : >> { %1561 = vmatmul.mubr.bf16.gmra.mxu0 %v1373_v17 }
 0x41e   : >> { %v1552_v62 = vpop.f32.mrf.mxu0 }
 0x41f   : >> { %v3969_v19 = vpop.f32.mrf.mxu1  ;;  %v1553_v15 = vadd.f32 %v1552_v62, %v1378_v58 }
 0x420   : >> { %v1554_v24 = vpop.f32.mrf.mxu0 }
 0x421   : >> { %v5838_v25 = vpop.f32.mrf.mxu1  ;;  %v1555_v17 = vadd.f32 %v1554_v24, %v1382_v21 }
 0x422   : >> { %v1556_v26 = vpop.f32.mrf.mxu0 }
 0x423   : >> { %v1557_v16 = vadd.f32 %v1556_v26, %v1378_v58  ;;  %v3970_v14 = vpop.f32.mrf.mxu1 }
 0x424   : >> { %v1558_v33 = vpop.f32.mrf.mxu0 }
 0x425   : >> { %v1617_v23 = vpack.c.bf16 %v1557_v16, %v1553_v15  ;;  %v1559_v20 = vadd.f32 %v1558_v33, %v1382_v21 }
 0x426   : >> { %v1562_v27 = vpop.f32.mrf.mxu0 }
 0x427   : >> { %v1618_v28 = vpack.c.bf16 %v1559_v20, %v1555_v17  ;;  %3975 = vmatprep.mubr.msk.bf16.mxu1 %vm1668_vm4, %v1617_v23  ;;  %v1563_v24 = vadd.f32 %v1562_v27, %v1378_v58  ;;  %v5875_v20 = vsel %vm1321_vm3, 65535, %v6699_v22 }
 0x428   : >> { %v1564_v18 = vpop.f32.mrf.mxu0 }
 0x429   : >> { %v1565_v30 = vadd.f32 %v1564_v18, %v1382_v21  ;;  %1639 = vrot.lane.b32.xlu1 %v1618_v28, %s4800_s19 }
 0x42a   : >> { %v1566_v57 = vpop.f32.mrf.mxu0 }
 0x42b   : >> { %v1621_v31 = vpack.c.bf16 %v1565_v30, %v1565_v30  ;;  %v1620_v30 = vpack.c.bf16 %v1563_v24, %v1563_v24 }
 0x42c   : >> { %v1567_v32 = vpop.f32.mrf.mxu0 }
 0x42d   : >> { %1641 = vrot.lane.b32.xlu0 %v1621_v31, %s4800_s19  ;;  %4075 = vmatprep.subr.msk.bf16.mxu1 %vm1668_vm4, %v1621_v31  ;;  %v1679_v62 = vsel %vm1668_vm4, %v1621_v31, 0  ;;  %v1676_v32 = vsel %vm1668_vm4, %v1618_v28, 0 }
 0x42e   : >> { %1625 = vrot.lane.b32.xlu1 %v1617_v23, %s4800_s19  ;;  %3972 = vmatpush3.bf16.xpose.msra.mxu1 %v1679_v62 }
 0x42f   : >> { %4076 = vmatprep.subr.msk.bf16.mxu1 %vm1668_vm4, %v1618_v28 }
 0x431   : >> { %1649 = vrot.lane.b32.xlu0 %v1621_v31, %s4801_s2 }
 0x432   : >> { %1645 = vrot.lane.b32.xlu1 %v1621_v31, %s4802_s25  ;;  %v6449_v31 = vsub.s32 2, %v5828_v29 }
 0x435   : >> { %1643 = vrot.lane.b32.xlu0 %v1618_v28, %s4802_s25 }
 0x436   : >> { %1627 = vrot.lane.b32.xlu1 %v1620_v30, %s4800_s19  ;;  %3974 = vmatpush3.bf16.xpose.msra.mxu1 %v1676_v32 }
 0x439   : >> { %1629 = vrot.lane.b32.xlu0 %v1617_v23, %s4802_s25 }
 0x43a   : >> { %1647 = vrot.lane.b32.xlu1 %v1618_v28, %s4801_s2  ;;  %v1386_v28 = vrot.slane %v5378_v61, %v6449_v31 }
 0x43c   : >> { %v1612_v15 = vadd.f32 %v3969_v19, %v1386_v28 }
 0x43d   : >> { %1633 = vrot.lane.b32.xlu0 %v1617_v23, %s4801_s2  ;;  %3976 = vmatmul.mubr.msk.bf16.vlgmr.msra.gmra.mxu1 %vm1668_vm4, %v1620_v30 }
 0x43e   : >> { %1631 = vrot.lane.b32.xlu1 %v1620_v30, %s4802_s25  ;;  %v5870_v23 = vpack.c.bf16 %v1612_v15, %v1612_v15 }
 0x440   : >> { %v2060_v24 = vand.u32 %v5875_v20, %v5870_v23 }
 0x442   : >> { %1635 = vrot.lane.b32.xlu1 %v1620_v30, %s4801_s2  ;;  %v1606_v30 = vpop.f32.mrf.mxu1 }
 0x49b   : >> { %v1640_v27 = vpop.permute.xlu1 %1639 }
 0x49c   : >> { %v1736_v33 = vsel %vm1668_vm4, %v1640_v27, 0 }
 0x49f   : >> { %v1642_v18 = vpop.permute.xlu0 %1641 }
 0x4a0   : >> { %v1739_v57 = vsel %vm1668_vm4, %v1642_v18, 0  ;;  %v1626_v58 = vpop.permute.xlu1 %1625  ;;  %4077 = vmatprep.subr.msk.bf16.mxu1 %vm1668_vm4, %v1642_v18 }
 0x4a1   : >> { %3983 = vmatprep.mubr.msk.bf16.mxu1 %vm1668_vm4, %v1626_v58  ;;  %3980 = vmatpush3.bf16.xpose.msra.mxu1 %v1739_v57  ;;  %v1607_v57 = vadd.f32 %v1606_v30, %v1386_v28  ;;  %v1604_v58 = vadd.f32 %v5838_v25, %v1386_v28 }
 0x4a2   : >> { %4078 = vmatprep.subr.msk.bf16.mxu1 %vm1668_vm4, %v1640_v27 }
 0x4a3   : >> { %v1650_v21 = vpop.permute.xlu0 %1649  ;;  %v5886_v15 = vpack.c.bf16 %v1607_v57, %v1604_v58 }
 0x4a4   : >> { %v1646_v26 = vpop.permute.xlu1 %1645  ;;  %v1859_v18 = vsel %vm1668_vm4, %v1650_v21, 0 }
 0x4a5   : >> { %v1799_v16 = vsel %vm1668_vm4, %v1646_v26, 0  ;;  %4079 = vmatprep.subr.msk.bf16.mxu0 %vm1668_vm4, %v1646_v26 }
 0x4a6   : >> { %3988 = vmatpush3.bf16.xpose.msra.mxu0 %v1799_v16 }
 0x4a7   : >> { %v1644_v14 = vpop.permute.xlu0 %1643 }
 0x4a8   : >> { %v1628_v17 = vpop.permute.xlu1 %1627  ;;  %4080 = vmatprep.subr.msk.bf16.mxu0 %vm1668_vm4, %v1644_v14  ;;  %v1796_v62 = vsel %vm1668_vm4, %v1644_v14, 0 }
 0x4a9   : >> { %3982 = vmatpush3.bf16.xpose.msra.mxu1 %v1736_v33 }
 0x4aa   : >> { %4081 = vmatprep.subr.msk.bf16.mxu1 %vm1668_vm4, %v1650_v21 }
 0x4ab   : >> { %v1630_v19 = vpop.permute.xlu0 %1629 }
 0x4ac   : >> { %3991 = vmatprep.mubr.msk.bf16.mxu0 %vm1668_vm4, %v1630_v19  ;;  %v1648_v32 = vpop.permute.xlu1 %1647 }
 0x4ad   : >> { %v1856_v21 = vsel %vm1668_vm4, %v1648_v32, 0 }
 0x4ae   : >> { %3990 = vmatpush3.bf16.xpose.msra.mxu0 %v1796_v62 }
 0x4af   : >> { %4003 = vmatprep.subr.bf16.mxu0 %v2060_v24  ;;  %v1634_v27 = vpop.permute.xlu0 %1633 }
 0x4b0   : >> { %3984 = vmatmul.mubr.msk.bf16.vlgmr.msra.gmra.mxu1 %vm1668_vm4, %v1628_v17  ;;  %v1632_v26 = vpop.permute.xlu1 %1631 }
 0x4b1   : >> { %3996 = vmatpush3.bf16.xpose.msra.mxu1 %v1859_v18  ;;  %3999 = vmatprep.mubr.msk.bf16.mxu1 %vm1668_vm4, %v1634_v27 }
 0x4b2   : >> { %4082 = vmatprep.subr.msk.bf16.mxu1 %vm1668_vm4, %v1648_v32 }
 0x4b4   : >> { %v1636_v16 = vpop.permute.xlu1 %1635 }
 0x4b5   : >> { %3992 = vmatmul.mubr.msk.bf16.vlgmr.msra.gmra.mxu0 %vm1668_vm4, %v1632_v26 }
 0x4b6   : >> { %4004 = vmatpush3.bf16.msra.mxu0 %v2060_v24 }
 0x4b7   : >> { %4005 = vmatprep.subr.bf16.mxu0 %v5886_v15 }
 0x4b9   : >> { %3998 = vmatpush3.bf16.xpose.msra.mxu1 %v1856_v21 }
 0x4ba   : >> { %4006 = vmatpush3.bf16.msra.mxu0 %v5886_v15 }
 0x4c0   : >> { %4000 = vmatmul.mubr.msk.bf16.vlgmr.msra.gmra.mxu1 %vm1668_vm4, %v1636_v16 }
 0x4fd   : >> { %v3977_v14 = vpop.f32.mrf.mxu1 }
 0x4fe   : >> { %v1911_v33 = vmul.f32 0.17677669, %v3977_v14 }
 0x4ff   : >> { %v1715_v25 = vpop.f32.mrf.mxu1 }
 0x500   : >> { %v1909_v28 = vmul.f32 0.17677669, %v1715_v25  ;;  %v1929_v17 = vsel %vm1928_vm5, %v1911_v33, -inf }
 0x501   : >> { %1930 = vmax.xlane.f32.xlu0 %v1929_v17  ;;  %v3978_v19 = vpop.f32.mrf.mxu1 }
 0x502   : >> { %v1922_v30 = vsel %vm1921_vm6, %v1909_v28, -inf }
 0x503   : >> { %v1718_v62 = vpop.f32.mrf.mxu1 }
 0x504   : >> { %v1910_v24 = vmul.f32 0.17677669, %v1718_v62 }
 0x505   : >> { %1923 = vmax.xlane.f32.xlu0 %v1922_v30 }
 0x506   : >> { %v1925_v32 = vsel %vm1921_vm6, %v1910_v24, -inf }
 0x507   : >> { %1926 = vmax.xlane.f32.xlu1 %v1925_v32 }
 0x570   : >> { %v3985_v27 = vpop.f32.mrf.mxu1 }
 0x571   : >> { %v1914_v18 = vmul.f32 0.17677669, %v3985_v27 }
 0x572   : >> { %v1775_v57 = vpop.f32.mrf.mxu1 }
 0x573   : >> { %v1938_v58 = vsel %vm1928_vm5, %v1914_v18, -inf  ;;  %v5897_v25 = vmul.f32 0.17677669, %v1775_v57 }
 0x574   : >> { %1939 = vmax.xlane.f32.xlu1 %v1938_v58  ;;  %v3986_v26 = vpop.f32.mrf.mxu1 }
 0x575   : >> { %v3993_v21 = vpop.f32.mrf.mxu0  ;;  %v1932_v30 = vsel %vm1921_vm6, %v5897_v25, -inf }
 0x576   : >> { %v1917_v16 = vmul.f32 0.17677669, %v3993_v21  ;;  %v1778_v32 = vpop.f32.mrf.mxu1 }
 0x577   : >> { %v1835_v14 = vpop.f32.mrf.mxu0  ;;  %v5904_v27 = vmul.f32 0.17677669, %v1778_v32 }
 0x578   : >> { %v1947_v17 = vsel %vm1928_vm5, %v1917_v16, -inf  ;;  %v5900_v62 = vmul.f32 0.17677669, %v1835_v14 }
 0x579   : >> { %v3994_v19 = vpop.f32.mrf.mxu0  ;;  %1948 = vmax.xlane.f32.xlu0 %v1947_v17  ;;  %v1935_v21 = vsel %vm1921_vm6, %v5904_v27, -inf }
 0x57a   : >> { %v1941_v58 = vsel %vm1921_vm6, %v5900_v62, -inf }
 0x57d   : >> { %1933 = vmax.xlane.f32.xlu0 %v1932_v30 }
 0x580   : >> { %v4001_v26 = vpop.f32.mrf.mxu1 }
 0x581   : >> { %1942 = vmax.xlane.f32.xlu0 %v1941_v58 }
 0x582   : >> { %v1895_v57 = vpop.f32.mrf.mxu1 }
 0x584   : >> { %v4002_v19 = vpop.f32.mrf.mxu1 }
 0x585   : >> { %1936 = vmax.xlane.f32.xlu0 %v1935_v21  ;;  %1653 = vrot.lane.b32.xlu1 %v5886_v15, %s4800_s19 }
 0x589   : >> { %1660 = vrot.lane.b32.xlu1 %v5870_v23, %s4802_s25 }
 0x58a   : >> { %v1931_v14 = vpop.xlane.xlu0 %1930 }
 0x58b   : >> { %v1961_v17 = vsub.f32 %v1911_v33, %v1931_v14  ;;  %v1838_v33 = vpop.f32.mrf.mxu0 }
 0x58d   : >> { %1665 = vrot.lane.b32.xlu1 %v5870_v23, %s4801_s2  ;;  %v1972_v32 = vpack.c.bf16 %v1961_v17, %v1961_v17 }
 0x58e   : >> { %v1924_v30 = vpop.xlane.xlu0 %1923 }
 0x58f   : >> { %v1959_v31 = vsub.f32 %v1909_v28, %v1924_v30  ;;  %v1983_v36 = vmul.bf16 1069105081, %v1972_v32  ;;  %v5926_v28 = vmul.f32 0.17677669, %v1838_v33 }
 0x590   : >> { %v1927_v58 = vpop.xlane.xlu1 %1926 }
 0x591   : >> { %v1960_v34 = vsub.f32 %v1910_v24, %v1927_v58 }
 0x593   : >> { %v1971_v35 = vpack.c.bf16 %v1960_v34, %v1959_v31  ;;  %v5928_v34 = vmul.f32 0.17677669, %v4001_v26  ;;  %v5932_v31 = vmul.f32 0.17677669, %v1895_v57 }
 0x595   : >> { %v1980_v19 = vmul.bf16 1069105081, %v1971_v35  ;;  %v1944_v35 = vsel %vm1921_vm6, %v5926_v28, -inf  ;;  %v1950_v14 = vsel %vm1921_vm6, %v5932_v31, -inf }
 0x597   : >> { %4284 = vpow.bf16 %v1980_v19 }
 0x598   : >> { %4286 = vpow.bf16 %v1983_v36  ;;  %v1898_v36 = vpop.f32.mrf.mxu1 }
 0x599   : >> { %v5936_v24 = vmul.f32 0.17677669, %v1898_v36 }
 0x59b   : >> { %1655 = vrot.lane.b32.xlu0 %v5870_v23, %s4800_s19  ;;  %v1956_v23 = vsel %vm1928_vm5, %v5928_v34, -inf  ;;  %v1953_v26 = vsel %vm1921_vm6, %v5936_v24, -inf }
 0x5a5   : >> { %v5918_v21 = vpop.eup %4284 }
 0x5a6   : >> { %v5920_v37 = vpop.eup %4286  ;;  %4007 = vmatprep.mubr.msk.bf16.mxu0 %vm1921_vm6, %v5918_v21 }
 0x5a7   : >> { %4008 = vmatmul.mubr.msk.bf16.vlgmr.msra.gmra.mxu0 %vm1921_vm6, %v5920_v37 }
 0x5b1   : >> { %1945 = vmax.xlane.f32.xlu1 %v1944_v35 }
 0x5b5   : >> { %1957 = vmax.xlane.f32.xlu1 %v1956_v23 }
 0x5b9   : >> { %1951 = vmax.xlane.f32.xlu1 %v1950_v14 }
 0x5ba   : >> { %1954 = vmax.xlane.f32.xlu0 %v1953_v26 }
 0x5ca   : >> { %1663 = vrot.lane.b32.xlu1 %v5886_v15, %s4801_s2 }
 0x5d0   : >> { %1658 = vrot.lane.b32.xlu0 %v5886_v15, %s4802_s25 }
 0x5fd   : >> { %v1940_v57 = vpop.xlane.xlu1 %1939 }
 0x5fe   : >> { %v1964_v17 = vsub.f32 %v1914_v18, %v1940_v57 }
 0x600   : >> { %v1974_v30 = vpack.c.bf16 %v1964_v17, %v1964_v17 }
 0x601   : >> { %v1654_v32 = vpop.permute.xlu1 %1653 }
 0x602   : >> { %v1989_v58 = vmul.bf16 1069105081, %v1974_v30  ;;  %v1949_v19 = vpop.xlane.xlu0 %1948 }
 0x603   : >> { %v1967_v33 = vsub.f32 %v1917_v16, %v1949_v19 }
 0x604   : >> { %4288 = vpow.bf16 %v1989_v58 }
 0x605   : >> { %v1976_v35 = vpack.c.bf16 %v1967_v33, %v1967_v33  ;;  %v1661_v36 = vpop.permute.xlu1 %1660 }
 0x606   : >> { %v2174_v23 = vand.u32 %v5875_v20, %v1661_v36  ;;  %v1934_v14 = vpop.xlane.xlu0 %1933 }
 0x607   : >> { %v1995_v26 = vmul.bf16 1069105081, %v1976_v35  ;;  %v1962_v15 = vsub.f32 %v5897_v25, %v1934_v14 }
 0x608   : >> { %4019 = vmatprep.subr.bf16.mxu0 %v2174_v23 }
 0x609   : >> { %4290 = vpow.bf16 %v1995_v26  ;;  %4020 = vmatpush3.bf16.msra.mxu0 %v2174_v23  ;;  %v1666_v35 = vpop.permute.xlu1 %1665 }
 0x60a   : >> { %v1943_v38 = vpop.xlane.xlu0 %1942  ;;  %v2231_v25 = vand.u32 %v5875_v20, %v1666_v35 }
 0x60e   : >> { %v1937_v39 = vpop.xlane.xlu0 %1936 }
 0x60f   : >> { %v1963_v18 = vsub.f32 %v5904_v27, %v1937_v39 }
 0x611   : >> { %v1973_v57 = vpack.c.bf16 %v1963_v18, %v1962_v15 }
 0x612   : >> { %v4289_v17 = vpop.eup %4288  ;;  %v1656_v30 = vpop.permute.xlu0 %1655 }
 0x613   : >> { %v1986_v16 = vmul.bf16 1069105081, %v1973_v57  ;;  %v2117_v58 = vand.u32 %v5875_v20, %v1656_v30  ;;  %v2008_v19 = vunpack.c.l.bf16 %v4289_v17 }
 0x615   : >> { %4292 = vpow.bf16 %v1986_v16  ;;  %4011 = vmatprep.subr.bf16.mxu1 %v2117_v58  ;;  %v2030_v33 = vsel %vm1928_vm5, %v2008_v19, 0.0 }
 0x616   : >> { %4012 = vmatpush3.bf16.msra.mxu1 %v2117_v58  ;;  %2031 = vadd.xlane.f32.xlu0 %v2030_v33 }
 0x617   : >> { %v4291_v36 = vpop.eup %4290  ;;  %4013 = vmatprep.subr.bf16.mxu1 %v1654_v32 }
 0x618   : >> { %v2011_v23 = vunpack.c.l.bf16 %v4291_v36 }
 0x61a   : >> { %4014 = vmatpush3.bf16.msra.mxu1 %v1654_v32  ;;  %v2039_v39 = vsel %vm1928_vm5, %v2011_v23, 0.0  ;;  %v1965_v32 = vsub.f32 %v5900_v62, %v1943_v38 }
 0x61b   : >> { %4027 = vmatprep.subr.bf16.mxu1 %v2231_v25  ;;  %2040 = vadd.xlane.f32.xlu1 %v2039_v39 }
 0x623   : >> { %v4293_v27 = vpop.eup %4292 }
 0x624   : >> { %4015 = vmatprep.mubr.msk.bf16.mxu1 %vm1921_vm6, %v4293_v27  ;;  %v2007_v14 = vunpack.c.h.bf16 %v4293_v27  ;;  %v2006_v26 = vunpack.c.l.bf16 %v4293_v27 }
 0x625   : >> { %4016 = vmatmul.mubr.msk.bf16.vlgmr.msra.gmra.mxu1 %vm1921_vm6, %v4289_v17 }
 0x626   : >> { %4028 = vmatpush3.bf16.msra.mxu1 %v2231_v25  ;;  %v2027_v15 = vsel %vm1921_vm6, %v2007_v14, 0.0  ;;  %v2024_v18 = vsel %vm1921_vm6, %v2006_v26, 0.0 }
 0x627   : >> { %2028 = vadd.xlane.f32.xlu1 %v2027_v15  ;;  %2025 = vadd.xlane.f32.xlu0 %v2024_v18 }
 0x63a   : >> { %v1946_v20 = vpop.xlane.xlu1 %1945 }
 0x63b   : >> { %v1966_v57 = vsub.f32 %v5926_v28, %v1946_v20 }
 0x63d   : >> { %v1975_v30 = vpack.c.bf16 %v1966_v57, %v1965_v32 }
 0x63e   : >> { %v1958_v16 = vpop.xlane.xlu1 %1957 }
 0x63f   : >> { %v1992_v58 = vmul.bf16 1069105081, %v1975_v30  ;;  %v1970_v19 = vsub.f32 %v5928_v34, %v1958_v16 }
 0x641   : >> { %4294 = vpow.bf16 %v1992_v58  ;;  %v1978_v33 = vpack.c.bf16 %v1970_v19, %v1970_v19 }
 0x642   : >> { %v1952_v17 = vpop.xlane.xlu1 %1951 }
 0x643   : >> { %v1968_v35 = vsub.f32 %v5932_v31, %v1952_v17  ;;  %v1955_v23 = vpop.xlane.xlu0 %1954  ;;  %v2001_v39 = vmul.bf16 1069105081, %v1978_v33  ;;  %v2005_v33 = vunpack.c.l.bf16 %v5920_v37  ;;  %v2004_v17 = vunpack.c.h.bf16 %v5918_v21 }
 0x644   : >> { %v1969_v25 = vsub.f32 %v5936_v24, %v1955_v23 }
 0x645   : >> { %4296 = vpow.bf16 %v2001_v39  ;;  %v2018_v23 = vsel %vm1921_vm6, %v2004_v17, 0.0 }
 0x646   : >> { %v1977_v27 = vpack.c.bf16 %v1969_v25, %v1968_v35  ;;  %v1664_v14 = vpop.permute.xlu1 %1663  ;;  %v2021_v35 = vsel %vm1928_vm5, %v2005_v33, 0.0 }
 0x647   : >> { %v1659_v26 = vpop.permute.xlu0 %1658  ;;  %4029 = vmatprep.subr.bf16.mxu1 %v1664_v14 }
 0x648   : >> { %v1998_v38 = vmul.bf16 1069105081, %v1977_v27  ;;  %4021 = vmatprep.subr.bf16.mxu0 %v1659_v26  ;;  %4030 = vmatpush3.bf16.msra.mxu1 %v1664_v14 }
 0x649   : >> { %4022 = vmatpush3.bf16.msra.mxu0 %v1659_v26 }
 0x64a   : >> { %4298 = vpow.bf16 %v1998_v38 }
 0x64f   : >> { %v4295_v62 = vpop.eup %4294 }
 0x650   : >> { %4023 = vmatprep.mubr.msk.bf16.mxu0 %vm1921_vm6, %v4295_v62  ;;  %v2009_v28 = vunpack.c.l.bf16 %v4295_v62  ;;  %v2010_v31 = vunpack.c.h.bf16 %v4295_v62  ;;  %v3730_v62 = vcombine.low %v6703_v10, %v6702_v11  ;;  %v6738_v10 = vld [vmem:[#allocation81_spill] sm:$0xff]  ;;  %v6739_v11 = vld [vmem:[#allocation79_spill] sm:$0xff] }
 0x651   : >> { %4024 = vmatmul.mubr.msk.bf16.vlgmr.msra.gmra.mxu0 %vm1921_vm6, %v4291_v36  ;;  %v2003_v36 = vunpack.c.l.bf16 %v5918_v21  ;;  %v3731_v21 = vcombine.low %v6701_v12, %v6700_v13  ;;  %v3745_v12 = vcombine.high %v6739_v11, %v6738_v10 }
 0x652   : >> { %v2033_v34 = vsel %vm1921_vm6, %v2009_v28, 0.0  ;;  %v2036_v24 = vsel %vm1921_vm6, %v2010_v31, 0.0 }
 0x653   : >> { %2034 = vadd.xlane.f32.xlu0 %v2033_v34  ;;  %v4297_v15 = vpop.eup %4296  ;;  %v2015_v58 = vsel %vm1921_vm6, %v2003_v36, 0.0  ;;  %4035 = vmatprep.subr.bf16.mxu0 %v3731_v21  ;;  %v3728_v36 = vcombine.low %v6707_v6, %v6706_v7  ;;  %v6734_v7 = vld [vmem:[#allocation85_spill] sm:$0xff] }
 0x654   : >> { %v2014_v16 = vunpack.c.l.bf16 %v4297_v15  ;;  %4036 = vmatpush3.bf16.msra.mxu0 %v3731_v21  ;;  %v3725_v21 = vcombine.low %v6713_v0, %v6712_v1  ;;  %v6731_v0 = vld [vmem:[#allocation87_spill] sm:$0xff] }
 0x655   : >> { %4037 = vmatprep.subr.bf16.mxu0 %v3730_v62 }
 0x656   : >> { %v2048_v19 = vsel %vm1928_vm5, %v2014_v16, 0.0 }
 0x657   : >> { %2037 = vadd.xlane.f32.xlu0 %v2036_v24 }
 0x658   : >> { %v4299_v18 = vpop.eup %4298  ;;  %4038 = vmatpush3.bf16.msra.mxu0 %v3730_v62 }
 0x659   : >> { %4031 = vmatprep.mubr.msk.bf16.mxu1 %vm1921_vm6, %v4299_v18  ;;  %v2013_v20 = vunpack.c.h.bf16 %v4299_v18  ;;  %v2012_v32 = vunpack.c.l.bf16 %v4299_v18 }
 0x65a   : >> { %4032 = vmatmul.mubr.msk.bf16.vlgmr.msra.gmra.mxu1 %vm1921_vm6, %v4297_v15  ;;  %v3729_v15 = vcombine.low %v6705_v8, %v6704_v9  ;;  %v6736_v8 = vld [vmem:[#allocation80_spill] sm:$0xff] }
 0x65b   : >> { %v2045_v57 = vsel %vm1921_vm6, %v2013_v20, 0.0  ;;  %v2042_v30 = vsel %vm1921_vm6, %v2012_v32, 0.0  ;;  %2722 = vmatprep.mubr.bf16.mxu1 %v6699_v22 }
 0x65c   : >> { %2046 = vadd.xlane.f32.xlu1 %v2045_v57  ;;  %2043 = vadd.xlane.f32.xlu0 %v2042_v30 }
 0x65d   : >> { %4039 = vmatprep.subr.bf16.mxu0 %v3729_v15 }
 0x65e   : >> { %4040 = vmatpush3.bf16.msra.mxu0 %v3729_v15 }
 0x65f   : >> { %4041 = vmatprep.subr.bf16.mxu0 %v3728_v36 }
 0x660   : >> { %2016 = vadd.xlane.f32.xlu1 %v2015_v58  ;;  %2049 = vadd.xlane.f32.xlu0 %v2048_v19 }
 0x662   : >> { %4042 = vmatpush3.bf16.msra.mxu0 %v3728_v36 }
 0x664   : >> { %2022 = vadd.xlane.f32.xlu1 %v2021_v35  ;;  %2019 = vadd.xlane.f32.xlu0 %v2018_v23  ;;  %v3727_v23 = vcombine.low %v6709_v4, %v6708_v5  ;;  %v6732_v4 = vld [vmem:[#allocation84_spill] sm:$0xff]  ;;  %v6733_v5 = vld [vmem:[#allocation82_spill] sm:$0xff] }
 0x665   : >> { %v3747_v6 = vcombine.high %v6733_v5, %v6732_v4 }
 0x666   : >> { %4043 = vmatprep.subr.bf16.mxu0 %v3727_v23 }
 0x667   : >> { %v5978_v25 = vpop.f32.mrf.mxu0  ;;  %4044 = vmatpush3.bf16.msra.mxu0 %v3727_v23 }
 0x669   : >> { %v5980_v39 = vpop.f32.mrf.mxu0 }
 0x66b   : >> { %v4010_v27 = vpop.f32.mrf.mxu0 }
 0x66c   : >> { %v3726_v27 = vcombine.low %v6711_v2, %v6710_v3 }
 0x66e   : >> { %4045 = vmatprep.subr.bf16.mxu0 %v3726_v27 }
 0x66f   : >> { %4046 = vmatpush3.bf16.msra.mxu0 %v3726_v27 }
 0x670   : >> { %4047 = vmatprep.subr.bf16.mxu0 %v3725_v21 }
 0x673   : >> { %4048 = vmatpush3.bf16.msra.mxu0 %v3725_v21 }
 0x69f   : >> { %v2032_v14 = vpop.xlane.xlu0 %2031 }
 0x6a0   : >> { %4300 = vrcp.f32 %v2032_v14 }
 0x6a4   : >> { %v2041_v26 = vpop.xlane.xlu1 %2040 }
 0x6ad   : >> { %v4301_v28 = vpop.eup %4300 }
 0x6b0   : >> { %v2029_v38 = vpop.xlane.xlu1 %2028  ;;  %v2026_v37 = vpop.xlane.xlu0 %2025 }
 0x6b1   : >> { %4302 = vrcp.f32 %v2029_v38  ;;  %v2099_v38 = vpop.f32.mrf.mxu0 }
 0x6b2   : >> { %4304 = vrcp.f32 %v2026_v37 }
 0x6b3   : >> { %4306 = vrcp.f32 %v2041_v26 }
 0x6be   : >> { %v4303_v32 = vpop.eup %4302 }
 0x6bf   : >> { %v4305_v57 = vpop.eup %4304 }
 0x6c0   : >> { %v4307_v26 = vpop.eup %4306 }
 0x6dc   : >> { %v2035_v33 = vpop.xlane.xlu0 %2034 }
 0x6dd   : >> { %4308 = vrcp.f32 %v2035_v33 }
 0x6e0   : >> { %v2038_v17 = vpop.xlane.xlu0 %2037 }
 0x6e1   : >> { %4310 = vrcp.f32 %v2038_v17 }
 0x6e5   : >> { %v4017_v34 = vpop.f32.mrf.mxu1  ;;  %v2044_v35 = vpop.xlane.xlu0 %2043 }
 0x6e6   : >> { %v2298_v31 = vmul.f32 %v4301_v28, %v4017_v34  ;;  %v2047_v37 = vpop.xlane.xlu1 %2046 }
 0x6e7   : >> { %v2153_v24 = vpop.f32.mrf.mxu1 }
 0x6e8   : >> { %v2308_v18 = vpack.c.bf16 %v2298_v31, %v2298_v31  ;;  %v2296_v16 = vmul.f32 %v4305_v57, %v2153_v24  ;;  %v6714_v31 = vld [vmem:[#allocation52_spill] sm:$0xff] }
 0x6e9   : >> { %v4018_v20 = vpop.f32.mrf.mxu1  ;;  %v2050_v14 = vpop.xlane.xlu0 %2049  ;;  %v3724_v24 = vcombine.low %v6714_v31, %v5384_v63 }
 0x6ea   : >> { %2317 = vrot.lane.b32.xlu1 %v2308_v18, %s4801_s2  ;;  %4312 = vrcp.f32 %v2050_v14  ;;  %v4309_v20 = vpop.eup %4308 }
 0x6eb   : >> { %v2156_v30 = vpop.f32.mrf.mxu1  ;;  %4314 = vrcp.f32 %v2047_v37  ;;  %4049 = vmatprep.subr.bf16.mxu0 %v3724_v24 }
 0x6ec   : >> { %v2297_v58 = vmul.f32 %v4303_v32, %v2156_v30  ;;  %4316 = vrcp.f32 %v2044_v35  ;;  %4050 = vmatpush3.bf16.msra.mxu0 %v3724_v24 }
 0x6ee   : >> { %v2307_v19 = vpack.c.bf16 %v2297_v58, %v2296_v16  ;;  %v4311_v32 = vpop.eup %4310 }
 0x6f0   : >> { %2315 = vrot.lane.b32.xlu0 %v2307_v19, %s4801_s2 }
 0x6f7   : >> { %v4313_v16 = vpop.eup %4312 }
 0x6f8   : >> { %v4315_v27 = vpop.eup %4314 }
 0x6f9   : >> { %v4317_v14 = vpop.eup %4316 }
 0x711   : >> { %v4025_v62 = vpop.f32.mrf.mxu0 }
 0x712   : >> { %v2301_v28 = vmul.f32 %v4307_v26, %v4025_v62 }
 0x713   : >> { %v2210_v34 = vpop.f32.mrf.mxu0 }
 0x714   : >> { %v2310_v15 = vpack.c.bf16 %v2301_v28, %v2301_v28  ;;  %v2299_v30 = vmul.f32 %v4309_v20, %v2210_v34  ;;  %v2017_v28 = vpop.xlane.xlu1 %2016  ;;  %v2020_v34 = vpop.xlane.xlu0 %2019 }
 0x715   : >> { %v4026_v18 = vpop.f32.mrf.mxu0  ;;  %4318 = vrcp.f32 %v2020_v34 }
 0x716   : >> { %2323 = vrot.lane.b32.xlu1 %v2310_v15, %s4802_s25 }
 0x717   : >> { %v2213_v57 = vpop.f32.mrf.mxu0 }
 0x718   : >> { %v2300_v36 = vmul.f32 %v4311_v32, %v2213_v57  ;;  %v2023_v31 = vpop.xlane.xlu1 %2022 }
 0x719   : >> { %4320 = vrcp.f32 %v2023_v31  ;;  %v4346_v31 = vld [vmem:[%s5750_s18] sm:$0xff] }
 0x71a   : >> { %v2309_v58 = vpack.c.bf16 %v2300_v36, %v2299_v30  ;;  %v4033_v19 = vpop.f32.mrf.mxu1  ;;  %4322 = vrcp.f32 %v2017_v28 }
 0x71b   : >> { %v2304_v33 = vmul.f32 %v4313_v16, %v4033_v19 }
 0x71c   : >> { %v2267_v17 = vpop.f32.mrf.mxu1  ;;  %2321 = vrot.lane.b32.xlu1 %v2309_v58, %s4802_s25 }
 0x71d   : >> { %v2312_v35 = vpack.c.bf16 %v2304_v33, %v2304_v33  ;;  %v2302_v21 = vmul.f32 %v4317_v14, %v2267_v17 }
 0x71e   : >> { %v4034_v23 = vpop.f32.mrf.mxu1 }
 0x720   : >> { %v2270_v37 = vpop.f32.mrf.mxu1  ;;  %2329 = vrot.lane.b32.xlu1 %v2312_v35, %s4800_s19 }
 0x721   : >> { %v2303_v26 = vmul.f32 %v4315_v27, %v2270_v37 }
 0x722   : >> { %v4319_v18 = vpop.eup %4318 }
 0x723   : >> { %v2311_v62 = vpack.c.bf16 %v2303_v26, %v2302_v21  ;;  %v2294_v57 = vmul.f32 %v4319_v18, %v2099_v38  ;;  %v4347_v18 = vld [vmem:[%s5750_s18 + $0x10] sm:$0x1] }
 0x725   : >> { %2327 = vrot.lane.b32.xlu0 %v2311_v62, %s4800_s19 }
 0x726   : >> { %v4321_v20 = vpop.eup %4320 }
 0x727   : >> { %v4323_v32 = vpop.eup %4322  ;;  %v2295_v36 = vmul.f32 %v4321_v20, %v5978_v25 }
 0x728   : >> { %v2293_v16 = vmul.f32 %v4323_v32, %v5980_v39  ;;  %v6715_v39 = vld [vmem:[#allocation67_spill] sm:$0xff] }
 0x729   : >> { %v2306_v33 = vpack.c.bf16 %v2295_v36, %v2295_v36 }
 0x72a   : >> { %v2305_v19 = vpack.c.bf16 %v2294_v57, %v2293_v16  ;;  %v4348_v57 = vld [vmem:[%s5750_s18 + $0x8] sm:$0xff]  ;;  %v6716_v16 = vld [vmem:[#allocation100_spill] sm:$0xff] }
 0x75c   : >> { %v2318_v24 = vpop.permute.xlu1 %2317 }
 0x75d   : >> { %v2336_v23 = vsel %vm1668_vm4, %v2306_v33, %v2318_v24  ;;  %v6718_v33 = vld [vmem:[#allocation101_spill] sm:$0xff] }
 0x762   : >> { %v2316_v58 = vpop.permute.xlu0 %2315 }
 0x763   : >> { %v2333_v17 = vsel %vm1668_vm4, %v2305_v19, %v2316_v58  ;;  %v6717_v58 = vld [vmem:[#allocation98_spill] sm:$0xff] }
 0x764   : >> { %v3763_v19 = vcombine.high %v6717_v58, %v6716_v16 }
 0x766   : >> { %2690 = vmatprep.subr.bf16.mxu1 %v3763_v19 }
 0x788   : >> { %v2324_v15 = vpop.permute.xlu1 %2323 }
 0x789   : >> { %v2341_v38 = vsel %vm2337_vm7, %v2336_v23, %v2324_v15  ;;  %v3762_v23 = vcombine.low %v6717_v58, %v6716_v16 }
 0x78b   : >> { %2691 = vmatpush1.bf16.msra.mxu1 %v3762_v23  ;;  %v6723_v23 = vld [vmem:[#allocation95_spill] sm:$0xff] }
 0x78e   : >> { %v2322_v30 = vpop.permute.xlu1 %2321 }
 0x78f   : >> { %v2339_v27 = vsel %vm2337_vm7, %v2333_v17, %v2322_v30  ;;  %v6719_v17 = vld [vmem:[#allocation99_spill] sm:$0xff] }
 0x792   : >> { %v2330_v35 = vpop.permute.xlu1 %2329 }
 0x793   : >> { %v2347_v21 = vsel %vm2342_vm8, %v2341_v38, %v2330_v35  ;;  %v3765_v35 = vcombine.high %v6719_v17, %v6718_v33 }
 0x795   : >> { %2741 = vmatprep.subr.bf16.mxu0 %v3765_v35  ;;  %v6722_v35 = vld [vmem:[#allocation97_spill] sm:$0xff] }
 0x797   : >> { %v2328_v14 = vpop.permute.xlu0 %2327 }
 0x798   : >> { %v2344_v37 = vsel %vm2342_vm8, %v2339_v27, %v2328_v14  ;;  %v3764_v27 = vcombine.low %v6719_v17, %v6718_v33 }
 0x799   : >> { %4051 = vmatprep.mubr.bf16.mxu0 %v2344_v37 }
 0x79a   : >> { %4052 = vmatmul.mubr.bf16.vlgmr.msra.gmra.mxu0 %v2347_v21 }
 0x79b   : >> { %2773 = vmatprep.mubr.bf16.mxu0 %v6699_v22  ;;  %2742 = vmatpush1.bf16.msra.mxu0 %v3764_v27  ;;  %v3761_v27 = vcombine.high %v6723_v23, %v6722_v35 }
 0x79d   : >> { %2743 = vmatprep.subr.bf16.mxu0 %v3761_v27  ;;  %v6729_v27 = vld [vmem:[#allocation86_spill] sm:$0xff] }
 0x85a   : >> { %v4053_v25 = vpop.f32.mrf.mxu0 }
 0x85b   : >> { %v2446_v26 = vadd.f32 %v4053_v25, %v6715_v39 }
 0x85c   : >> { %v2437_v62 = vpop.f32.mrf.mxu0 }
 0x85d   : >> { %v2438_v28 = vadd.f32 %v6715_v39, %v2437_v62  ;;  %v6015_v20 = vadd.f32 %v4347_v18, %v2446_v26 }
 0x85e   : >> { %v4054_v34 = vpop.f32.mrf.mxu0 }
 0x85f   : >> { %v6012_v24 = vadd.f32 %v4346_v31, %v2438_v28  ;;  %v2458_v36 = vsel %vm1321_vm3, %v6015_v20, 0.0 }
 0x860   : >> { %v2440_v15 = vpop.f32.mrf.mxu0 }
 0x861   : >> { %v2441_v32 = vadd.f32 %v6715_v39, %v2440_v15  ;;  %2454 = vadd.xlane.f32.xlu0 %v6012_v24 }
 0x863   : >> { %v6020_v30 = vadd.f32 %v4348_v57, %v2441_v32  ;;  %v6720_v57 = vld [vmem:[#allocation96_spill] sm:$0xff] }
 0x865   : >> { %2456 = vadd.xlane.f32.xlu1 %v6020_v30  ;;  %2459 = vadd.xlane.f32.xlu0 %v2458_v36  ;;  %v6721_v36 = vld [vmem:[#allocation94_spill] sm:$0xff] }
 0x866   : >> { %v3759_v19 = vcombine.high %v6721_v36, %v6720_v57 }
 0x868   : >> { %2692 = vmatprep.subr.bf16.mxu1 %v3759_v19  ;;  %v6728_v19 = vld [vmem:[#allocation88_spill] sm:$0xff] }
 0x869   : >> { %v3750_v2 = vcombine.low %v6729_v27, %v6728_v19 }
 0x8ea   : >> { %v2455_v14 = vpop.xlane.xlu0 %2454 }
 0x8eb   : >> { %v2461_v38 = vmul.f32 0.0078125, %v2455_v14  ;;  %v3758_v14 = vcombine.low %v6721_v36, %v6720_v57 }
 0x8ed   : >> { %v6034_v37 = vsub.f32 %v6012_v24, %v2461_v38  ;;  %v3760_v38 = vcombine.low %v6723_v23, %v6722_v35  ;;  %2693 = vmatpush1.bf16.msra.mxu1 %v3758_v14  ;;  %v3751_v14 = vcombine.high %v6729_v27, %v6728_v19 }
 0x8ee   : >> { %v2457_v21 = vpop.xlane.xlu1 %2456  ;;  %v2460_v25 = vpop.xlane.xlu0 %2459 }
 0x8ef   : >> { %v2462_v26 = vmul.f32 0.0078125, %v2457_v21  ;;  %v2463_v62 = vmul.f32 0.0078125, %v2460_v25  ;;  %v2467_v28 = vmul.f32 %v6034_v37, %v6034_v37  ;;  %2744 = vmatpush1.bf16.msra.mxu0 %v3760_v38  ;;  %v6724_v21 = vld [vmem:[#allocation92_spill] sm:$0xff]  ;;  %v6725_v25 = vld [vmem:[#allocation90_spill] sm:$0xff]  ;;  %v6730_v38 = vld [vmem:[#allocation89_spill] sm:$0xff] }
 0x8f0   : >> { %v3753_v1 = vcombine.high %v6731_v0, %v6730_v38  ;;  %v3752_v3 = vcombine.low %v6731_v0, %v6730_v38  ;;  %v6737_v0 = vld [vmem:[#allocation78_spill] sm:$0xff] }
 0x8f1   : >> { %v6039_v34 = vsub.f32 %v6020_v30, %v2462_v26  ;;  %v6042_v31 = vsub.f32 %v6015_v20, %v2463_v62  ;;  %2470 = vadd.xlane.f32.xlu0 %v2467_v28  ;;  %v3755_v26 = vcombine.high %v6725_v25, %v6724_v21  ;;  %v6726_v62 = vld [vmem:[#allocation93_spill] sm:$0xff]  ;;  %v6727_v28 = vld [vmem:[#allocation91_spill] sm:$0xff]  ;;  %v3743_v9 = vcombine.high %v6737_v0, %v6736_v8 }
 0x8f3   : >> { %v2468_v18 = vmul.f32 %v6039_v34, %v6039_v34  ;;  %v2469_v15 = vmul.f32 %v6042_v31, %v6042_v31  ;;  %2694 = vmatprep.subr.bf16.mxu1 %v3755_v26  ;;  %v6735_v26 = vld [vmem:[#allocation83_spill] sm:$0xff] }
 0x8f5   : >> { %2472 = vadd.xlane.f32.xlu0 %v2468_v18  ;;  %v2474_v32 = vsel %vm1321_vm3, %v2469_v15, 0.0  ;;  %v3757_v18 = vcombine.high %v6727_v28, %v6726_v62  ;;  %v3754_v15 = vcombine.low %v6725_v25, %v6724_v21 }
 0x8f6   : >> { %2475 = vadd.xlane.f32.xlu1 %v2474_v32  ;;  %v3756_v32 = vcombine.low %v6727_v28, %v6726_v62 }
 0x8f7   : >> { %2745 = vmatprep.subr.bf16.mxu0 %v3757_v18  ;;  %2695 = vmatpush1.bf16.msra.mxu1 %v3754_v15  ;;  %v3749_v18 = vcombine.high %v6735_v26, %v6734_v7  ;;  %v3746_v15 = vcombine.low %v6733_v5, %v6732_v4  ;;  %v6743_v4 = vld [vmem:[#allocation75_spill] sm:$0xff] }
 0x8f8   : >> { %2746 = vmatpush1.bf16.msra.mxu0 %v3756_v32  ;;  %2696 = vmatprep.subr.bf16.mxu1 %v3751_v14  ;;  %v3748_v32 = vcombine.low %v6735_v26, %v6734_v7  ;;  %v6741_v14 = vld [vmem:[#allocation74_spill] sm:$0xff] }
 0x8f9   : >> { %2747 = vmatprep.subr.bf16.mxu0 %v3753_v1  ;;  %v3742_v1 = vcombine.low %v6737_v0, %v6736_v8  ;;  %v6744_v0 = vld [vmem:[#allocation72_spill] sm:$0xff]  ;;  %v6745_v7 = vld [vmem:[#allocation70_spill] sm:$0xff]  ;;  %v6747_v8 = vld [vmem:[#allocation71_spill] sm:$0xff] }
 0x8fb   : >> { %2697 = vmatpush1.bf16.msra.mxu1 %v3750_v2  ;;  %v3744_v2 = vcombine.low %v6739_v11, %v6738_v10 }
 0x8fc   : >> { %2748 = vmatpush1.bf16.msra.mxu0 %v3752_v3  ;;  %2698 = vmatprep.subr.bf16.mxu1 %v3747_v6  ;;  %v6740_v3 = vld [vmem:[#allocation76_spill] sm:$0xff] }
 0x8fd   : >> { %2749 = vmatprep.subr.bf16.mxu0 %v3749_v18  ;;  %v3739_v6 = vcombine.high %v6741_v14, %v6740_v3  ;;  %v6742_v18 = vld [vmem:[#allocation77_spill] sm:$0xff] }
 0x8fe   : >> { %v3741_v5 = vcombine.high %v6743_v4, %v6742_v18 }
 0x8ff   : >> { %2699 = vmatpush1.bf16.msra.mxu1 %v3746_v15  ;;  %v3738_v15 = vcombine.low %v6741_v14, %v6740_v3 }
 0x900   : >> { %2750 = vmatpush1.bf16.msra.mxu0 %v3748_v32  ;;  %2700 = vmatprep.subr.bf16.mxu1 %v3743_v9  ;;  %v3740_v32 = vcombine.low %v6743_v4, %v6742_v18  ;;  %v3735_v9 = vcombine.high %v6745_v7, %v6744_v0 }
 0x901   : >> { %2751 = vmatprep.subr.bf16.mxu0 %v3745_v12  ;;  %v6746_v12 = vld [vmem:[#allocation73_spill] sm:$0xff] }
 0x902   : >> { %v3737_v10 = vcombine.high %v6747_v8, %v6746_v12 }
 0x903   : >> { %2701 = vmatpush1.bf16.msra.mxu1 %v3742_v1  ;;  %v3734_v1 = vcombine.low %v6745_v7, %v6744_v0 }
 0x904   : >> { %2752 = vmatpush1.bf16.msra.mxu0 %v3744_v2  ;;  %2702 = vmatprep.subr.bf16.mxu1 %v3739_v6  ;;  %v3736_v2 = vcombine.low %v6747_v8, %v6746_v12 }
 0x905   : >> { %2753 = vmatprep.subr.bf16.mxu0 %v3741_v5 }
 0x907   : >> { %2703 = vmatpush1.bf16.msra.mxu1 %v3738_v15 }
 0x908   : >> { %2754 = vmatpush1.bf16.msra.mxu0 %v3740_v32  ;;  %2704 = vmatprep.subr.bf16.mxu1 %v3735_v9 }
 0x909   : >> { %2755 = vmatprep.subr.bf16.mxu0 %v3737_v10 }
 0x90b   : >> { %2705 = vmatpush1.bf16.msra.mxu1 %v3734_v1  ;;  %v6748_v1 = vld [vmem:[#allocation68_spill] sm:$0xff] }
 0x90c   : >> { %2756 = vmatpush1.bf16.msra.mxu0 %v3736_v2 }
 0x97a   : >> { %v2471_v6 = vpop.xlane.xlu0 %2470 }
 0x97b   : >> { %v2477_v5 = vmul.f32 0.0078125, %v2471_v6 }
 0x97d   : >> { %v2480_v3 = vadd.f32 1e-05, %v2477_v5 }
 0x97e   : >> { %v2473_v4 = vpop.xlane.xlu0 %2472 }
 0x97f   : >> { %4324 = vrsqrt.f32 %v2480_v3  ;;  %v2478_v11 = vmul.f32 0.0078125, %v2473_v4  ;;  %v2476_v13 = vpop.xlane.xlu1 %2475  ;;  %v6749_v4 = vld [vmem:[#allocation69_spill] sm:$0xff] }
 0x980   : >> { %v2479_v14 = vmul.f32 0.0078125, %v2476_v13 }
 0x981   : >> { %v2481_v15 = vadd.f32 1e-05, %v2478_v11 }
 0x982   : >> { %v2482_v32 = vadd.f32 1e-05, %v2479_v14 }
 0x983   : >> { %4326 = vrsqrt.f32 %v2481_v15  ;;  %v6753_v15 = vld [vmem:[#allocation165_spill] sm:$0xff] }
 0x984   : >> { %4328 = vrsqrt.f32 %v2482_v32 }
 0x98c   : >> { %v4325_v0 = vpop.eup %4324 }
 0x98d   : >> { %v2486_v7 = vmul.f32 %v4325_v0, %v6034_v37  ;;  %v6751_v37 = vld [vmem:[#allocation133_spill] sm:$0xff] }
 0x98f   : >> { %v2495_v2 = vmul.f32 %v6748_v1, %v2486_v7 }
 0x990   : >> { %v4327_v8 = vpop.eup %4326 }
 0x991   : >> { %v4329_v9 = vpop.eup %4328  ;;  %v2487_v10 = vmul.f32 %v4327_v8, %v6039_v34  ;;  %v2504_v5 = vadd.f32 %v6749_v4, %v2495_v2  ;;  %v6750_v8 = vld [vmem:[#allocation134_spill] sm:$0xff] }
 0x992   : >> { %v2488_v3 = vmul.f32 %v4329_v9, %v6042_v31  ;;  %v3782_v34 = vcombine.low %v6751_v37, %v6750_v8  ;;  %v6752_v31 = vld [vmem:[#allocation166_spill] sm:$0xff]  ;;  %v6762_v8 = vld [vmem:[#allocation116_spill] sm:$0xff]  ;;  %v6763_v37 = vld [vmem:[#allocation115_spill] sm:$0xff] }
 0x993   : >> { %v2496_v6 = vmul.f32 %v6748_v1, %v2487_v10  ;;  %v3798_v32 = vcombine.low %v6753_v15, %v6752_v31  ;;  %v6754_v9 = vld [vmem:[#allocation118_spill] sm:$0xff]  ;;  %v6755_v10 = vld [vmem:[#allocation117_spill] sm:$0xff]  ;;  %v6764_v31 = vld [vmem:[#allocation148_spill] sm:$0xff] }
 0x994   : >> { %v2497_v14 = vmul.f32 %v6748_v1, %v2488_v3  ;;  %v3774_v2 = vcombine.low %v6755_v10, %v6754_v9  ;;  %v6757_v3 = vld [vmem:[#allocation149_spill] sm:$0xff]  ;;  %3876 = vmatprep.subr.bf16.mxu1 %v3782_v34  ;;  %v3773_v1 = vcombine.low %v6763_v37, %v6762_v8  ;;  %v6765_v15 = vld [vmem:[#allocation147_spill] sm:$0xff]  ;;  %v6766_v34 = vld [vmem:[#allocation130_spill] sm:$0xff] }
 0x995   : >> { %v2505_v11 = vadd.f32 %v6749_v4, %v2496_v6  ;;  %v6756_v6 = vld [vmem:[#allocation150_spill] sm:$0xff]  ;;  %3904 = vmatprep.subr.bf16.mxu0 %v3798_v32  ;;  %v6767_v32 = vld [vmem:[#allocation129_spill] sm:$0xff]  ;;  %v6777_v8 = vld [vmem:[#allocation159_spill] sm:$0xff] }
 0x996   : >> { %v2506_v0 = vadd.f32 %v6749_v4, %v2497_v14  ;;  %v6760_v14 = vld [vmem:[#allocation164_spill] sm:$0xff]  ;;  %v3789_v4 = vcombine.low %v6765_v15, %v6764_v31  ;;  %v3780_v9 = vcombine.low %v6767_v32, %v6766_v34  ;;  %v6768_v10 = vld [vmem:[#allocation162_spill] sm:$0xff]  ;;  %v6779_v15 = vld [vmem:[#allocation111_spill] sm:$0xff] }
 0x997   : >> { %v2507_v13 = vpack.c.bf16 %v2505_v11, %v2504_v5  ;;  %v3790_v5 = vcombine.low %v6757_v3, %v6756_v6  ;;  %v6759_v11 = vld [vmem:[#allocation131_spill] sm:$0xff]  ;;  %v6770_v3 = vld [vmem:[#allocation114_spill] sm:$0xff]  ;;  %v6778_v31 = vld [vmem:[#allocation112_spill] sm:$0xff] }
 0x998   : >> { %v2508_v7 = vpack.c.bf16 %v2506_v0, %v2506_v0  ;;  %v6761_v0 = vld [vmem:[#allocation163_spill] sm:$0xff]  ;;  %v3771_v34 = vcombine.low %v6779_v15, %v6778_v31  ;;  %v6780_v32 = vld [vmem:[#allocation144_spill] sm:$0xff] }
 0x999   : >> { %2723 = vmatmul.mubr.bf16.vlgmr.msra.gmra.mxu1 %v2507_v13  ;;  %2774 = vmatmul.mubr.bf16.vlgmr.msra.gmra.mxu0 %v2507_v13  ;;  %v6792_v15 = vld [vmem:[#allocation156_spill] sm:$0xff] }
 0x99a   : >> { %2732 = vmatprep.mubr.bf16.mxu1 %v6699_v22  ;;  %2783 = vmatprep.mubr.bf16.mxu0 %v6699_v22  ;;  %v6758_v22 = vld [vmem:[#allocation132_spill] sm:$0xff] }
 0x99b   : >> { %3877 = vmatpush3.bf16.msra.mxu1 %v3774_v2  ;;  %3905 = vmatpush3.bf16.msra.mxu0 %v3790_v5  ;;  %v3781_v13 = vcombine.low %v6759_v11, %v6758_v22  ;;  %v6769_v2 = vld [vmem:[#allocation161_spill] sm:$0xff]  ;;  %v6772_v11 = vld [vmem:[#allocation146_spill] sm:$0xff] }
 0x99c   : >> { %v3796_v6 = vcombine.low %v6769_v2, %v6768_v10  ;;  %v6771_v5 = vld [vmem:[#allocation113_spill] sm:$0xff]  ;;  %v6781_v10 = vld [vmem:[#allocation143_spill] sm:$0xff] }
 0x99d   : >> { %3878 = vmatprep.subr.bf16.mxu1 %v3781_v13  ;;  %v3772_v22 = vcombine.low %v6771_v5, %v6770_v3  ;;  %v6774_v13 = vld [vmem:[#allocation128_spill] sm:$0xff]  ;;  %v3787_v2 = vcombine.low %v6781_v10, %v6780_v32  ;;  %v6784_v5 = vld [vmem:[#allocation158_spill] sm:$0xff] }
 0x99e   : >> { %v6794_v10 = vld [vmem:[#allocation108_spill] sm:$0xff] }
 0x99f   : >> { %3879 = vmatpush3.bf16.msra.mxu1 %v3773_v1 }
 0x9a0   : >> { %3880 = vmatprep.subr.bf16.mxu1 %v3780_v9  ;;  %v6782_v9 = vld [vmem:[#allocation126_spill] sm:$0xff] }
 0x9a1   : >> { %2733 = vmatmul.mubr.bf16.gmra.mxu1 %v2508_v7  ;;  %2784 = vmatmul.mubr.bf16.gmra.mxu0 %v2508_v7  ;;  %v3797_v7 = vcombine.low %v6761_v0, %v6760_v14  ;;  %v6773_v14 = vld [vmem:[#allocation145_spill] sm:$0xff] }
 0x9a2   : >> { %v3788_v0 = vcombine.low %v6773_v14, %v6772_v11  ;;  %v6786_v14 = vld [vmem:[#allocation110_spill] sm:$0xff] }
 0x9a3   : >> { %3906 = vmatprep.subr.bf16.mxu0 %v3797_v7  ;;  %3881 = vmatpush3.bf16.msra.mxu1 %v3772_v22  ;;  %v6775_v7 = vld [vmem:[#allocation127_spill] sm:$0xff]  ;;  %v6785_v22 = vld [vmem:[#allocation157_spill] sm:$0xff] }
 0x9a4   : >> { %3907 = vmatpush3.bf16.msra.mxu0 %v3789_v4  ;;  %v3779_v1 = vcombine.low %v6775_v7, %v6774_v13  ;;  %v6776_v4 = vld [vmem:[#allocation160_spill] sm:$0xff]  ;;  %v3794_v11 = vcombine.low %v6785_v22, %v6784_v5  ;;  %v6788_v7 = vld [vmem:[#allocation142_spill] sm:$0xff]  ;;  %v6797_v5 = vld [vmem:[#allocation139_spill] sm:$0xff] }
 0x9a5   : >> { %3908 = vmatprep.subr.bf16.mxu0 %v3796_v6  ;;  %v3795_v37 = vcombine.low %v6777_v8, %v6776_v4  ;;  %v6783_v6 = vld [vmem:[#allocation125_spill] sm:$0xff] }
 0x9a6   : >> { %3882 = vmatprep.subr.bf16.mxu1 %v3779_v1  ;;  %v3778_v3 = vcombine.low %v6783_v6, %v6782_v9  ;;  %v6789_v4 = vld [vmem:[#allocation141_spill] sm:$0xff]  ;;  %v6790_v1 = vld [vmem:[#allocation124_spill] sm:$0xff] }
 0x9a7   : >> { %3883 = vmatpush3.bf16.msra.mxu1 %v3771_v34  ;;  %v3786_v8 = vcombine.low %v6789_v4, %v6788_v7  ;;  %v6793_v34 = vld [vmem:[#allocation155_spill] sm:$0xff]  ;;  %v6796_v6 = vld [vmem:[#allocation140_spill] sm:$0xff]  ;;  %v6802_v4 = vld [vmem:[#allocation106_spill] sm:$0xff] }
 0x9a8   : >> { %3909 = vmatpush3.bf16.msra.mxu0 %v3788_v0  ;;  %v6787_v0 = vld [vmem:[#allocation109_spill] sm:$0xff]  ;;  %3884 = vmatprep.subr.bf16.mxu1 %v3778_v3  ;;  %v3793_v32 = vcombine.low %v6793_v34, %v6792_v15  ;;  %v3785_v22 = vcombine.low %v6797_v5, %v6796_v6  ;;  %v6798_v3 = vld [vmem:[#allocation122_spill] sm:$0xff]  ;;  %v6810_v5 = vld [vmem:[#allocation104_spill] sm:$0xff] }
 0x9a9   : >> { %3910 = vmatprep.subr.bf16.mxu0 %v3795_v37  ;;  %v3770_v13 = vcombine.low %v6787_v0, %v6786_v14  ;;  %v6791_v37 = vld [vmem:[#allocation123_spill] sm:$0xff]  ;;  %v6800_v0 = vld [vmem:[#allocation154_spill] sm:$0xff]  ;;  %v6805_v15 = vld [vmem:[#allocation137_spill] sm:$0xff] }
 0x9aa   : >> { %v3777_v31 = vcombine.low %v6791_v37, %v6790_v1  ;;  %v6804_v37 = vld [vmem:[#allocation138_spill] sm:$0xff] }
 0x9ab   : >> { %3885 = vmatpush3.bf16.msra.mxu1 %v3770_v13  ;;  %v6801_v13 = vld [vmem:[#allocation153_spill] sm:$0xff]  ;;  %v3784_v34 = vcombine.low %v6805_v15, %v6804_v37  ;;  %v6816_v15 = vsub.s32 2, %v5828_v29 }
 0x9ac   : >> { %3911 = vmatpush3.bf16.msra.mxu0 %v3787_v2  ;;  %v6795_v2 = vld [vmem:[#allocation107_spill] sm:$0xff]  ;;  %3886 = vmatprep.subr.bf16.mxu1 %v3777_v31  ;;  %v3792_v7 = vcombine.low %v6801_v13, %v6800_v0  ;;  %v6806_v31 = vld [vmem:[#allocation120_spill] sm:$0xff] }
 0x9ad   : >> { %3912 = vmatprep.subr.bf16.mxu0 %v3794_v11  ;;  %v3769_v9 = vcombine.low %v6795_v2, %v6794_v10  ;;  %v6799_v11 = vld [vmem:[#allocation121_spill] sm:$0xff]  ;;  %v6808_v2 = vld [vmem:[#allocation152_spill] sm:$0xff]  ;;  %v6813_v0 = vld [vmem:[#allocation135_spill] sm:$0xff] }
 0x9ae   : >> { %v3776_v14 = vcombine.low %v6799_v11, %v6798_v3  ;;  %v6812_v11 = vld [vmem:[#allocation136_spill] sm:$0xff] }
 0x9af   : >> { %3887 = vmatpush3.bf16.msra.mxu1 %v3769_v9  ;;  %v6809_v9 = vld [vmem:[#allocation151_spill] sm:$0xff]  ;;  %v3783_v13 = vcombine.low %v6813_v0, %v6812_v11 }
 0x9b0   : >> { %3913 = vmatpush3.bf16.msra.mxu0 %v3786_v8  ;;  %v6803_v8 = vld [vmem:[#allocation105_spill] sm:$0xff]  ;;  %3888 = vmatprep.subr.bf16.mxu1 %v3776_v14  ;;  %v3791_v6 = vcombine.low %v6809_v9, %v6808_v2  ;;  %v2524_v14 = vsub.s32 3, %v5828_v29 }
 0x9b1   : >> { %3914 = vmatprep.subr.bf16.mxu0 %v3793_v32  ;;  %v3768_v1 = vcombine.low %v6803_v8, %v6802_v4  ;;  %v6807_v32 = vld [vmem:[#allocation119_spill] sm:$0xff]  ;;  %v6814_v8 = vsub.s32 0, %v5828_v29 }
 0x9b2   : >> { %v3775_v10 = vcombine.low %v6807_v32, %v6806_v31  ;;  %v6817_v31 = vsub.s32 1, %v5828_v29 }
 0x9b3   : >> { %3889 = vmatpush3.bf16.msra.mxu1 %v3768_v1  ;;  %v6815_v1 = vld [vmem:[#allocation102_spill] sm:$0xff] }
 0x9b4   : >> { %3915 = vmatpush3.bf16.msra.mxu0 %v3785_v22  ;;  %v6811_v22 = vld [vmem:[#allocation103_spill] sm:$0xff]  ;;  %3890 = vmatprep.subr.bf16.mxu1 %v3775_v10  ;;  %v2513_v37 = vrot.slane %v6815_v1, %v6814_v8  ;;  %v2517_v32 = vrot.slane %v6815_v1, %v6817_v31  ;;  %v2525_v2 = vrot.slane %v6815_v1, %v2524_v14 }
 0x9b5   : >> { %3916 = vmatprep.subr.bf16.mxu0 %v3792_v7  ;;  %v3767_v3 = vcombine.low %v6811_v22, %v6810_v5 }
 0x9b7   : >> { %3891 = vmatpush3.bf16.msra.mxu1 %v3767_v3 }
 0x9b8   : >> { %3917 = vmatpush3.bf16.msra.mxu0 %v3784_v34  ;;  %v2521_v34 = vrot.slane %v6815_v1, %v6816_v15 }
 0x9b9   : >> { %3918 = vmatprep.subr.bf16.mxu0 %v3791_v6 }
 0x9bc   : >> { %3919 = vmatpush3.bf16.msra.mxu0 %v3783_v13 }
 0xa59   : >> { %v2724_v7 = vpop.f32.mrf.mxu1  ;;  %v2775_v4 = vpop.f32.mrf.mxu0 }
 0xa5a   : >> { %v2725_v22 = vadd.f32 %v2724_v7, %v2513_v37  ;;  %v2776_v3 = vadd.f32 %v2775_v4, %v2521_v34 }
 0xa5b   : >> { %v2726_v10 = vpop.f32.mrf.mxu1  ;;  %v2777_v9 = vpop.f32.mrf.mxu0 }
 0xa5c   : >> { %v2727_v13 = vadd.f32 %v2726_v10, %v2517_v32  ;;  %v2778_v8 = vadd.f32 %v2777_v9, %v2525_v2 }
 0xa5d   : >> { %v2728_v6 = vpop.f32.mrf.mxu1  ;;  %v2779_v5 = vpop.f32.mrf.mxu0 }
 0xa5e   : >> { %v2729_v11 = vadd.f32 %v2728_v6, %v2513_v37  ;;  %v2780_v0 = vadd.f32 %v2779_v5, %v2521_v34 }
 0xa5f   : >> { %v2730_v12 = vpop.f32.mrf.mxu1  ;;  %v2781_v16 = vpop.f32.mrf.mxu0 }
 0xa60   : >> { %v6191_v17 = vpack.c.bf16 %v2729_v11, %v2725_v22  ;;  %v6193_v15 = vpack.c.bf16 %v2780_v0, %v2776_v3  ;;  %v2731_v29 = vadd.f32 %v2730_v12, %v2517_v32  ;;  %v2782_v31 = vadd.f32 %v2781_v16, %v2525_v2 }
 0xa61   : >> { %v2734_v18 = vpop.f32.mrf.mxu1  ;;  %v2785_v19 = vpop.f32.mrf.mxu0 }
 0xa62   : >> { %v2800_v14 = vmul.bf16 %v6191_v17, %v6191_v17  ;;  %v2802_v7 = vmul.bf16 %v6193_v15, %v6193_v15  ;;  %v6199_v4 = vpack.c.bf16 %v2731_v29, %v2727_v13  ;;  %v6201_v10 = vpack.c.bf16 %v2782_v31, %v2778_v8 }
 0xa63   : >> { %v2735_v9 = vadd.f32 %v2734_v18, %v2513_v37  ;;  %v2786_v6 = vadd.f32 %v2785_v19, %v2521_v34  ;;  %v2736_v5 = vpop.f32.mrf.mxu1  ;;  %v2787_v22 = vpop.f32.mrf.mxu0 }
 0xa64   : >> { %v2808_v3 = vmul.bf16 %v2800_v14, %v6191_v17  ;;  %v2810_v16 = vmul.bf16 %v2802_v7, %v6193_v15  ;;  %v2801_v12 = vmul.bf16 %v6199_v4, %v6199_v4  ;;  %v2803_v11 = vmul.bf16 %v6201_v10, %v6201_v10 }
 0xa65   : >> { %v6209_v0 = vpack.c.bf16 %v2735_v9, %v2735_v9  ;;  %v6211_v13 = vpack.c.bf16 %v2786_v6, %v2786_v6  ;;  %v2737_v8 = vadd.f32 %v2736_v5, %v2517_v32  ;;  %v2788_v29 = vadd.f32 %v2787_v22, %v2525_v2  ;;  %v2738_v18 = vpop.f32.mrf.mxu1  ;;  %v2789_v19 = vpop.f32.mrf.mxu0 }
 0xa66   : >> { %v2816_v37 = vmul.bf16 1027030327, %v2808_v3  ;;  %v2818_v34 = vmul.bf16 1027030327, %v2810_v16  ;;  %v2809_v31 = vmul.bf16 %v2801_v12, %v6199_v4  ;;  %v2811_v14 = vmul.bf16 %v2803_v11, %v6201_v10 }
 0xa67   : >> { %v2804_v7 = vmul.bf16 %v6209_v0, %v6209_v0  ;;  %v2806_v1 = vmul.bf16 %v6211_v13, %v6211_v13  ;;  %v6219_v9 = vpack.c.bf16 %v2737_v8, %v2737_v8  ;;  %v6221_v6 = vpack.c.bf16 %v2788_v29, %v2788_v29  ;;  %v2739_v32 = vpop.f32.mrf.mxu1  ;;  %v2790_v2 = vpop.f32.mrf.mxu0 }
 0xa68   : >> { %v2824_v5 = vadd.bf16 %v2816_v37, %v6191_v17  ;;  %v2826_v22 = vadd.bf16 %v2818_v34, %v6193_v15  ;;  %v2817_v3 = vmul.bf16 1027030327, %v2809_v31  ;;  %v2819_v16 = vmul.bf16 1027030327, %v2811_v14 }
 0xa69   : >> { %v2812_v12 = vmul.bf16 %v2804_v7, %v6209_v0  ;;  %v2814_v11 = vmul.bf16 %v2806_v1, %v6211_v13  ;;  %v2805_v18 = vmul.bf16 %v6219_v9, %v6219_v9  ;;  %v2807_v8 = vmul.bf16 %v6221_v6, %v6221_v6 }
 0xa6a   : >> { %v2832_v29 = vmul.bf16 1061961548, %v2824_v5  ;;  %v2834_v19 = vmul.bf16 1061961548, %v2826_v22  ;;  %v2825_v32 = vadd.bf16 %v2817_v3, %v6199_v4  ;;  %v2827_v37 = vadd.bf16 %v2819_v16, %v6201_v10 }
 0xa6b   : >> { %v2820_v2 = vmul.bf16 1027030327, %v2812_v12  ;;  %v2822_v34 = vmul.bf16 1027030327, %v2814_v11  ;;  %v2813_v31 = vmul.bf16 %v2805_v18, %v6219_v9  ;;  %v2815_v14 = vmul.bf16 %v2807_v8, %v6221_v6 }
 0xa6c   : >> { %4330 = vtanh.bf16 %v2832_v29  ;;  %v2833_v1 = vmul.bf16 1061961548, %v2825_v32  ;;  %v2835_v7 = vmul.bf16 1061961548, %v2827_v37 }
 0xa6d   : >> { %4332 = vtanh.bf16 %v2834_v19  ;;  %v2828_v21 = vadd.bf16 %v2820_v2, %v6209_v0  ;;  %v2830_v23 = vadd.bf16 %v2822_v34, %v6211_v13  ;;  %v2821_v5 = vmul.bf16 1027030327, %v2813_v31 }
 0xa6e   : >> { %v2823_v22 = vmul.bf16 1027030327, %v2815_v14  ;;  %4334 = vtanh.bf16 %v2833_v1 }
 0xa6f   : >> { %v2836_v3 = vmul.bf16 1061961548, %v2828_v21  ;;  %v2838_v25 = vmul.bf16 1061961548, %v2830_v23  ;;  %v2829_v16 = vadd.bf16 %v2821_v5, %v6219_v9  ;;  %4336 = vtanh.bf16 %v2835_v7 }
 0xa70   : >> { %v2831_v12 = vadd.bf16 %v2823_v22, %v6221_v6 }
 0xa71   : >> { %4338 = vtanh.bf16 %v2836_v3  ;;  %v2837_v11 = vmul.bf16 1061961548, %v2829_v16 }
 0xa72   : >> { %4340 = vtanh.bf16 %v2838_v25  ;;  %v2839_v18 = vmul.bf16 1061961548, %v2831_v12 }
 0xa73   : >> { %4342 = vtanh.bf16 %v2837_v11 }
 0xa74   : >> { %4344 = vtanh.bf16 %v2839_v18 }
 0xa7a   : >> { %v4331_v8 = vpop.eup %4330 }
 0xa7b   : >> { %v4333_v29 = vpop.eup %4332  ;;  %v2848_v19 = vadd.bf16 1065369472, %v4331_v8 }
 0xa7c   : >> { %v4335_v32 = vpop.eup %4334  ;;  %v2850_v37 = vadd.bf16 1065369472, %v4333_v29 }
 0xa7d   : >> { %v4337_v2 = vpop.eup %4336  ;;  %v2849_v34 = vadd.bf16 1065369472, %v4335_v32  ;;  %v2856_v21 = vmul.bf16 1056980736, %v2848_v19 }
 0xa7e   : >> { %v2851_v23 = vadd.bf16 1065369472, %v4337_v2  ;;  %v2858_v14 = vmul.bf16 1056980736, %v2850_v37 }
 0xa7f   : >> { %v4339_v31 = vpop.eup %4338  ;;  %v2857_v1 = vmul.bf16 1056980736, %v2849_v34  ;;  %v2864_v16 = vmul.bf16 %v2856_v21, %v6191_v17 }
 0xa80   : >> { %v4341_v7 = vpop.eup %4340  ;;  %v2859_v5 = vmul.bf16 1056980736, %v2851_v23  ;;  %v2852_v18 = vadd.bf16 1065369472, %v4339_v31  ;;  %v2866_v8 = vmul.bf16 %v2858_v14, %v6193_v15 }
 0xa81   : >> { %v4343_v22 = vpop.eup %4342  ;;  %v2865_v25 = vmul.bf16 %v2857_v1, %v6199_v4  ;;  %v2854_v19 = vadd.bf16 1065369472, %v4341_v7 }
 0xa82   : >> { %v4345_v3 = vpop.eup %4344  ;;  %v2867_v12 = vmul.bf16 %v2859_v5, %v6201_v10  ;;  %v2853_v11 = vadd.bf16 1065369472, %v4343_v22  ;;  %v2860_v4 = vmul.bf16 1056980736, %v2852_v18 }
 0xa83   : >> { %3102 = vmatprep.mubr.bf16.mxu1 %v2865_v25  ;;  %v2855_v29 = vadd.bf16 1065369472, %v4345_v3  ;;  %v2862_v17 = vmul.bf16 1056980736, %v2854_v19 }
 0xa84   : >> { %3150 = vmatprep.mubr.bf16.mxu0 %v2867_v12  ;;  %3103 = vmatmul.mubr.bf16.vlgmr.msra.gmra.mxu1 %v2864_v16  ;;  %v2861_v32 = vmul.bf16 1056980736, %v2853_v11  ;;  %v2868_v10 = vmul.bf16 %v2860_v4, %v6209_v0 }
 0xa85   : >> { %3151 = vmatmul.mubr.bf16.vlgmr.msra.gmra.mxu0 %v2866_v8  ;;  %v2863_v37 = vmul.bf16 1056980736, %v2855_v29  ;;  %v2870_v15 = vmul.bf16 %v2862_v17, %v6211_v13 }
 0xa86   : >> { %v2869_v2 = vmul.bf16 %v2861_v32, %v6219_v9  ;;  %v6818_v9 = vld [vmem:[#allocation167_spill] sm:$0xff] }
 0xa87   : >> { %v2871_v34 = vmul.bf16 %v2863_v37, %v6221_v6 }
 0xa88   : >> { %3110 = vmatprep.mubr.bf16.mxu1 %v2869_v2 }
 0xa89   : >> { %3158 = vmatprep.mubr.bf16.mxu0 %v2871_v34 }
 0xa8c   : >> { %3111 = vmatmul.mubr.bf16.gmra.mxu1 %v2868_v10 }
 0xa8d   : >> { %3159 = vmatmul.mubr.bf16.gmra.mxu0 %v2870_v15 }
 0xb44   : >> { %v3892_v21 = vpop.f32.mrf.mxu1 }
 0xb45   : >> { %v3920_v23 = vpop.f32.mrf.mxu0 }
 0xb46   : >> { %v3893_v31 = vpop.f32.mrf.mxu1 }
 0xb47   : >> { %v3894_v14 = vadd.f32 %v3893_v31, %v3892_v21  ;;  %v3921_v1 = vpop.f32.mrf.mxu0 }
 0xb48   : >> { %v3895_v7 = vpop.f32.mrf.mxu1  ;;  %v3922_v22 = vadd.f32 %v3921_v1, %v3920_v23 }
 0xb49   : >> { %v3105_v5 = vadd.f32 %v3894_v14, %v6818_v9  ;;  %v3923_v6 = vpop.f32.mrf.mxu0 }
 0xb4a   : >> { %v3896_v25 = vpop.f32.mrf.mxu1 }
 0xb4b   : >> { %v3153_v3 = vadd.f32 %v3922_v22, %v3105_v5  ;;  %v3897_v16 = vadd.f32 %v3896_v25, %v3895_v7  ;;  %v3924_v12 = vpop.f32.mrf.mxu0 }
 0xb4c   : >> { %v3898_v0 = vpop.f32.mrf.mxu1  ;;  %v3925_v18 = vadd.f32 %v3924_v12, %v3923_v6 }
 0xb4d   : >> { %v3166_v13 = vadd.f32 %v3153_v3, %v6012_v24  ;;  %v3108_v11 = vadd.f32 %v3897_v16, %v6818_v9  ;;  %v3926_v8 = vpop.f32.mrf.mxu0 }
 0xb4e   : >> { %v3899_v29 = vpop.f32.mrf.mxu1 }
 0xb4f   : >> { %3169 = vst [vmem:[%s5750_s18] sm:$0xff] %v3166_v13  ;;  %v3156_v19 = vadd.f32 %v3925_v18, %v3108_v11  ;;  %v3900_v32 = vadd.f32 %v3899_v29, %v3898_v0  ;;  %v3927_v37 = vpop.f32.mrf.mxu0 }
 0xb50   : >> { %v3901_v2 = vpop.f32.mrf.mxu1  ;;  %v3928_v17 = vadd.f32 %v3927_v37, %v3926_v8 }
 0xb51   : >> { %v3167_v4 = vadd.f32 %v3156_v19, %v6020_v30  ;;  %v3113_v34 = vadd.f32 %v3900_v32, %v6818_v9  ;;  %v3929_v10 = vpop.f32.mrf.mxu0 }
 0xb52   : >> { %v3902_v15 = vpop.f32.mrf.mxu1 }
 0xb53   : >> { %3170 = vst [vmem:[%s5750_s18 + $0x8] sm:$0xff] %v3167_v4  ;;  %v3161_v24 = vadd.f32 %v3928_v17, %v3113_v34  ;;  %v3930_v21 = vpop.f32.mrf.mxu0 }
 0xb54   : > { %1310 = sbr.rel (!%p1308_p13) target bundleno = 544 (0x220), region = 285 }
 0xb55   : >> { %v3168_v23 = vadd.f32 %v3161_v24, %v6015_v20 }
 0xb57   : >> { %3171 = vst [vmem:[%s5750_s18 + $0x10] sm:$0x1] %v3168_v23 }
 0xb59   : > { %3175 = sbr.rel (%p3799_p12) target bundleno = 3423 (0xd5f), region = 166  ;;  %s6820_s6 = sld [smem:[#allocation186_spill]] (!%p3799_p12) }
 0xb5a   : > { %s6821_s11 = sld [smem:[#allocation184_spill]] (!%p3799_p12) }
 0xb5b   : > { %s6822_s2 = sld [smem:[#allocation185_spill]] (!%p3799_p12) }
 0xb5c   : > { %s6823_s16 = sld [smem:[#allocation187_spill]] (!%p3799_p12) }
 0xb5e   : > { %v3176_v30 = vld [vmem:[#allocation2] sm:$0x1]  ;;  %v3178_v31 = vld [vmem:[#allocation2 + $0x18] sm:$0x1]  ;;  %vm3186_vm9 = vcmask 1041408   ;;  %v4803_v5 = vmov 0.0  }
 0xb5f   : > { %v3180_v14 = vrot.slane %v3178_v31, 7  ;;  %v4349_v20 = vld [vmem:[%s6820_s6 + $0x38] sm:$0xff]   ;;  %4055 = vmatprep.subr.bf16.mxu0 %v4803_v5  ;;  %v4350_v40 = vld [vmem:[%s6820_s6 + $0x30] sm:$0xff]   ;;  %v4351_v46 = vld [vmem:[%s6820_s6 + $0x28] sm:$0xff]   ;;  %vm4804_vm10 = vmmov 0   ;;  %vm3327_vm11 = vcmask 74752  }
 0xb60   : > { %4056 = vmatpush3.bf16.msra.mxu0 %v4349_v20  ;;  %v4352_v47 = vld [vmem:[%s6820_s6 + $0x20] sm:$0xff]   ;;  %4071 = vmatprep.mubr.msk.bf16.mxu0 %vm4804_vm10, %v4803_v5  ;;  %v4353_v48 = vld [vmem:[%s6820_s6 + $0x18] sm:$0xff]   ;;  %v4354_v49 = vld [vmem:[%s6820_s6 + $0x10] sm:$0xff]  }
 0xb61   : > { %v3183_v1 = vsel %vm1321_vm3, %v3176_v30, %v3180_v14  ;;  %4057 = vmatprep.subr.bf16.mxu0 %v4803_v5  ;;  %v4355_v50 = vld [vmem:[%s6820_s6 + $0x8] sm:$0xff]   ;;  %v4356_v51 = vld [vmem:[%s6820_s6] sm:$0xff]  }
 0xb62   : > { %v3187_v7 = vsel %vm3186_vm9, %v3183_v1, 0.0  ;;  %v3800_v56 = vld [vmem:[%s6821_s11] ss:$0 sm:$0xff] }
 0xb63   : > { %3188 = vadd.xlane.f32.xlu0 %v3187_v7  ;;  %v3801_v60 = vld [vmem:[%s6822_s2] ss:$0 sm:$0xff] }
 0xb64   : > { %4058 = vmatpush3.bf16.msra.mxu0 %v4350_v40  ;;  %v3802_v58 = vld [vmem:[%s6823_s16] ss:$0 sm:$0xff] }
 0xb65   : > { %4059 = vmatprep.subr.bf16.mxu0 %v4803_v5 }
 0xb68   : > { %4060 = vmatpush3.bf16.msra.mxu0 %v4351_v46 }
 0xb69   : > { %4061 = vmatprep.subr.bf16.mxu0 %v4803_v5 }
 0xb6c   : > { %4062 = vmatpush3.bf16.msra.mxu0 %v4352_v47 }
 0xb6d   : > { %4063 = vmatprep.subr.bf16.mxu0 %v4803_v5 }
 0xb70   : > { %4064 = vmatpush3.bf16.msra.mxu0 %v4353_v48 }
 0xb71   : > { %4065 = vmatprep.subr.bf16.mxu0 %v4803_v5 }
 0xb74   : > { %4066 = vmatpush3.bf16.msra.mxu0 %v4354_v49 }
 0xb75   : > { %4067 = vmatprep.subr.bf16.mxu0 %v4803_v5 }
 0xb78   : > { %4068 = vmatpush3.bf16.msra.mxu0 %v4355_v50 }
 0xb79   : > { %4069 = vmatprep.subr.bf16.mxu0 %v4803_v5 }
 0xb7c   : > { %4070 = vmatpush3.bf16.msra.mxu0 %v4356_v51 }
 0xbec   : > { %v3189_v41 = vpop.xlane.xlu0 %3188 }
 0xbed   : > { %v3191_v42 = vmul.f32 0.0078125, %v3189_v41 }
 0xbef   : > { %v3192_v43 = vsub.f32 %v3183_v1, %v3191_v42 }
 0xbf1   : > { %v3193_v44 = vmul.f32 %v3192_v43, %v3192_v43 }
 0xbf3   : > { %v3194_v45 = vsel %vm3186_vm9, %v3193_v44, 0.0 }
 0xbf4   : > { %3195 = vadd.xlane.f32.xlu0 %v3194_v45 }
 0xc7d   : > { %v3196_v52 = vpop.xlane.xlu0 %3195 }
 0xc7e   : > { %v3197_v53 = vmul.f32 0.0078125, %v3196_v52 }
 0xc80   : > { %v3198_v54 = vadd.f32 1e-05, %v3197_v53 }
 0xc82   : > { %4357 = vrsqrt.f32 %v3198_v54 }
 0xc8f   : > { %v4358_v55 = vpop.eup %4357 }
 0xc90   : > { %v3200_v59 = vmul.f32 %v4358_v55, %v3192_v43 }
 0xc92   : > { %v3207_v61 = vmul.f32 %v3800_v56, %v3200_v59 }
 0xc94   : > { %v3214_v63 = vadd.f32 %v3801_v60, %v3207_v61 }
 0xc96   : > { %v3215_v39 = vpack.c.bf16 %v3214_v63, %v3214_v63 }
 0xc98   : > { %4072 = vmatmul.mubr.bf16.vlgmr.msra.gmra.mxu0 %v3215_v39 }
 0xd58   : > { %v3321_v33 = vpop.f32.mrf.mxu0 }
 0xd59   : > { %v3322_v57 = vadd.f32 %v3802_v58, %v3321_v33 }
 0xd5a   : > { %v4073_v36 = vpop.f32.mrf.mxu0 }
 0xd5b   : > { %3328 = vst.msk [vmem:[%s1012_s23] sm:$0x3] %vm3327_vm11, %v3322_v57 }
 0xd5c   : > { %v3324_v35 = vpop.f32.mrf.mxu0 }
 0xd5e   : > { %v4074_v62 = vpop.f32.mrf.mxu0 }
 0xd5f PF: > { %s6824_s22 = sld [smem:[#allocation27_spill]]  ;;  %s3343_s7 = sshll.u32 %s1012_s23, 4  ;;  %s3344_s7 = int_to_ptr.vmem [resolvable:$true] %s3343_s7 }
 0xd60   : > { %s6825_s28 = sld [smem:[#allocation22_spill]]  ;;  %s4635_s8 = scalar_lea.vmem %s3344_s7, 32 }
 0xd61   : > { %s6826_s24 = sld [smem:[#allocation35_spill]]  ;;  %p4636_p4 = scmp.ne.s32.totalorder %s3344_s7, %s4635_s8 }
 0xd62   : > { %s6827_s30 = sld [smem:[#allocation188_spill]]  ;;  %s4805_s9 = smov [#allocation16]  }
 0xd63   : > { %s4639_s10 = sshll.u32 %s4805_s9, 4  ;;  %s4640_s10 = int_to_ptr.vmem [resolvable:$false] %s4639_s10 }
 0xd64   : > { %s4641_s29 = scalar_lea.vmem %s4640_s10, 64  ;;  %p4642_p10 = scmp.lt.s32.totalorder %s3344_s7, %s4640_s10 }
 0xd65   : > { %s3812_s27 = sshll.u32 %s6824_s22, 5  ;;  %p4643_p3 = scmp.lt.s32.totalorder %s4641_s29, %s4635_s8 }
 0xd66   : > { %s6829_s3 = sand.u32 1, %s6825_s28  }
 0xd67   : > { %s3330_s14 = scalar_lea.sflag [#allocation5], %s6829_s3  ;;  %p6830_p9 = scmp.ne.s32.totalorder %s6826_s24, 0 }
 0xd68   : > { %s6828_s17 = smov %s6827_s30  ;;  %s3341_s0 = scalar_lea.hbm %s6827_s30, %s3812_s27 }
 0xd69   : > { %p4637_p0 = pnand %p4636_p4, %p6830_p9  ;;  %p4644_p1 = por %p4643_p3, %p4642_p10 }
 0xd6b   : > { %p4638_p8 = pneg %p4637_p0 }
 0xd6d   : > { %p4645_p5 = pnand %p4644_p1, %p4638_p8 }
 0xd6f   : > { %4648 = shalt.err (!%p4645_p5)
}
 0xd70   : > { %s4649_s26 = scalar_lea.hbm %s3341_s0, 32  ;;  %s4653_s11 = scalar_lea.hbm %s6828_s17, 64 }
 0xd71   : > { %p4650_p11 = scmp.ne.s32.totalorder %s3341_s0, %s4649_s26  ;;  %p4654_p6 = scmp.lt.s32.totalorder %s3341_s0, %s6828_s17 }
 0xd72   : > { %p4655_p13 = scmp.lt.s32.totalorder %s4653_s11, %s4649_s26 }
 0xd73   : > { %p4651_p2 = pnand %p4650_p11, %p6830_p9 }
 0xd74   : > { %p4656_p12 = por %p4655_p13, %p4654_p6 }
 0xd75   : > { %p4652_p7 = pneg %p4651_p2 }
 0xd77   : > { %p4657_p4 = pnand %p4656_p12, %p4652_p7 }
 0xd79   : > { %4660 = shalt.err (!%p4657_p4)
}
 0xd7a   : > { %4113 = dma.vmem_to_hbm [thread:$0]  (%p6830_p9), %s3344_s7, 32, %s3341_s0, %s3330_s14  }
 0xd7b PF: > { %s6831_s2 = sld [smem:[#allocation29_spill]] }
 0xd7c   : > { %s6832_s25 = sld [smem:[#allocation21_spill]] }
 0xd7d   : > { %s6833_s20 = sld [smem:[#allocation36_spill]] }
 0xd81   : > { %p4156_p0 = scmp.ge.s32.totalorder %s6831_s2, 2 }
 0xd82   : > { %s3355_s16 = sand.u32 1, %s6832_s25  }
 0xd83   : > { %p6834_p8 = scmp.ne.s32.totalorder %s6833_s20, 0  ;;  %s3356_s22 = scalar_lea.sflag [#allocation5], %s3355_s16 }
 0xd85   : > { %p4148_p10 = pnand %p4156_p0, %p6834_p8 }
 0xd87   : > { %p4149_p3 = pneg %p4148_p10 }
 0xd89   : > { %4726 = dma.done.wait (%p4149_p3), %s3356_s22, 32  }
 0xd8a   : > { %4728 = vsyncadd (%p4149_p3), %s3356_s22, 4294967264  ;;  %s36_s5 = sadd.s32 1, %s6831_s2   ;;  %s6835_s2 = sld [smem:[#allocation22_spill]] }
 0xd8b   : > { %p33_p1 = scmp.ge.s32.totalorder %s36_s5, 6   ;;  %s6836_s25 = sld [smem:[#allocation23_spill]] }
 0xd8c   : > { %s6837_s26 = sld [smem:[#allocation34_spill]]  ;;  %s6844_s29 = smov %s4763_s4 }
 0xd8d   : > { %s6838_s27 = sld [smem:[#allocation24_spill]] }
 0xd8e   : > { %s6839_s3 = sld [smem:[#allocation25_spill]] }
 0xd8f   : > { %s6840_s28 = sld [smem:[#allocation32_spill]] }
 0xd90   : > { %s6841_s0 = sld [smem:[#allocation28_spill]] }
 0xd91   : > { %s6842_s24 = sld [smem:[#allocation30_spill]] }
 0xd92   : > { %s6843_s30 = sld [smem:[#allocation31_spill]] }
 0xd93   :  { %35 = sbr.rel (!%p33_p1) target bundleno = 31 (0x1f), region = 296 }
 0xd97   : > { %s6845_s4 = smov %s6842_s24 }
 0xd98   :  { %3361 = vsyncpa [#allocation4], 1 }
 0xd99   :  { %3363 = vsyncpa [#allocation4 + $0x1], 1 }
 0xd9a   :  { %3364 = vsyncpa [#allocation7], 1 }
 0xd9b   :  { %3365 = vsyncpa [#allocation5], 1 }
 0xd9c   :  { %3367 = vsyncpa [#allocation5 + $0x1], 1 }

</bundles_post_ra>
